<compile_context>
chip_gen: v7x
topology: tpu7x:2x2x1
jax: 0.10.0
libtpu: 0.0.40
codegen_flags: <defaults>
</compile_context>

<pallas_src>
import jax
import jax.numpy as jnp
from jax.experimental import pallas as pl
from jax.experimental.pallas import tpu as pltpu

H = 128            # hidden_dim_lstm
EMB = 3            # demand_embedding
PAST_STOCK = 5
PAST_DEMAND = 5    # state feature dim = 5 + 1 + 5 = 11
N_ACTIONS = 2
MLP_HIDDEN = (64, 32, 16)
LEAK = 0.01        # torch.nn.LeakyReLU default negative_slope
PADW = 128         # lane-dense padded width for all MLP intermediates / output
BATCH_TILE = 64    # vreg-pressure cap (review item 1)


def _leaky_relu(x):
    return jnp.where(x > 0, x, LEAK * x)


def _sigmoid_1eup(x):
    # sigmoid(x) == 0.5*tanh(0.5*x) + 0.5 : a single EUP op per gate.
    return 0.5 * jnp.tanh(0.5 * x) + 0.5


def policy_kernel(
    # activations (per batch tile)
    seq_s_ref, seq_d_ref, statics_ref,
    # stock LSTM params
    s_wih0, s_b0, s_whh0, s_w1cat, s_b1,
    # demand LSTM params
    d_wih0, d_b0, d_whh0, d_w1cat, d_b1,
    # MLP head (LSTM output Linears folded into w1sd/b1f; all widths padded to 128)
    w1sd_ref, w1c_ref, b1f_ref, w2_ref, b2_ref, w3_ref, b3_ref, w4_ref, b4_ref,
    out_ref,
    # scratch: per-encoder [h0|h1] (bf16) and [c0|c1] (f32), persistent across steps
    h_s, h_d, c_s, c_d,
):
    f32 = jnp.float32
    bf16 = jnp.bfloat16
    T = seq_s_ref.shape[0]
    TB = out_ref.shape[0]

    wih0_s = s_wih0[...]            # [1, 4H] f32
    wih0_d = d_wih0[...]
    bias0_s = s_b0[...]             # [1, 4H] f32 (b_ih0 + b_hh0)
    bias0_d = d_b0[...]
    bias1_s = s_b1[...]             # [1, 4H] f32 (b_ih1 + b_hh1)
    bias1_d = d_b1[...]

    def cell(gates, c):
        # PyTorch gate order i, f, g, o; elementwise math in f32 (v5e-safe).
        i = _sigmoid_1eup(gates[:, 0 * H:1 * H])
        f = _sigmoid_1eup(gates[:, 1 * H:2 * H])
        g = jnp.tanh(gates[:, 2 * H:3 * H])
        o = _sigmoid_1eup(gates[:, 3 * H:4 * H])
        c_new = f * c + i * g
        return o * jnp.tanh(c_new), c_new

    zc = jnp.zeros((TB, H), f32)

    # -------- t = 0 : h,c are zero -> skip hh matmuls and the h1 half of w1cat --
    x0s = seq_s_ref[0]                              # [TB, 1]
    x0d = seq_d_ref[0]
    h0s, c0s = cell(x0s * wih0_s + bias0_s, zc)     # rank-1 input projection (VALU)
    h0s_b = h0s.astype(bf16)
    h_s[:, :H] = h0s_b
    c_s[:, :H] = c0s
    h0d, c0d = cell(x0d * wih0_d + bias0_d, zc)
    h0d_b = h0d.astype(bf16)
    h_d[:, :H] = h0d_b
    c_d[:, :H] = c0d

    g1s = jnp.dot(h0s_b, s_w1cat[:H, :], preferred_element_type=f32) + bias1_s
    h1s, c1s = cell(g1s, zc)
    h_s[:, H:] = h1s.astype(bf16)
    c_s[:, H:] = c1s
    g1d = jnp.dot(h0d_b, d_w1cat[:H, :], preferred_element_type=f32) + bias1_d
    h1d, c1d = cell(g1d, zc)
    h_d[:, H:] = h1d.astype(bf16)
    c_d[:, H:] = c1d

    # -------- t = 1 .. T-1 : all recurrent state lives in VMEM scratch ----------
    @pl.loop(1, T)
    def _(t):
        xs = seq_s_ref[t]                           # [TB, 1]
        xd = seq_d_ref[t]

        # layer 0: rank-1 input projection + hh matmul on bf16 h from scratch
        g0s = xs * wih0_s + bias0_s + jnp.dot(
            h_s[:, :H], s_whh0[...], preferred_element_type=f32)
        h0s, c0s = cell(g0s, c_s[:, :H])
        h_s[:, :H] = h0s.astype(bf16)
        c_s[:, :H] = c0s

        g0d = xd * wih0_d + bias0_d + jnp.dot(
            h_d[:, :H], d_whh0[...], preferred_element_type=f32)
        h0d, c0d = cell(g0d, c_d[:, :H])
        h_d[:, :H] = h0d.astype(bf16)
        c_d[:, :H] = c0d

        # layer 1: fused [h0_t | h1_{t-1}] @ [w_ih1; w_hh1] straight from scratch
        g1s = jnp.dot(h_s[...], s_w1cat[...], preferred_element_type=f32) + bias1_s
        h1s, c1s = cell(g1s, c_s[:, H:])
        h_s[:, H:] = h1s.astype(bf16)
        c_s[:, H:] = c1s

        g1d = jnp.dot(h_d[...], d_w1cat[...], preferred_element_type=f32) + bias1_d
        h1d, c1d = cell(g1d, c_d[:, H:])
        h_d[:, H:] = h1d.astype(bf16)
        c_d[:, H:] = c1d

    # -------- MLP head: fused entry dot + 3 rank-1 static FMAs, 128-lane padded --
    h_cat = jnp.concatenate([h_s[:, H:], h_d[:, H:]], axis=1)    # [TB, 2H] bf16
    z = jnp.dot(h_cat, w1sd_ref[...], preferred_element_type=f32) + b1f_ref[...]
    statics = statics_ref[...]                                    # [TB, 3] f32
    w1c = w1c_ref[...]                                            # [3, PADW] f32
    for k in range(3):                                            # VALU rank-1 FMAs
        z = z + statics[:, k:k + 1] * w1c[k:k + 1, :]
    z = _leaky_relu(z)
    z = _leaky_relu(jnp.dot(z.astype(bf16), w2_ref[...],
                            preferred_element_type=f32) + b2_ref[...])
    z = _leaky_relu(jnp.dot(z.astype(bf16), w3_ref[...],
                            preferred_element_type=f32) + b3_ref[...])
    # 128-lane padded output -> unmasked lane-dense store; wrapper slices [:, :2].
    out_ref[...] = jnp.dot(z.astype(bf16), w4_ref[...],
                           preferred_element_type=f32) + b4_ref[...]


# ----------------------------- parameters ------------------------------------

def _uniform(key, shape, fan_in):
    k = 1.0 / jnp.sqrt(jnp.float32(fan_in))
    return jax.random.uniform(key, shape, jnp.float32, -k, k)


def _init_lstm_raw(key):
    """PyTorch nn.LSTM(1, H, num_layers=2) + Linear(H, EMB); weights stored [in, out]."""
    ks = jax.random.split(key, 10)
    return dict(
        w_ih0=_uniform(ks[0], (1, 4 * H), H),
        w_hh0=_uniform(ks[1], (H, 4 * H), H),
        b_ih0=_uniform(ks[2], (4 * H,), H),
        b_hh0=_uniform(ks[3], (4 * H,), H),
        w_ih1=_uniform(ks[4], (H, 4 * H), H),
        w_hh1=_uniform(ks[5], (H, 4 * H), H),
        b_ih1=_uniform(ks[6], (4 * H,), H),
        b_hh1=_uniform(ks[7], (4 * H,), H),
        w_out=_uniform(ks[8], (H, EMB), H),
        b_out=_uniform(ks[9], (EMB,), H),
    )


def _init_mlp_raw(key):
    ks = jax.random.split(key, 8)
    in0 = 2 * EMB + 3
    h1, h2, h3 = MLP_HIDDEN
    return dict(
        w1=_uniform(ks[0], (in0, h1), in0), b1=_uniform(ks[1], (h1,), in0),
        w2=_uniform(ks[2], (h1, h2), h1), b2=_uniform(ks[3], (h2,), h1),
        w3=_uniform(ks[4], (h2, h3), h2), b3=_uniform(ks[5], (h3,), h2),
        w4=_uniform(ks[6], (h3, N_ACTIONS), h3), b4=_uniform(ks[7], (N_ACTIONS,), h3),
    )


def init_policy_params(key):
    k_s, k_d, k_m = jax.random.split(key, 3)
    return dict(lstm_stock=_init_lstm_raw(k_s),
                lstm_demand=_init_lstm_raw(k_d),
                mlp=_init_mlp_raw(k_m))


def prepare_policy_params(raw):
    """Algebraic fusions, lane padding and dtype packing for the kernel."""
    f32, bf16 = jnp.float32, jnp.bfloat16
    s, d, m = raw["lstm_stock"], raw["lstm_demand"], raw["mlp"]

    def lstm_pack(p):
        return (
            p["w_ih0"].astype(f32),                                    # [1,4H]  VALU path
            (p["b_ih0"] + p["b_hh0"])[None, :].astype(f32),            # [1,4H]
            p["w_hh0"].astype(bf16),                                   # [H,4H]
            jnp.concatenate([p["w_ih1"], p["w_hh1"]], 0).astype(bf16), # [2H,4H]
            (p["b_ih1"] + p["b_hh1"])[None, :].astype(f32),            # [1,4H]
        )

    h1w, h2w, h3w = MLP_HIDDEN
    # Fold each LSTM's output Linear into the MLP first layer (exact: no nonlinearity
    # in between). MLP input order = (stock_emb, demand_emb, statics) per forward().
    w1 = m["w1"]
    w1a, w1b, w1c = w1[:EMB], w1[EMB:2 * EMB], w1[2 * EMB:]
    w1s = s["w_out"] @ w1a                                             # [H, 64]
    w1d = d["w_out"] @ w1b                                             # [H, 64]
    w1sd = (jnp.zeros((2 * H, PADW), f32)
            .at[:, :h1w].set(jnp.concatenate([w1s, w1d], 0))
            .astype(bf16))                                             # [2H, 128]
    w1c_p = jnp.zeros((3, PADW), f32).at[:, :h1w].set(w1c)             # [3, 128]
    b1f = (jnp.zeros((1, PADW), f32)
           .at[0, :h1w].set(m["b1"] + s["b_out"] @ w1a + d["b_out"] @ w1b))

    def pad_layer(w, b, rin, cout):
        wp = jnp.zeros((PADW, PADW), f32).at[:rin, :cout].set(w).astype(bf16)
        bp_ = jnp.zeros((1, PADW), f32).at[0, :cout].set(b)
        return wp, bp_

    w2p, b2p = pad_layer(m["w2"], m["b2"], h1w, h2w)
    w3p, b3p = pad_layer(m["w3"], m["b3"], h2w, h3w)
    w4p, b4p = pad_layer(m["w4"], m["b4"], h3w, N_ACTIONS)

    return lstm_pack(s) + lstm_pack(d) + (
        w1sd, w1c_p, b1f, w2p, b2p, w3p, b3p, w4p, b4p)


# ------------------------------- wrapper --------------------------------------

def _round_up(x, m):
    return ((x + m - 1) // m) * m


def _pick_tile(B):
    if B <= 16:
        return _round_up(max(B, 1), 8)
    if B <= 2 * BATCH_TILE:
        # ensure >= 2 grid tiles so the "parallel" batch axis uses both v7x TCs
        return _round_up((B + 1) // 2, 8)
    return BATCH_TILE


def policy_network(state, kparams):
    """state: [B, 1, F] with F = PAST_STOCK + 1 + PAST_DEMAND (n_materials=1)."""
    B = state.shape[0]
    s = state[:, 0, :].astype(jnp.float32)                     # squeeze materials axis
    seq_stock = s[:, :PAST_STOCK].T[:, :, None]                # [T, B, 1] time-major
    seq_demand = s[:, PAST_STOCK + 1:].T[:, :, None]           # [T, B, 1]
    # (static_stock, static_demand, static_date) — matches forward() order.
    statics = jnp.stack(
        [s[:, PAST_STOCK - 1], s[:, -1], s[:, PAST_STOCK]], axis=1)   # [B, 3]

    tb = _pick_tile(B)
    bp = _round_up(B, tb)
    if bp != B:
        seq_stock = jnp.pad(seq_stock, ((0, 0), (0, bp - B), (0, 0)))
        seq_demand = jnp.pad(seq_demand, ((0, 0), (0, bp - B), (0, 0)))
        statics = jnp.pad(statics, ((0, bp - B), (0, 0)))

    act_specs = [
        pl.BlockSpec((PAST_STOCK, tb, 1), lambda i: (0, i, 0)),
        pl.BlockSpec((PAST_DEMAND, tb, 1), lambda i: (0, i, 0)),
        pl.BlockSpec((tb, 3), lambda i: (i, 0)),
    ]
    # Weights: full-shape blocks, constant index map -> VMEM-resident across steps.
    w_specs = [pl.BlockSpec(p.shape, lambda i: (0, 0)) for p in kparams]

    out = pl.pallas_call(
        policy_kernel,
        grid=(bp // tb,),
        in_specs=act_specs + w_specs,
        out_specs=pl.BlockSpec((tb, PADW), lambda i: (i, 0)),
        out_shape=jax.ShapeDtypeStruct((bp, PADW), jnp.float32),
        scratch_shapes=[
            pltpu.VMEM((tb, 2 * H), jnp.bfloat16),   # stock  [h0 | h1]
            pltpu.VMEM((tb, 2 * H), jnp.bfloat16),   # demand [h0 | h1]
            pltpu.VMEM((tb, 2 * H), jnp.float32),    # stock  [c0 | c1]
            pltpu.VMEM((tb, 2 * H), jnp.float32),    # demand [c0 | c1]
        ],
        compiler_params=pltpu.CompilerParams(
            dimension_semantics=("parallel",)),      # megacore on v7x; no-op v5e/v6e
    )(seq_stock, seq_demand, statics, *kparams)
    return out[:B, :N_ACTIONS]


if __name__ == "__main__":
    key = jax.random.PRNGKey(0)
    k_params, k_state = jax.random.split(key)
    raw_params = init_policy_params(k_params)
    kparams = prepare_policy_params(raw_params)

    B = 2
    F = PAST_STOCK + 1 + PAST_DEMAND            # 11
    state = jax.random.normal(k_state, (B, 1, F), jnp.float32)

    out = jax.jit(policy_network)(state, kparams)
    out = jax.block_until_ready(out)
    assert out.shape == (B, N_ACTIONS) and out.dtype == jnp.float32
    print("KERNEL_OK")
</pallas_src>

<mosaic_0001>
module attributes {stable_mosaic.version = 11 : i64} {
  func.func @policy_kernel(%arg0: i32, %arg1: memref<5x8x1xf32, #tpu.memory_space<vmem>>, %arg2: memref<5x8x1xf32, #tpu.memory_space<vmem>>, %arg3: memref<8x3xf32, #tpu.memory_space<vmem>>, %arg4: memref<1x512xf32, #tpu.memory_space<vmem>>, %arg5: memref<1x512xf32, #tpu.memory_space<vmem>>, %arg6: memref<128x512xbf16, #tpu.memory_space<vmem>>, %arg7: memref<256x512xbf16, #tpu.memory_space<vmem>>, %arg8: memref<1x512xf32, #tpu.memory_space<vmem>>, %arg9: memref<1x512xf32, #tpu.memory_space<vmem>>, %arg10: memref<1x512xf32, #tpu.memory_space<vmem>>, %arg11: memref<128x512xbf16, #tpu.memory_space<vmem>>, %arg12: memref<256x512xbf16, #tpu.memory_space<vmem>>, %arg13: memref<1x512xf32, #tpu.memory_space<vmem>>, %arg14: memref<256x128xbf16, #tpu.memory_space<vmem>>, %arg15: memref<3x128xf32, #tpu.memory_space<vmem>>, %arg16: memref<1x128xf32, #tpu.memory_space<vmem>>, %arg17: memref<128x128xbf16, #tpu.memory_space<vmem>>, %arg18: memref<1x128xf32, #tpu.memory_space<vmem>>, %arg19: memref<128x128xbf16, #tpu.memory_space<vmem>>, %arg20: memref<1x128xf32, #tpu.memory_space<vmem>>, %arg21: memref<128x128xbf16, #tpu.memory_space<vmem>>, %arg22: memref<1x128xf32, #tpu.memory_space<vmem>>, %arg23: memref<8x128xf32, #tpu.memory_space<vmem>>, %arg24: memref<8x256xbf16, #tpu.memory_space<vmem>>, %arg25: memref<8x256xbf16, #tpu.memory_space<vmem>>, %arg26: memref<8x256xf32, #tpu.memory_space<vmem>>, %arg27: memref<8x256xf32, #tpu.memory_space<vmem>>) attributes {dimension_semantics = [#tpu.dimension_semantics<parallel>], iteration_bounds = array<i64: 1>, scalar_prefetch = 0 : i64, scratch_operands = 4 : i64, tpu.core_type = #tpu.core_type<tc>, window_params = [{transform_indices = @transform_0, window_bounds = array<i64: 5, 8, 1>}, {transform_indices = @transform_1, window_bounds = array<i64: 5, 8, 1>}, {transform_indices = @transform_2, window_bounds = array<i64: 8, 3>}, {pipeline_mode = #tpu.pipeline_mode<synchronous>, transform_indices = @transform_3, window_bounds = array<i64: 1, 512>}, {pipeline_mode = #tpu.pipeline_mode<synchronous>, transform_indices = @transform_4, window_bounds = array<i64: 1, 512>}, {pipeline_mode = #tpu.pipeline_mode<synchronous>, transform_indices = @transform_5, window_bounds = array<i64: 128, 512>}, {pipeline_mode = #tpu.pipeline_mode<synchronous>, transform_indices = @transform_6, window_bounds = array<i64: 256, 512>}, {pipeline_mode = #tpu.pipeline_mode<synchronous>, transform_indices = @transform_7, window_bounds = array<i64: 1, 512>}, {pipeline_mode = #tpu.pipeline_mode<synchronous>, transform_indices = @transform_8, window_bounds = array<i64: 1, 512>}, {pipeline_mode = #tpu.pipeline_mode<synchronous>, transform_indices = @transform_9, window_bounds = array<i64: 1, 512>}, {pipeline_mode = #tpu.pipeline_mode<synchronous>, transform_indices = @transform_10, window_bounds = array<i64: 128, 512>}, {pipeline_mode = #tpu.pipeline_mode<synchronous>, transform_indices = @transform_11, window_bounds = array<i64: 256, 512>}, {pipeline_mode = #tpu.pipeline_mode<synchronous>, transform_indices = @transform_12, window_bounds = array<i64: 1, 512>}, {pipeline_mode = #tpu.pipeline_mode<synchronous>, transform_indices = @transform_13, window_bounds = array<i64: 256, 128>}, {pipeline_mode = #tpu.pipeline_mode<synchronous>, transform_indices = @transform_14, window_bounds = array<i64: 3, 128>}, {pipeline_mode = #tpu.pipeline_mode<synchronous>, transform_indices = @transform_15, window_bounds = array<i64: 1, 128>}, {pipeline_mode = #tpu.pipeline_mode<synchronous>, transform_indices = @transform_16, window_bounds = array<i64: 128, 128>}, {pipeline_mode = #tpu.pipeline_mode<synchronous>, transform_indices = @transform_17, window_bounds = array<i64: 1, 128>}, {pipeline_mode = #tpu.pipeline_mode<synchronous>, transform_indices = @transform_18, window_bounds = array<i64: 128, 128>}, {pipeline_mode = #tpu.pipeline_mode<synchronous>, transform_indices = @transform_19, window_bounds = array<i64: 1, 128>}, {pipeline_mode = #tpu.pipeline_mode<synchronous>, transform_indices = @transform_20, window_bounds = array<i64: 128, 128>}, {pipeline_mode = #tpu.pipeline_mode<synchronous>, transform_indices = @transform_21, window_bounds = array<i64: 1, 128>}, {transform_indices = @transform_22, window_bounds = array<i64: 8, 128>}]} {
    %c0 = arith.constant 0 : index
    %c0_0 = arith.constant 0 : index
    %0 = vector.load %arg4[%c0, %c0_0] : memref<1x512xf32, #tpu.memory_space<vmem>>, vector<1x512xf32>
    %c0_1 = arith.constant 0 : index
    %c0_2 = arith.constant 0 : index
    %1 = vector.load %arg9[%c0_1, %c0_2] : memref<1x512xf32, #tpu.memory_space<vmem>>, vector<1x512xf32>
    %c0_3 = arith.constant 0 : index
    %c0_4 = arith.constant 0 : index
    %2 = vector.load %arg5[%c0_3, %c0_4] : memref<1x512xf32, #tpu.memory_space<vmem>>, vector<1x512xf32>
    %c0_5 = arith.constant 0 : index
    %c0_6 = arith.constant 0 : index
    %3 = vector.load %arg10[%c0_5, %c0_6] : memref<1x512xf32, #tpu.memory_space<vmem>>, vector<1x512xf32>
    %c0_7 = arith.constant 0 : index
    %c0_8 = arith.constant 0 : index
    %4 = vector.load %arg8[%c0_7, %c0_8] : memref<1x512xf32, #tpu.memory_space<vmem>>, vector<1x512xf32>
    %c0_9 = arith.constant 0 : index
    %c0_10 = arith.constant 0 : index
    %5 = vector.load %arg13[%c0_9, %c0_10] : memref<1x512xf32, #tpu.memory_space<vmem>>, vector<1x512xf32>
    %cst = arith.constant 0.000000e+00 : f32
    %6 = vector.broadcast %cst : f32 to vector<8x128xf32>
    %c0_11 = arith.constant 0 : index
    %c0_12 = arith.constant 0 : index
    %c0_13 = arith.constant 0 : index
    %7 = vector.load %arg1[%c0_11, %c0_12, %c0_13] : memref<5x8x1xf32, #tpu.memory_space<vmem>>, vector<1x8x1xf32>
    %8 = vector.shape_cast %7 : vector<1x8x1xf32> to vector<8x1xf32>
    %c0_14 = arith.constant 0 : index
    %c0_15 = arith.constant 0 : index
    %c0_16 = arith.constant 0 : index
    %9 = vector.load %arg2[%c0_14, %c0_15, %c0_16] : memref<5x8x1xf32, #tpu.memory_space<vmem>>, vector<1x8x1xf32>
    %10 = vector.shape_cast %9 : vector<1x8x1xf32> to vector<8x1xf32>
    %11 = vector.broadcast %8 : vector<8x1xf32> to vector<8x512xf32>
    %12 = vector.broadcast %0 : vector<1x512xf32> to vector<8x512xf32>
    %13 = arith.mulf %11, %12 : vector<8x512xf32>
    %14 = vector.broadcast %2 : vector<1x512xf32> to vector<8x512xf32>
    %15 = arith.addf %13, %14 : vector<8x512xf32>
    %16 = vector.extract_strided_slice %15 {offsets = [0, 0], sizes = [8, 128], strides = [1, 1]} : vector<8x512xf32> to vector<8x128xf32>
    %cst_17 = arith.constant 5.000000e-01 : f32
    %17 = vector.broadcast %cst_17 : f32 to vector<8x128xf32>
    %18 = arith.mulf %17, %16 : vector<8x128xf32>
    %19 = math.tanh %18 : vector<8x128xf32>
    %cst_18 = arith.constant 5.000000e-01 : f32
    %20 = vector.broadcast %cst_18 : f32 to vector<8x128xf32>
    %21 = arith.mulf %20, %19 : vector<8x128xf32>
    %cst_19 = arith.constant 5.000000e-01 : f32
    %22 = vector.broadcast %cst_19 : f32 to vector<8x128xf32>
    %23 = arith.addf %21, %22 : vector<8x128xf32>
    %24 = vector.extract_strided_slice %15 {offsets = [0, 128], sizes = [8, 128], strides = [1, 1]} : vector<8x512xf32> to vector<8x128xf32>
    %cst_20 = arith.constant 5.000000e-01 : f32
    %25 = vector.broadcast %cst_20 : f32 to vector<8x128xf32>
    %26 = arith.mulf %25, %24 : vector<8x128xf32>
    %27 = math.tanh %26 : vector<8x128xf32>
    %cst_21 = arith.constant 5.000000e-01 : f32
    %28 = vector.broadcast %cst_21 : f32 to vector<8x128xf32>
    %29 = arith.mulf %28, %27 : vector<8x128xf32>
    %cst_22 = arith.constant 5.000000e-01 : f32
    %30 = vector.broadcast %cst_22 : f32 to vector<8x128xf32>
    %31 = arith.addf %29, %30 : vector<8x128xf32>
    %32 = vector.extract_strided_slice %15 {offsets = [0, 256], sizes = [8, 128], strides = [1, 1]} : vector<8x512xf32> to vector<8x128xf32>
    %33 = math.tanh %32 : vector<8x128xf32>
    %34 = vector.extract_strided_slice %15 {offsets = [0, 384], sizes = [8, 128], strides = [1, 1]} : vector<8x512xf32> to vector<8x128xf32>
    %cst_23 = arith.constant 5.000000e-01 : f32
    %35 = vector.broadcast %cst_23 : f32 to vector<8x128xf32>
    %36 = arith.mulf %35, %34 : vector<8x128xf32>
    %37 = math.tanh %36 : vector<8x128xf32>
    %cst_24 = arith.constant 5.000000e-01 : f32
    %38 = vector.broadcast %cst_24 : f32 to vector<8x128xf32>
    %39 = arith.mulf %38, %37 : vector<8x128xf32>
    %cst_25 = arith.constant 5.000000e-01 : f32
    %40 = vector.broadcast %cst_25 : f32 to vector<8x128xf32>
    %41 = arith.addf %39, %40 : vector<8x128xf32>
    %42 = arith.mulf %31, %6 : vector<8x128xf32>
    %43 = arith.mulf %23, %33 : vector<8x128xf32>
    %44 = arith.addf %42, %43 : vector<8x128xf32>
    %45 = math.tanh %44 : vector<8x128xf32>
    %46 = arith.mulf %41, %45 : vector<8x128xf32>
    %47 = arith.truncf %46 : vector<8x128xf32> to vector<8x128xbf16>
    %c0_26 = arith.constant 0 : index
    %c0_27 = arith.constant 0 : index
    %48 = vector.load %arg24[%c0_26, %c0_27] : memref<8x256xbf16, #tpu.memory_space<vmem>>, vector<8x128xbf16>
    tpu.vector_store %arg24[%c0_26, %c0_27], %47 {strides = array<i32>} : memref<8x256xbf16, #tpu.memory_space<vmem>>, vector<8x128xbf16>,
    %c0_28 = arith.constant 0 : index
    %c0_29 = arith.constant 0 : index
    %49 = vector.load %arg26[%c0_28, %c0_29] : memref<8x256xf32, #tpu.memory_space<vmem>>, vector<8x128xf32>
    tpu.vector_store %arg26[%c0_28, %c0_29], %44 {strides = array<i32>} : memref<8x256xf32, #tpu.memory_space<vmem>>, vector<8x128xf32>,
    %50 = vector.broadcast %10 : vector<8x1xf32> to vector<8x512xf32>
    %51 = vector.broadcast %1 : vector<1x512xf32> to vector<8x512xf32>
    %52 = arith.mulf %50, %51 : vector<8x512xf32>
    %53 = vector.broadcast %3 : vector<1x512xf32> to vector<8x512xf32>
    %54 = arith.addf %52, %53 : vector<8x512xf32>
    %55 = vector.extract_strided_slice %54 {offsets = [0, 0], sizes = [8, 128], strides = [1, 1]} : vector<8x512xf32> to vector<8x128xf32>
    %cst_30 = arith.constant 5.000000e-01 : f32
    %56 = vector.broadcast %cst_30 : f32 to vector<8x128xf32>
    %57 = arith.mulf %56, %55 : vector<8x128xf32>
    %58 = math.tanh %57 : vector<8x128xf32>
    %cst_31 = arith.constant 5.000000e-01 : f32
    %59 = vector.broadcast %cst_31 : f32 to vector<8x128xf32>
    %60 = arith.mulf %59, %58 : vector<8x128xf32>
    %cst_32 = arith.constant 5.000000e-01 : f32
    %61 = vector.broadcast %cst_32 : f32 to vector<8x128xf32>
    %62 = arith.addf %60, %61 : vector<8x128xf32>
    %63 = vector.extract_strided_slice %54 {offsets = [0, 128], sizes = [8, 128], strides = [1, 1]} : vector<8x512xf32> to vector<8x128xf32>
    %cst_33 = arith.constant 5.000000e-01 : f32
    %64 = vector.broadcast %cst_33 : f32 to vector<8x128xf32>
    %65 = arith.mulf %64, %63 : vector<8x128xf32>
    %66 = math.tanh %65 : vector<8x128xf32>
    %cst_34 = arith.constant 5.000000e-01 : f32
    %67 = vector.broadcast %cst_34 : f32 to vector<8x128xf32>
    %68 = arith.mulf %67, %66 : vector<8x128xf32>
    %cst_35 = arith.constant 5.000000e-01 : f32
    %69 = vector.broadcast %cst_35 : f32 to vector<8x128xf32>
    %70 = arith.addf %68, %69 : vector<8x128xf32>
    %71 = vector.extract_strided_slice %54 {offsets = [0, 256], sizes = [8, 128], strides = [1, 1]} : vector<8x512xf32> to vector<8x128xf32>
    %72 = math.tanh %71 : vector<8x128xf32>
    %73 = vector.extract_strided_slice %54 {offsets = [0, 384], sizes = [8, 128], strides = [1, 1]} : vector<8x512xf32> to vector<8x128xf32>
    %cst_36 = arith.constant 5.000000e-01 : f32
    %74 = vector.broadcast %cst_36 : f32 to vector<8x128xf32>
    %75 = arith.mulf %74, %73 : vector<8x128xf32>
    %76 = math.tanh %75 : vector<8x128xf32>
    %cst_37 = arith.constant 5.000000e-01 : f32
    %77 = vector.broadcast %cst_37 : f32 to vector<8x128xf32>
    %78 = arith.mulf %77, %76 : vector<8x128xf32>
    %cst_38 = arith.constant 5.000000e-01 : f32
    %79 = vector.broadcast %cst_38 : f32 to vector<8x128xf32>
    %80 = arith.addf %78, %79 : vector<8x128xf32>
    %81 = arith.mulf %70, %6 : vector<8x128xf32>
    %82 = arith.mulf %62, %72 : vector<8x128xf32>
    %83 = arith.addf %81, %82 : vector<8x128xf32>
    %84 = math.tanh %83 : vector<8x128xf32>
    %85 = arith.mulf %80, %84 : vector<8x128xf32>
    %86 = arith.truncf %85 : vector<8x128xf32> to vector<8x128xbf16>
    %c0_39 = arith.constant 0 : index
    %c0_40 = arith.constant 0 : index
    %87 = vector.load %arg25[%c0_39, %c0_40] : memref<8x256xbf16, #tpu.memory_space<vmem>>, vector<8x128xbf16>
    tpu.vector_store %arg25[%c0_39, %c0_40], %86 {strides = array<i32>} : memref<8x256xbf16, #tpu.memory_space<vmem>>, vector<8x128xbf16>,
    %c0_41 = arith.constant 0 : index
    %c0_42 = arith.constant 0 : index
    %88 = vector.load %arg27[%c0_41, %c0_42] : memref<8x256xf32, #tpu.memory_space<vmem>>, vector<8x128xf32>
    tpu.vector_store %arg27[%c0_41, %c0_42], %83 {strides = array<i32>} : memref<8x256xf32, #tpu.memory_space<vmem>>, vector<8x128xf32>,
    %c0_43 = arith.constant 0 : index
    %c0_44 = arith.constant 0 : index
    %89 = vector.load %arg7[%c0_43, %c0_44] : memref<256x512xbf16, #tpu.memory_space<vmem>>, vector<128x512xbf16>
    %cst_45 = arith.constant dense<0.000000e+00> : vector<8x512xf32>
    %90 = tpu.matmul %47, %89, %cst_45 {dimension_numbers = #tpu.dot_dimension_numbers<[1], [0], [0], [1], [0, 0, 1, 1], [], []>} : vector<8x128xbf16>, vector<128x512xbf16>, vector<8x512xf32> -> vector<8x512xf32>
    %91 = vector.broadcast %4 : vector<1x512xf32> to vector<8x512xf32>
    %92 = arith.addf %90, %91 : vector<8x512xf32>
    %93 = vector.extract_strided_slice %92 {offsets = [0, 0], sizes = [8, 128], strides = [1, 1]} : vector<8x512xf32> to vector<8x128xf32>
    %cst_46 = arith.constant 5.000000e-01 : f32
    %94 = vector.broadcast %cst_46 : f32 to vector<8x128xf32>
    %95 = arith.mulf %94, %93 : vector<8x128xf32>
    %96 = math.tanh %95 : vector<8x128xf32>
    %cst_47 = arith.constant 5.000000e-01 : f32
    %97 = vector.broadcast %cst_47 : f32 to vector<8x128xf32>
    %98 = arith.mulf %97, %96 : vector<8x128xf32>
    %cst_48 = arith.constant 5.000000e-01 : f32
    %99 = vector.broadcast %cst_48 : f32 to vector<8x128xf32>
    %100 = arith.addf %98, %99 : vector<8x128xf32>
    %101 = vector.extract_strided_slice %92 {offsets = [0, 128], sizes = [8, 128], strides = [1, 1]} : vector<8x512xf32> to vector<8x128xf32>
    %cst_49 = arith.constant 5.000000e-01 : f32
    %102 = vector.broadcast %cst_49 : f32 to vector<8x128xf32>
    %103 = arith.mulf %102, %101 : vector<8x128xf32>
    %104 = math.tanh %103 : vector<8x128xf32>
    %cst_50 = arith.constant 5.000000e-01 : f32
    %105 = vector.broadcast %cst_50 : f32 to vector<8x128xf32>
    %106 = arith.mulf %105, %104 : vector<8x128xf32>
    %cst_51 = arith.constant 5.000000e-01 : f32
    %107 = vector.broadcast %cst_51 : f32 to vector<8x128xf32>
    %108 = arith.addf %106, %107 : vector<8x128xf32>
    %109 = vector.extract_strided_slice %92 {offsets = [0, 256], sizes = [8, 128], strides = [1, 1]} : vector<8x512xf32> to vector<8x128xf32>
    %110 = math.tanh %109 : vector<8x128xf32>
    %111 = vector.extract_strided_slice %92 {offsets = [0, 384], sizes = [8, 128], strides = [1, 1]} : vector<8x512xf32> to vector<8x128xf32>
    %cst_52 = arith.constant 5.000000e-01 : f32
    %112 = vector.broadcast %cst_52 : f32 to vector<8x128xf32>
    %113 = arith.mulf %112, %111 : vector<8x128xf32>
    %114 = math.tanh %113 : vector<8x128xf32>
    %cst_53 = arith.constant 5.000000e-01 : f32
    %115 = vector.broadcast %cst_53 : f32 to vector<8x128xf32>
    %116 = arith.mulf %115, %114 : vector<8x128xf32>
    %cst_54 = arith.constant 5.000000e-01 : f32
    %117 = vector.broadcast %cst_54 : f32 to vector<8x128xf32>
    %118 = arith.addf %116, %117 : vector<8x128xf32>
    %119 = arith.mulf %108, %6 : vector<8x128xf32>
    %120 = arith.mulf %100, %110 : vector<8x128xf32>
    %121 = arith.addf %119, %120 : vector<8x128xf32>
    %122 = math.tanh %121 : vector<8x128xf32>
    %123 = arith.mulf %118, %122 : vector<8x128xf32>
    %124 = arith.truncf %123 : vector<8x128xf32> to vector<8x128xbf16>
    %c0_55 = arith.constant 0 : index
    %c128 = arith.constant 128 : index
    %125 = vector.load %arg24[%c0_55, %c128] : memref<8x256xbf16, #tpu.memory_space<vmem>>, vector<8x128xbf16>
    tpu.vector_store %arg24[%c0_55, %c128], %124 {strides = array<i32>} : memref<8x256xbf16, #tpu.memory_space<vmem>>, vector<8x128xbf16>,
    %c0_56 = arith.constant 0 : index
    %c128_57 = arith.constant 128 : index
    %126 = vector.load %arg26[%c0_56, %c128_57] : memref<8x256xf32, #tpu.memory_space<vmem>>, vector<8x128xf32>
    tpu.vector_store %arg26[%c0_56, %c128_57], %121 {strides = array<i32>} : memref<8x256xf32, #tpu.memory_space<vmem>>, vector<8x128xf32>,
    %c0_58 = arith.constant 0 : index
    %c0_59 = arith.constant 0 : index
    %127 = vector.load %arg12[%c0_58, %c0_59] : memref<256x512xbf16, #tpu.memory_space<vmem>>, vector<128x512xbf16>
    %cst_60 = arith.constant dense<0.000000e+00> : vector<8x512xf32>
    %128 = tpu.matmul %86, %127, %cst_60 {dimension_numbers = #tpu.dot_dimension_numbers<[1], [0], [0], [1], [0, 0, 1, 1], [], []>} : vector<8x128xbf16>, vector<128x512xbf16>, vector<8x512xf32> -> vector<8x512xf32>
    %129 = vector.broadcast %5 : vector<1x512xf32> to vector<8x512xf32>
    %130 = arith.addf %128, %129 : vector<8x512xf32>
    %131 = vector.extract_strided_slice %130 {offsets = [0, 0], sizes = [8, 128], strides = [1, 1]} : vector<8x512xf32> to vector<8x128xf32>
    %cst_61 = arith.constant 5.000000e-01 : f32
    %132 = vector.broadcast %cst_61 : f32 to vector<8x128xf32>
    %133 = arith.mulf %132, %131 : vector<8x128xf32>
    %134 = math.tanh %133 : vector<8x128xf32>
    %cst_62 = arith.constant 5.000000e-01 : f32
    %135 = vector.broadcast %cst_62 : f32 to vector<8x128xf32>
    %136 = arith.mulf %135, %134 : vector<8x128xf32>
    %cst_63 = arith.constant 5.000000e-01 : f32
    %137 = vector.broadcast %cst_63 : f32 to vector<8x128xf32>
    %138 = arith.addf %136, %137 : vector<8x128xf32>
    %139 = vector.extract_strided_slice %130 {offsets = [0, 128], sizes = [8, 128], strides = [1, 1]} : vector<8x512xf32> to vector<8x128xf32>
    %cst_64 = arith.constant 5.000000e-01 : f32
    %140 = vector.broadcast %cst_64 : f32 to vector<8x128xf32>
    %141 = arith.mulf %140, %139 : vector<8x128xf32>
    %142 = math.tanh %141 : vector<8x128xf32>
    %cst_65 = arith.constant 5.000000e-01 : f32
    %143 = vector.broadcast %cst_65 : f32 to vector<8x128xf32>
    %144 = arith.mulf %143, %142 : vector<8x128xf32>
    %cst_66 = arith.constant 5.000000e-01 : f32
    %145 = vector.broadcast %cst_66 : f32 to vector<8x128xf32>
    %146 = arith.addf %144, %145 : vector<8x128xf32>
    %147 = vector.extract_strided_slice %130 {offsets = [0, 256], sizes = [8, 128], strides = [1, 1]} : vector<8x512xf32> to vector<8x128xf32>
    %148 = math.tanh %147 : vector<8x128xf32>
    %149 = vector.extract_strided_slice %130 {offsets = [0, 384], sizes = [8, 128], strides = [1, 1]} : vector<8x512xf32> to vector<8x128xf32>
    %cst_67 = arith.constant 5.000000e-01 : f32
    %150 = vector.broadcast %cst_67 : f32 to vector<8x128xf32>
    %151 = arith.mulf %150, %149 : vector<8x128xf32>
    %152 = math.tanh %151 : vector<8x128xf32>
    %cst_68 = arith.constant 5.000000e-01 : f32
    %153 = vector.broadcast %cst_68 : f32 to vector<8x128xf32>
    %154 = arith.mulf %153, %152 : vector<8x128xf32>
    %cst_69 = arith.constant 5.000000e-01 : f32
    %155 = vector.broadcast %cst_69 : f32 to vector<8x128xf32>
    %156 = arith.addf %154, %155 : vector<8x128xf32>
    %157 = arith.mulf %146, %6 : vector<8x128xf32>
    %158 = arith.mulf %138, %148 : vector<8x128xf32>
    %159 = arith.addf %157, %158 : vector<8x128xf32>
    %160 = math.tanh %159 : vector<8x128xf32>
    %161 = arith.mulf %156, %160 : vector<8x128xf32>
    %162 = arith.truncf %161 : vector<8x128xf32> to vector<8x128xbf16>
    %c0_70 = arith.constant 0 : index
    %c128_71 = arith.constant 128 : index
    %163 = vector.load %arg25[%c0_70, %c128_71] : memref<8x256xbf16, #tpu.memory_space<vmem>>, vector<8x128xbf16>
    tpu.vector_store %arg25[%c0_70, %c128_71], %162 {strides = array<i32>} : memref<8x256xbf16, #tpu.memory_space<vmem>>, vector<8x128xbf16>,
    %c0_72 = arith.constant 0 : index
    %c128_73 = arith.constant 128 : index
    %164 = vector.load %arg27[%c0_72, %c128_73] : memref<8x256xf32, #tpu.memory_space<vmem>>, vector<8x128xf32>
    tpu.vector_store %arg27[%c0_72, %c128_73], %159 {strides = array<i32>} : memref<8x256xf32, #tpu.memory_space<vmem>>, vector<8x128xf32>,
    %c0_i32 = arith.constant 0 : i32
    %c4_i32 = arith.constant 4 : i32
    %165 = arith.addi %c0_i32, %c4_i32 : i32
    %c1_i32 = arith.constant 1 : i32
    scf.for %arg28 = %c0_i32 to %165 step %c1_i32  : i32 {
      %c1_i32_111 = arith.constant 1 : i32
      %228 = arith.muli %arg28, %c1_i32_111 : i32
      %c1_i32_112 = arith.constant 1 : i32
      %229 = arith.addi %c1_i32_112, %228 : i32
      %230 = arith.index_cast %229 : i32 to index
      %c0_113 = arith.constant 0 : index
      %c0_114 = arith.constant 0 : index
      %231 = vector.load %arg1[%230, %c0_113, %c0_114] : memref<5x8x1xf32, #tpu.memory_space<vmem>>, vector<1x8x1xf32>
      %232 = vector.shape_cast %231 : vector<1x8x1xf32> to vector<8x1xf32>
      %233 = arith.index_cast %229 : i32 to index
      %c0_115 = arith.constant 0 : index
      %c0_116 = arith.constant 0 : index
      %234 = vector.load %arg2[%233, %c0_115, %c0_116] : memref<5x8x1xf32, #tpu.memory_space<vmem>>, vector<1x8x1xf32>
      %235 = vector.shape_cast %234 : vector<1x8x1xf32> to vector<8x1xf32>
      %236 = vector.broadcast %232 : vector<8x1xf32> to vector<8x512xf32>
      %237 = vector.broadcast %0 : vector<1x512xf32> to vector<8x512xf32>
      %238 = arith.mulf %236, %237 : vector<8x512xf32>
      %239 = vector.broadcast %2 : vector<1x512xf32> to vector<8x512xf32>
      %240 = arith.addf %238, %239 : vector<8x512xf32>
      %c0_117 = arith.constant 0 : index
      %c0_118 = arith.constant 0 : index
      %241 = vector.load %arg24[%c0_117, %c0_118] : memref<8x256xbf16, #tpu.memory_space<vmem>>, vector<8x128xbf16>
      %c0_119 = arith.constant 0 : index
      %c0_120 = arith.constant 0 : index
      %242 = vector.load %arg6[%c0_119, %c0_120] : memref<128x512xbf16, #tpu.memory_space<vmem>>, vector<128x512xbf16>
      %cst_121 = arith.constant dense<0.000000e+00> : vector<8x512xf32>
      %243 = tpu.matmul %241, %242, %cst_121 {dimension_numbers = #tpu.dot_dimension_numbers<[1], [0], [0], [1], [0, 0, 1, 1], [], []>} : vector<8x128xbf16>, vector<128x512xbf16>, vector<8x512xf32> -> vector<8x512xf32>
      %244 = arith.addf %240, %243 : vector<8x512xf32>
      %c0_122 = arith.constant 0 : index
      %c0_123 = arith.constant 0 : index
      %245 = vector.load %arg26[%c0_122, %c0_123] : memref<8x256xf32, #tpu.memory_space<vmem>>, vector<8x128xf32>
      %246 = vector.extract_strided_slice %244 {offsets = [0, 0], sizes = [8, 128], strides = [1, 1]} : vector<8x512xf32> to vector<8x128xf32>
      %cst_124 = arith.constant 5.000000e-01 : f32
      %247 = vector.broadcast %cst_124 : f32 to vector<8x128xf32>
      %248 = arith.mulf %247, %246 : vector<8x128xf32>
      %249 = math.tanh %248 : vector<8x128xf32>
      %cst_125 = arith.constant 5.000000e-01 : f32
      %250 = vector.broadcast %cst_125 : f32 to vector<8x128xf32>
      %251 = arith.mulf %250, %249 : vector<8x128xf32>
      %cst_126 = arith.constant 5.000000e-01 : f32
      %252 = vector.broadcast %cst_126 : f32 to vector<8x128xf32>
      %253 = arith.addf %251, %252 : vector<8x128xf32>
      %254 = vector.extract_strided_slice %244 {offsets = [0, 128], sizes = [8, 128], strides = [1, 1]} : vector<8x512xf32> to vector<8x128xf32>
      %cst_127 = arith.constant 5.000000e-01 : f32
      %255 = vector.broadcast %cst_127 : f32 to vector<8x128xf32>
      %256 = arith.mulf %255, %254 : vector<8x128xf32>
      %257 = math.tanh %256 : vector<8x128xf32>
      %cst_128 = arith.constant 5.000000e-01 : f32
      %258 = vector.broadcast %cst_128 : f32 to vector<8x128xf32>
      %259 = arith.mulf %258, %257 : vector<8x128xf32>
      %cst_129 = arith.constant 5.000000e-01 : f32
      %260 = vector.broadcast %cst_129 : f32 to vector<8x128xf32>
      %261 = arith.addf %259, %260 : vector<8x128xf32>
      %262 = vector.extract_strided_slice %244 {offsets = [0, 256], sizes = [8, 128], strides = [1, 1]} : vector<8x512xf32> to vector<8x128xf32>
      %263 = math.tanh %262 : vector<8x128xf32>
      %264 = vector.extract_strided_slice %244 {offsets = [0, 384], sizes = [8, 128], strides = [1, 1]} : vector<8x512xf32> to vector<8x128xf32>
      %cst_130 = arith.constant 5.000000e-01 : f32
      %265 = vector.broadcast %cst_130 : f32 to vector<8x128xf32>
      %266 = arith.mulf %265, %264 : vector<8x128xf32>
      %267 = math.tanh %266 : vector<8x128xf32>
      %cst_131 = arith.constant 5.000000e-01 : f32
      %268 = vector.broadcast %cst_131 : f32 to vector<8x128xf32>
      %269 = arith.mulf %268, %267 : vector<8x128xf32>
      %cst_132 = arith.constant 5.000000e-01 : f32
      %270 = vector.broadcast %cst_132 : f32 to vector<8x128xf32>
      %271 = arith.addf %269, %270 : vector<8x128xf32>
      %272 = arith.mulf %261, %245 : vector<8x128xf32>
      %273 = arith.mulf %253, %263 : vector<8x128xf32>
      %274 = arith.addf %272, %273 : vector<8x128xf32>
      %275 = math.tanh %274 : vector<8x128xf32>
      %276 = arith.mulf %271, %275 : vector<8x128xf32>
      %277 = arith.truncf %276 : vector<8x128xf32> to vector<8x128xbf16>
      %c0_133 = arith.constant 0 : index
      %c0_134 = arith.constant 0 : index
      %278 = vector.load %arg24[%c0_133, %c0_134] : memref<8x256xbf16, #tpu.memory_space<vmem>>, vector<8x128xbf16>
      tpu.vector_store %arg24[%c0_133, %c0_134], %277 {strides = array<i32>} : memref<8x256xbf16, #tpu.memory_space<vmem>>, vector<8x128xbf16>,
      %c0_135 = arith.constant 0 : index
      %c0_136 = arith.constant 0 : index
      %279 = vector.load %arg26[%c0_135, %c0_136] : memref<8x256xf32, #tpu.memory_space<vmem>>, vector<8x128xf32>
      tpu.vector_store %arg26[%c0_135, %c0_136], %274 {strides = array<i32>} : memref<8x256xf32, #tpu.memory_space<vmem>>, vector<8x128xf32>,
      %280 = vector.broadcast %235 : vector<8x1xf32> to vector<8x512xf32>
      %281 = vector.broadcast %1 : vector<1x512xf32> to vector<8x512xf32>
      %282 = arith.mulf %280, %281 : vector<8x512xf32>
      %283 = vector.broadcast %3 : vector<1x512xf32> to vector<8x512xf32>
      %284 = arith.addf %282, %283 : vector<8x512xf32>
      %c0_137 = arith.constant 0 : index
      %c0_138 = arith.constant 0 : index
      %285 = vector.load %arg25[%c0_137, %c0_138] : memref<8x256xbf16, #tpu.memory_space<vmem>>, vector<8x128xbf16>
      %c0_139 = arith.constant 0 : index
      %c0_140 = arith.constant 0 : index
      %286 = vector.load %arg11[%c0_139, %c0_140] : memref<128x512xbf16, #tpu.memory_space<vmem>>, vector<128x512xbf16>
      %cst_141 = arith.constant dense<0.000000e+00> : vector<8x512xf32>
      %287 = tpu.matmul %285, %286, %cst_141 {dimension_numbers = #tpu.dot_dimension_numbers<[1], [0], [0], [1], [0, 0, 1, 1], [], []>} : vector<8x128xbf16>, vector<128x512xbf16>, vector<8x512xf32> -> vector<8x512xf32>
      %288 = arith.addf %284, %287 : vector<8x512xf32>
      %c0_142 = arith.constant 0 : index
      %c0_143 = arith.constant 0 : index
      %289 = vector.load %arg27[%c0_142, %c0_143] : memref<8x256xf32, #tpu.memory_space<vmem>>, vector<8x128xf32>
      %290 = vector.extract_strided_slice %288 {offsets = [0, 0], sizes = [8, 128], strides = [1, 1]} : vector<8x512xf32> to vector<8x128xf32>
      %cst_144 = arith.constant 5.000000e-01 : f32
      %291 = vector.broadcast %cst_144 : f32 to vector<8x128xf32>
      %292 = arith.mulf %291, %290 : vector<8x128xf32>
      %293 = math.tanh %292 : vector<8x128xf32>
      %cst_145 = arith.constant 5.000000e-01 : f32
      %294 = vector.broadcast %cst_145 : f32 to vector<8x128xf32>
      %295 = arith.mulf %294, %293 : vector<8x128xf32>
      %cst_146 = arith.constant 5.000000e-01 : f32
      %296 = vector.broadcast %cst_146 : f32 to vector<8x128xf32>
      %297 = arith.addf %295, %296 : vector<8x128xf32>
      %298 = vector.extract_strided_slice %288 {offsets = [0, 128], sizes = [8, 128], strides = [1, 1]} : vector<8x512xf32> to vector<8x128xf32>
      %cst_147 = arith.constant 5.000000e-01 : f32
      %299 = vector.broadcast %cst_147 : f32 to vector<8x128xf32>
      %300 = arith.mulf %299, %298 : vector<8x128xf32>
      %301 = math.tanh %300 : vector<8x128xf32>
      %cst_148 = arith.constant 5.000000e-01 : f32
      %302 = vector.broadcast %cst_148 : f32 to vector<8x128xf32>
      %303 = arith.mulf %302, %301 : vector<8x128xf32>
      %cst_149 = arith.constant 5.000000e-01 : f32
      %304 = vector.broadcast %cst_149 : f32 to vector<8x128xf32>
      %305 = arith.addf %303, %304 : vector<8x128xf32>
      %306 = vector.extract_strided_slice %288 {offsets = [0, 256], sizes = [8, 128], strides = [1, 1]} : vector<8x512xf32> to vector<8x128xf32>
      %307 = math.tanh %306 : vector<8x128xf32>
      %308 = vector.extract_strided_slice %288 {offsets = [0, 384], sizes = [8, 128], strides = [1, 1]} : vector<8x512xf32> to vector<8x128xf32>
      %cst_150 = arith.constant 5.000000e-01 : f32
      %309 = vector.broadcast %cst_150 : f32 to vector<8x128xf32>
      %310 = arith.mulf %309, %308 : vector<8x128xf32>
      %311 = math.tanh %310 : vector<8x128xf32>
      %cst_151 = arith.constant 5.000000e-01 : f32
      %312 = vector.broadcast %cst_151 : f32 to vector<8x128xf32>
      %313 = arith.mulf %312, %311 : vector<8x128xf32>
      %cst_152 = arith.constant 5.000000e-01 : f32
      %314 = vector.broadcast %cst_152 : f32 to vector<8x128xf32>
      %315 = arith.addf %313, %314 : vector<8x128xf32>
      %316 = arith.mulf %305, %289 : vector<8x128xf32>
      %317 = arith.mulf %297, %307 : vector<8x128xf32>
      %318 = arith.addf %316, %317 : vector<8x128xf32>
      %319 = math.tanh %318 : vector<8x128xf32>
      %320 = arith.mulf %315, %319 : vector<8x128xf32>
      %321 = arith.truncf %320 : vector<8x128xf32> to vector<8x128xbf16>
      %c0_153 = arith.constant 0 : index
      %c0_154 = arith.constant 0 : index
      %322 = vector.load %arg25[%c0_153, %c0_154] : memref<8x256xbf16, #tpu.memory_space<vmem>>, vector<8x128xbf16>
      tpu.vector_store %arg25[%c0_153, %c0_154], %321 {strides = array<i32>} : memref<8x256xbf16, #tpu.memory_space<vmem>>, vector<8x128xbf16>,
      %c0_155 = arith.constant 0 : index
      %c0_156 = arith.constant 0 : index
      %323 = vector.load %arg27[%c0_155, %c0_156] : memref<8x256xf32, #tpu.memory_space<vmem>>, vector<8x128xf32>
      tpu.vector_store %arg27[%c0_155, %c0_156], %318 {strides = array<i32>} : memref<8x256xf32, #tpu.memory_space<vmem>>, vector<8x128xf32>,
      %c0_157 = arith.constant 0 : index
      %c0_158 = arith.constant 0 : index
      %324 = vector.load %arg24[%c0_157, %c0_158] : memref<8x256xbf16, #tpu.memory_space<vmem>>, vector<8x256xbf16>
      %c0_159 = arith.constant 0 : index
      %c0_160 = arith.constant 0 : index
      %325 = vector.load %arg7[%c0_159, %c0_160] : memref<256x512xbf16, #tpu.memory_space<vmem>>, vector<256x512xbf16>
      %cst_161 = arith.constant dense<0.000000e+00> : vector<8x512xf32>
      %326 = tpu.matmul %324, %325, %cst_161 {dimension_numbers = #tpu.dot_dimension_numbers<[1], [0], [0], [1], [0, 0, 1, 1], [], []>} : vector<8x256xbf16>, vector<256x512xbf16>, vector<8x512xf32> -> vector<8x512xf32>
      %327 = vector.broadcast %4 : vector<1x512xf32> to vector<8x512xf32>
      %328 = arith.addf %326, %327 : vector<8x512xf32>
      %c0_162 = arith.constant 0 : index
      %c128_163 = arith.constant 128 : index
      %329 = vector.load %arg26[%c0_162, %c128_163] : memref<8x256xf32, #tpu.memory_space<vmem>>, vector<8x128xf32>
      %330 = vector.extract_strided_slice %328 {offsets = [0, 0], sizes = [8, 128], strides = [1, 1]} : vector<8x512xf32> to vector<8x128xf32>
      %cst_164 = arith.constant 5.000000e-01 : f32
      %331 = vector.broadcast %cst_164 : f32 to vector<8x128xf32>
      %332 = arith.mulf %331, %330 : vector<8x128xf32>
      %333 = math.tanh %332 : vector<8x128xf32>
      %cst_165 = arith.constant 5.000000e-01 : f32
      %334 = vector.broadcast %cst_165 : f32 to vector<8x128xf32>
      %335 = arith.mulf %334, %333 : vector<8x128xf32>
      %cst_166 = arith.constant 5.000000e-01 : f32
      %336 = vector.broadcast %cst_166 : f32 to vector<8x128xf32>
      %337 = arith.addf %335, %336 : vector<8x128xf32>
      %338 = vector.extract_strided_slice %328 {offsets = [0, 128], sizes = [8, 128], strides = [1, 1]} : vector<8x512xf32> to vector<8x128xf32>
      %cst_167 = arith.constant 5.000000e-01 : f32
      %339 = vector.broadcast %cst_167 : f32 to vector<8x128xf32>
      %340 = arith.mulf %339, %338 : vector<8x128xf32>
      %341 = math.tanh %340 : vector<8x128xf32>
      %cst_168 = arith.constant 5.000000e-01 : f32
      %342 = vector.broadcast %cst_168 : f32 to vector<8x128xf32>
      %343 = arith.mulf %342, %341 : vector<8x128xf32>
      %cst_169 = arith.constant 5.000000e-01 : f32
      %344 = vector.broadcast %cst_169 : f32 to vector<8x128xf32>
      %345 = arith.addf %343, %344 : vector<8x128xf32>
      %346 = vector.extract_strided_slice %328 {offsets = [0, 256], sizes = [8, 128], strides = [1, 1]} : vector<8x512xf32> to vector<8x128xf32>
      %347 = math.tanh %346 : vector<8x128xf32>
      %348 = vector.extract_strided_slice %328 {offsets = [0, 384], sizes = [8, 128], strides = [1, 1]} : vector<8x512xf32> to vector<8x128xf32>
      %cst_170 = arith.constant 5.000000e-01 : f32
      %349 = vector.broadcast %cst_170 : f32 to vector<8x128xf32>
      %350 = arith.mulf %349, %348 : vector<8x128xf32>
      %351 = math.tanh %350 : vector<8x128xf32>
      %cst_171 = arith.constant 5.000000e-01 : f32
      %352 = vector.broadcast %cst_171 : f32 to vector<8x128xf32>
      %353 = arith.mulf %352, %351 : vector<8x128xf32>
      %cst_172 = arith.constant 5.000000e-01 : f32
      %354 = vector.broadcast %cst_172 : f32 to vector<8x128xf32>
      %355 = arith.addf %353, %354 : vector<8x128xf32>
      %356 = arith.mulf %345, %329 : vector<8x128xf32>
      %357 = arith.mulf %337, %347 : vector<8x128xf32>
      %358 = arith.addf %356, %357 : vector<8x128xf32>
      %359 = math.tanh %358 : vector<8x128xf32>
      %360 = arith.mulf %355, %359 : vector<8x128xf32>
      %361 = arith.truncf %360 : vector<8x128xf32> to vector<8x128xbf16>
      %c0_173 = arith.constant 0 : index
      %c128_174 = arith.constant 128 : index
      %362 = vector.load %arg24[%c0_173, %c128_174] : memref<8x256xbf16, #tpu.memory_space<vmem>>, vector<8x128xbf16>
      tpu.vector_store %arg24[%c0_173, %c128_174], %361 {strides = array<i32>} : memref<8x256xbf16, #tpu.memory_space<vmem>>, vector<8x128xbf16>,
      %c0_175 = arith.constant 0 : index
      %c128_176 = arith.constant 128 : index
      %363 = vector.load %arg26[%c0_175, %c128_176] : memref<8x256xf32, #tpu.memory_space<vmem>>, vector<8x128xf32>
      tpu.vector_store %arg26[%c0_175, %c128_176], %358 {strides = array<i32>} : memref<8x256xf32, #tpu.memory_space<vmem>>, vector<8x128xf32>,
      %c0_177 = arith.constant 0 : index
      %c0_178 = arith.constant 0 : index
      %364 = vector.load %arg25[%c0_177, %c0_178] : memref<8x256xbf16, #tpu.memory_space<vmem>>, vector<8x256xbf16>
      %c0_179 = arith.constant 0 : index
      %c0_180 = arith.constant 0 : index
      %365 = vector.load %arg12[%c0_179, %c0_180] : memref<256x512xbf16, #tpu.memory_space<vmem>>, vector<256x512xbf16>
      %cst_181 = arith.constant dense<0.000000e+00> : vector<8x512xf32>
      %366 = tpu.matmul %364, %365, %cst_181 {dimension_numbers = #tpu.dot_dimension_numbers<[1], [0], [0], [1], [0, 0, 1, 1], [], []>} : vector<8x256xbf16>, vector<256x512xbf16>, vector<8x512xf32> -> vector<8x512xf32>
      %367 = vector.broadcast %5 : vector<1x512xf32> to vector<8x512xf32>
      %368 = arith.addf %366, %367 : vector<8x512xf32>
      %c0_182 = arith.constant 0 : index
      %c128_183 = arith.constant 128 : index
      %369 = vector.load %arg27[%c0_182, %c128_183] : memref<8x256xf32, #tpu.memory_space<vmem>>, vector<8x128xf32>
      %370 = vector.extract_strided_slice %368 {offsets = [0, 0], sizes = [8, 128], strides = [1, 1]} : vector<8x512xf32> to vector<8x128xf32>
      %cst_184 = arith.constant 5.000000e-01 : f32
      %371 = vector.broadcast %cst_184 : f32 to vector<8x128xf32>
      %372 = arith.mulf %371, %370 : vector<8x128xf32>
      %373 = math.tanh %372 : vector<8x128xf32>
      %cst_185 = arith.constant 5.000000e-01 : f32
      %374 = vector.broadcast %cst_185 : f32 to vector<8x128xf32>
      %375 = arith.mulf %374, %373 : vector<8x128xf32>
      %cst_186 = arith.constant 5.000000e-01 : f32
      %376 = vector.broadcast %cst_186 : f32 to vector<8x128xf32>
      %377 = arith.addf %375, %376 : vector<8x128xf32>
      %378 = vector.extract_strided_slice %368 {offsets = [0, 128], sizes = [8, 128], strides = [1, 1]} : vector<8x512xf32> to vector<8x128xf32>
      %cst_187 = arith.constant 5.000000e-01 : f32
      %379 = vector.broadcast %cst_187 : f32 to vector<8x128xf32>
      %380 = arith.mulf %379, %378 : vector<8x128xf32>
      %381 = math.tanh %380 : vector<8x128xf32>
      %cst_188 = arith.constant 5.000000e-01 : f32
      %382 = vector.broadcast %cst_188 : f32 to vector<8x128xf32>
      %383 = arith.mulf %382, %381 : vector<8x128xf32>
      %cst_189 = arith.constant 5.000000e-01 : f32
      %384 = vector.broadcast %cst_189 : f32 to vector<8x128xf32>
      %385 = arith.addf %383, %384 : vector<8x128xf32>
      %386 = vector.extract_strided_slice %368 {offsets = [0, 256], sizes = [8, 128], strides = [1, 1]} : vector<8x512xf32> to vector<8x128xf32>
      %387 = math.tanh %386 : vector<8x128xf32>
      %388 = vector.extract_strided_slice %368 {offsets = [0, 384], sizes = [8, 128], strides = [1, 1]} : vector<8x512xf32> to vector<8x128xf32>
      %cst_190 = arith.constant 5.000000e-01 : f32
      %389 = vector.broadcast %cst_190 : f32 to vector<8x128xf32>
      %390 = arith.mulf %389, %388 : vector<8x128xf32>
      %391 = math.tanh %390 : vector<8x128xf32>
      %cst_191 = arith.constant 5.000000e-01 : f32
      %392 = vector.broadcast %cst_191 : f32 to vector<8x128xf32>
      %393 = arith.mulf %392, %391 : vector<8x128xf32>
      %cst_192 = arith.constant 5.000000e-01 : f32
      %394 = vector.broadcast %cst_192 : f32 to vector<8x128xf32>
      %395 = arith.addf %393, %394 : vector<8x128xf32>
      %396 = arith.mulf %385, %369 : vector<8x128xf32>
      %397 = arith.mulf %377, %387 : vector<8x128xf32>
      %398 = arith.addf %396, %397 : vector<8x128xf32>
      %399 = math.tanh %398 : vector<8x128xf32>
      %400 = arith.mulf %395, %399 : vector<8x128xf32>
      %401 = arith.truncf %400 : vector<8x128xf32> to vector<8x128xbf16>
      %c0_193 = arith.constant 0 : index
      %c128_194 = arith.constant 128 : index
      %402 = vector.load %arg25[%c0_193, %c128_194] : memref<8x256xbf16, #tpu.memory_space<vmem>>, vector<8x128xbf16>
      tpu.vector_store %arg25[%c0_193, %c128_194], %401 {strides = array<i32>} : memref<8x256xbf16, #tpu.memory_space<vmem>>, vector<8x128xbf16>,
      %c0_195 = arith.constant 0 : index
      %c128_196 = arith.constant 128 : index
      %403 = vector.load %arg27[%c0_195, %c128_196] : memref<8x256xf32, #tpu.memory_space<vmem>>, vector<8x128xf32>
      tpu.vector_store %arg27[%c0_195, %c128_196], %398 {strides = array<i32>} : memref<8x256xf32, #tpu.memory_space<vmem>>, vector<8x128xf32>,
    }
    %c4_i32_74 = arith.constant 4 : i32
    %c0_75 = arith.constant 0 : index
    %c128_76 = arith.constant 128 : index
    %166 = vector.load %arg24[%c0_75, %c128_76] : memref<8x256xbf16, #tpu.memory_space<vmem>>, vector<8x128xbf16>
    %c0_77 = arith.constant 0 : index
    %c128_78 = arith.constant 128 : index
    %167 = vector.load %arg25[%c0_77, %c128_78] : memref<8x256xbf16, #tpu.memory_space<vmem>>, vector<8x128xbf16>
    %168 = tpu.concatenate %166, %167 in 1 : vector<8x128xbf16>, vector<8x128xbf16> -> vector<8x256xbf16>
    %c0_79 = arith.constant 0 : index
    %c0_80 = arith.constant 0 : index
    %169 = vector.load %arg14[%c0_79, %c0_80] : memref<256x128xbf16, #tpu.memory_space<vmem>>, vector<256x128xbf16>
    %cst_81 = arith.constant dense<0.000000e+00> : vector<8x128xf32>
    %170 = tpu.matmul %168, %169, %cst_81 {dimension_numbers = #tpu.dot_dimension_numbers<[1], [0], [0], [1], [0, 0, 1, 1], [], []>} : vector<8x256xbf16>, vector<256x128xbf16>, vector<8x128xf32> -> vector<8x128xf32>
    %c0_82 = arith.constant 0 : index
    %c0_83 = arith.constant 0 : index
    %171 = vector.load %arg16[%c0_82, %c0_83] : memref<1x128xf32, #tpu.memory_space<vmem>>, vector<1x128xf32>
    %172 = vector.broadcast %171 : vector<1x128xf32> to vector<8x128xf32>
    %173 = arith.addf %170, %172 : vector<8x128xf32>
    %c0_84 = arith.constant 0 : index
    %c0_85 = arith.constant 0 : index
    %174 = vector.load %arg3[%c0_84, %c0_85] : memref<8x3xf32, #tpu.memory_space<vmem>>, vector<8x3xf32>
    %c0_86 = arith.constant 0 : index
    %c0_87 = arith.constant 0 : index
    %175 = vector.load %arg15[%c0_86, %c0_87] : memref<3x128xf32, #tpu.memory_space<vmem>>, vector<3x128xf32>
    %176 = vector.extract_strided_slice %174 {offsets = [0, 0], sizes = [8, 1], strides = [1, 1]} : vector<8x3xf32> to vector<8x1xf32>
    %177 = vector.extract_strided_slice %175 {offsets = [0, 0], sizes = [1, 128], strides = [1, 1]} : vector<3x128xf32> to vector<1x128xf32>
    %178 = vector.broadcast %176 : vector<8x1xf32> to vector<8x128xf32>
    %179 = vector.broadcast %177 : vector<1x128xf32> to vector<8x128xf32>
    %180 = arith.mulf %178, %179 : vector<8x128xf32>
    %181 = arith.addf %173, %180 : vector<8x128xf32>
    %182 = vector.extract_strided_slice %174 {offsets = [0, 1], sizes = [8, 1], strides = [1, 1]} : vector<8x3xf32> to vector<8x1xf32>
    %183 = vector.extract_strided_slice %175 {offsets = [1, 0], sizes = [1, 128], strides = [1, 1]} : vector<3x128xf32> to vector<1x128xf32>
    %184 = vector.broadcast %182 : vector<8x1xf32> to vector<8x128xf32>
    %185 = vector.broadcast %183 : vector<1x128xf32> to vector<8x128xf32>
    %186 = arith.mulf %184, %185 : vector<8x128xf32>
    %187 = arith.addf %181, %186 : vector<8x128xf32>
    %188 = vector.extract_strided_slice %174 {offsets = [0, 2], sizes = [8, 1], strides = [1, 1]} : vector<8x3xf32> to vector<8x1xf32>
    %189 = vector.extract_strided_slice %175 {offsets = [2, 0], sizes = [1, 128], strides = [1, 1]} : vector<3x128xf32> to vector<1x128xf32>
    %190 = vector.broadcast %188 : vector<8x1xf32> to vector<8x128xf32>
    %191 = vector.broadcast %189 : vector<1x128xf32> to vector<8x128xf32>
    %192 = arith.mulf %190, %191 : vector<8x128xf32>
    %193 = arith.addf %187, %192 : vector<8x128xf32>
    %cst_88 = arith.constant 0.000000e+00 : f32
    %194 = vector.broadcast %cst_88 : f32 to vector<8x128xf32>
    %195 = arith.cmpf ogt, %193, %194 : vector<8x128xf32>
    %cst_89 = arith.constant 0.00999999977 : f32
    %196 = vector.broadcast %cst_89 : f32 to vector<8x128xf32>
    %197 = arith.mulf %196, %193 : vector<8x128xf32>
    %198 = arith.select %195, %193, %197 : vector<8x128xi1>, vector<8x128xf32>
    %199 = arith.truncf %198 : vector<8x128xf32> to vector<8x128xbf16>
    %c0_90 = arith.constant 0 : index
    %c0_91 = arith.constant 0 : index
    %200 = vector.load %arg17[%c0_90, %c0_91] : memref<128x128xbf16, #tpu.memory_space<vmem>>, vector<128x128xbf16>
    %cst_92 = arith.constant dense<0.000000e+00> : vector<8x128xf32>
    %201 = tpu.matmul %199, %200, %cst_92 {dimension_numbers = #tpu.dot_dimension_numbers<[1], [0], [0], [1], [0, 0, 1, 1], [], []>} : vector<8x128xbf16>, vector<128x128xbf16>, vector<8x128xf32> -> vector<8x128xf32>
    %c0_93 = arith.constant 0 : index
    %c0_94 = arith.constant 0 : index
    %202 = vector.load %arg18[%c0_93, %c0_94] : memref<1x128xf32, #tpu.memory_space<vmem>>, vector<1x128xf32>
    %203 = vector.broadcast %202 : vector<1x128xf32> to vector<8x128xf32>
    %204 = arith.addf %201, %203 : vector<8x128xf32>
    %cst_95 = arith.constant 0.000000e+00 : f32
    %205 = vector.broadcast %cst_95 : f32 to vector<8x128xf32>
    %206 = arith.cmpf ogt, %204, %205 : vector<8x128xf32>
    %cst_96 = arith.constant 0.00999999977 : f32
    %207 = vector.broadcast %cst_96 : f32 to vector<8x128xf32>
    %208 = arith.mulf %207, %204 : vector<8x128xf32>
    %209 = arith.select %206, %204, %208 : vector<8x128xi1>, vector<8x128xf32>
    %210 = arith.truncf %209 : vector<8x128xf32> to vector<8x128xbf16>
    %c0_97 = arith.constant 0 : index
    %c0_98 = arith.constant 0 : index
    %211 = vector.load %arg19[%c0_97, %c0_98] : memref<128x128xbf16, #tpu.memory_space<vmem>>, vector<128x128xbf16>
    %cst_99 = arith.constant dense<0.000000e+00> : vector<8x128xf32>
    %212 = tpu.matmul %210, %211, %cst_99 {dimension_numbers = #tpu.dot_dimension_numbers<[1], [0], [0], [1], [0, 0, 1, 1], [], []>} : vector<8x128xbf16>, vector<128x128xbf16>, vector<8x128xf32> -> vector<8x128xf32>
    %c0_100 = arith.constant 0 : index
    %c0_101 = arith.constant 0 : index
    %213 = vector.load %arg20[%c0_100, %c0_101] : memref<1x128xf32, #tpu.memory_space<vmem>>, vector<1x128xf32>
    %214 = vector.broadcast %213 : vector<1x128xf32> to vector<8x128xf32>
    %215 = arith.addf %212, %214 : vector<8x128xf32>
    %cst_102 = arith.constant 0.000000e+00 : f32
    %216 = vector.broadcast %cst_102 : f32 to vector<8x128xf32>
    %217 = arith.cmpf ogt, %215, %216 : vector<8x128xf32>
    %cst_103 = arith.constant 0.00999999977 : f32
    %218 = vector.broadcast %cst_103 : f32 to vector<8x128xf32>
    %219 = arith.mulf %218, %215 : vector<8x128xf32>
    %220 = arith.select %217, %215, %219 : vector<8x128xi1>, vector<8x128xf32>
    %221 = arith.truncf %220 : vector<8x128xf32> to vector<8x128xbf16>
    %c0_104 = arith.constant 0 : index
    %c0_105 = arith.constant 0 : index
    %222 = vector.load %arg21[%c0_104, %c0_105] : memref<128x128xbf16, #tpu.memory_space<vmem>>, vector<128x128xbf16>
    %cst_106 = arith.constant dense<0.000000e+00> : vector<8x128xf32>
    %223 = tpu.matmul %221, %222, %cst_106 {dimension_numbers = #tpu.dot_dimension_numbers<[1], [0], [0], [1], [0, 0, 1, 1], [], []>} : vector<8x128xbf16>, vector<128x128xbf16>, vector<8x128xf32> -> vector<8x128xf32>
    %c0_107 = arith.constant 0 : index
    %c0_108 = arith.constant 0 : index
    %224 = vector.load %arg22[%c0_107, %c0_108] : memref<1x128xf32, #tpu.memory_space<vmem>>, vector<1x128xf32>
    %225 = vector.broadcast %224 : vector<1x128xf32> to vector<8x128xf32>
    %226 = arith.addf %223, %225 : vector<8x128xf32>
    %c0_109 = arith.constant 0 : index
    %c0_110 = arith.constant 0 : index
    %227 = vector.load %arg23[%c0_109, %c0_110] : memref<8x128xf32, #tpu.memory_space<vmem>>, vector<8x128xf32>
    tpu.vector_store %arg23[%c0_109, %c0_110], %226 {strides = array<i32>} : memref<8x128xf32, #tpu.memory_space<vmem>>, vector<8x128xf32>,
    return
  }
  func.func @transform_0(%arg0: i32) -> (i32, i32, i32) {
    %c0_i32 = arith.constant 0 : i32
    %c0_i32_0 = arith.constant 0 : i32
    %c0_i32_1 = arith.constant 0 : i32
    return %c0_i32, %arg0, %c0_i32_0 : i32, i32, i32
  }
  func.func @transform_1(%arg0: i32) -> (i32, i32, i32) {
    %c0_i32 = arith.constant 0 : i32
    %c0_i32_0 = arith.constant 0 : i32
    %c0_i32_1 = arith.constant 0 : i32
    return %c0_i32, %arg0, %c0_i32_0 : i32, i32, i32
  }
  func.func @transform_2(%arg0: i32) -> (i32, i32) {
    %c0_i32 = arith.constant 0 : i32
    %c0_i32_0 = arith.constant 0 : i32
    return %arg0, %c0_i32 : i32, i32
  }
  func.func @transform_3(%arg0: i32) -> (i32, i32) {
    %c0_i32 = arith.constant 0 : i32
    %c0_i32_0 = arith.constant 0 : i32
    %c0_i32_1 = arith.constant 0 : i32
    return %c0_i32, %c0_i32_0 : i32, i32
  }
  func.func @transform_4(%arg0: i32) -> (i32, i32) {
    %c0_i32 = arith.constant 0 : i32
    %c0_i32_0 = arith.constant 0 : i32
    %c0_i32_1 = arith.constant 0 : i32
    return %c0_i32, %c0_i32_0 : i32, i32
  }
  func.func @transform_5(%arg0: i32) -> (i32, i32) {
    %c0_i32 = arith.constant 0 : i32
    %c0_i32_0 = arith.constant 0 : i32
    %c0_i32_1 = arith.constant 0 : i32
    return %c0_i32, %c0_i32_0 : i32, i32
  }
  func.func @transform_6(%arg0: i32) -> (i32, i32) {
    %c0_i32 = arith.constant 0 : i32
    %c0_i32_0 = arith.constant 0 : i32
    %c0_i32_1 = arith.constant 0 : i32
    return %c0_i32, %c0_i32_0 : i32, i32
  }
  func.func @transform_7(%arg0: i32) -> (i32, i32) {
    %c0_i32 = arith.constant 0 : i32
    %c0_i32_0 = arith.constant 0 : i32
    %c0_i32_1 = arith.constant 0 : i32
    return %c0_i32, %c0_i32_0 : i32, i32
  }
  func.func @transform_8(%arg0: i32) -> (i32, i32) {
    %c0_i32 = arith.constant 0 : i32
    %c0_i32_0 = arith.constant 0 : i32
    %c0_i32_1 = arith.constant 0 : i32
    return %c0_i32, %c0_i32_0 : i32, i32
  }
  func.func @transform_9(%arg0: i32) -> (i32, i32) {
    %c0_i32 = arith.constant 0 : i32
    %c0_i32_0 = arith.constant 0 : i32
    %c0_i32_1 = arith.constant 0 : i32
    return %c0_i32, %c0_i32_0 : i32, i32
  }
  func.func @transform_10(%arg0: i32) -> (i32, i32) {
    %c0_i32 = arith.constant 0 : i32
    %c0_i32_0 = arith.constant 0 : i32
    %c0_i32_1 = arith.constant 0 : i32
    return %c0_i32, %c0_i32_0 : i32, i32
  }
  func.func @transform_11(%arg0: i32) -> (i32, i32) {
    %c0_i32 = arith.constant 0 : i32
    %c0_i32_0 = arith.constant 0 : i32
    %c0_i32_1 = arith.constant 0 : i32
    return %c0_i32, %c0_i32_0 : i32, i32
  }
  func.func @transform_12(%arg0: i32) -> (i32, i32) {
    %c0_i32 = arith.constant 0 : i32
    %c0_i32_0 = arith.constant 0 : i32
    %c0_i32_1 = arith.constant 0 : i32
    return %c0_i32, %c0_i32_0 : i32, i32
  }
  func.func @transform_13(%arg0: i32) -> (i32, i32) {
    %c0_i32 = arith.constant 0 : i32
    %c0_i32_0 = arith.constant 0 : i32
    %c0_i32_1 = arith.constant 0 : i32
    return %c0_i32, %c0_i32_0 : i32, i32
  }
  func.func @transform_14(%arg0: i32) -> (i32, i32) {
    %c0_i32 = arith.constant 0 : i32
    %c0_i32_0 = arith.constant 0 : i32
    %c0_i32_1 = arith.constant 0 : i32
    return %c0_i32, %c0_i32_0 : i32, i32
  }
  func.func @transform_15(%arg0: i32) -> (i32, i32) {
    %c0_i32 = arith.constant 0 : i32
    %c0_i32_0 = arith.constant 0 : i32
    %c0_i32_1 = arith.constant 0 : i32
    return %c0_i32, %c0_i32_0 : i32, i32
  }
  func.func @transform_16(%arg0: i32) -> (i32, i32) {
    %c0_i32 = arith.constant 0 : i32
    %c0_i32_0 = arith.constant 0 : i32
    %c0_i32_1 = arith.constant 0 : i32
    return %c0_i32, %c0_i32_0 : i32, i32
  }
  func.func @transform_17(%arg0: i32) -> (i32, i32) {
    %c0_i32 = arith.constant 0 : i32
    %c0_i32_0 = arith.constant 0 : i32
    %c0_i32_1 = arith.constant 0 : i32
    return %c0_i32, %c0_i32_0 : i32, i32
  }
  func.func @transform_18(%arg0: i32) -> (i32, i32) {
    %c0_i32 = arith.constant 0 : i32
    %c0_i32_0 = arith.constant 0 : i32
    %c0_i32_1 = arith.constant 0 : i32
    return %c0_i32, %c0_i32_0 : i32, i32
  }
  func.func @transform_19(%arg0: i32) -> (i32, i32) {
    %c0_i32 = arith.constant 0 : i32
    %c0_i32_0 = arith.constant 0 : i32
    %c0_i32_1 = arith.constant 0 : i32
    return %c0_i32, %c0_i32_0 : i32, i32
  }
  func.func @transform_20(%arg0: i32) -> (i32, i32) {
    %c0_i32 = arith.constant 0 : i32
    %c0_i32_0 = arith.constant 0 : i32
    %c0_i32_1 = arith.constant 0 : i32
    return %c0_i32, %c0_i32_0 : i32, i32
  }
  func.func @transform_21(%arg0: i32) -> (i32, i32) {
    %c0_i32 = arith.constant 0 : i32
    %c0_i32_0 = arith.constant 0 : i32
    %c0_i32_1 = arith.constant 0 : i32
    return %c0_i32, %c0_i32_0 : i32, i32
  }
  func.func @transform_22(%arg0: i32) -> (i32, i32) {
    %c0_i32 = arith.constant 0 : i32
    %c0_i32_0 = arith.constant 0 : i32
    return %arg0, %c0_i32 : i32, i32
  }
}

</mosaic_0001>

<bundles_post_ra>
// kernel: policy_network.1
= control target key start
LH: loop header
LB: loop body
LE: loop exit
PB: predicated region body
PF: predicated region fallthrough
CT: control target
= control target key end

     0   :  { %s5030_s0 = inlined_call_operand.vmem [shape: f32[5,8,1], index: 0, kind: input, shape index: {}]   ;;  %s5031_s1 = inlined_call_operand.vmem [shape: f32[5,8,1], index: 1, kind: input, shape index: {}]   ;;  %s5032_s2 = inlined_call_operand.vmem [shape: f32[8,3], index: 2, kind: input, shape index: {}]   ;;  %s5033_s3 = inlined_call_operand.vmem [shape: f32[1,512], index: 3, kind: input, shape index: {}]   ;;  %s5034_s4 = inlined_call_operand.vmem [shape: f32[1,512], index: 4, kind: input, shape index: {}]   ;;  %s5035_s5 = inlined_call_operand.hbm [shape: bf16[128,512], index: 5, kind: input, shape index: {}]   ;;  %s5036_s6 = inlined_call_operand.hbm [shape: bf16[256,512], index: 6, kind: input, shape index: {}]   ;;  %s5037_s7 = inlined_call_operand.vmem [shape: f32[1,512], index: 7, kind: input, shape index: {}]   ;;  %s5038_s8 = inlined_call_operand.vmem [shape: f32[1,512], index: 8, kind: input, shape index: {}]   ;;  %s5039_s9 = inlined_call_operand.vmem [shape: f32[1,512], index: 9, kind: input, shape index: {}]   ;;  %s5040_s10 = inlined_call_operand.hbm [shape: bf16[128,512], index: 10, kind: input, shape index: {}]   ;;  %s5041_s11 = inlined_call_operand.hbm [shape: bf16[256,512], index: 11, kind: input, shape index: {}]   ;;  %s5042_s12 = inlined_call_operand.hbm [shape: f32[1,512], index: 12, kind: input, shape index: {}]   ;;  %s5043_s13 = inlined_call_operand.vmem [shape: bf16[256,128], index: 13, kind: input, shape index: {}]   ;;  %s5044_s14 = inlined_call_operand.hbm [shape: f32[3,128], index: 14, kind: input, shape index: {}]   ;;  %s5045_s15 = inlined_call_operand.vmem [shape: f32[1,128], index: 15, kind: input, shape index: {}]   ;;  %s5046_s16 = inlined_call_operand.vmem [shape: bf16[128,128], index: 16, kind: input, shape index: {}]   ;;  %s5047_s17 = inlined_call_operand.hbm [shape: f32[1,128], index: 17, kind: input, shape index: {}]   ;;  %s5048_s18 = inlined_call_operand.hbm [shape: bf16[128,128], index: 18, kind: input, shape index: {}]   ;;  %s5049_s19 = inlined_call_operand.hbm [shape: f32[1,128], index: 19, kind: input, shape index: {}]   ;;  %s5050_s20 = inlined_call_operand.hbm [shape: bf16[128,128], index: 20, kind: input, shape index: {}]   ;;  %s5051_s21 = inlined_call_operand.hbm [shape: f32[1,128], index: 21, kind: input, shape index: {}]   ;;  %s5052_s22 = inlined_call_operand.vmem [shape: f32[8,128], index: 22, kind: output, shape index: {}]  }
   0x1   :  { %5055 = sst [smem:[#allocation29_spill]] %s5030_s0 }
   0x2   :  { %5056 = sst [smem:[#allocation30_spill]] %s5031_s1 }
   0x3   :  { %5057 = sst [smem:[#allocation31_spill]] %s5032_s2 }
   0x4   :  { %5058 = sst [smem:[#allocation32_spill]] %s5033_s3 }
   0x5   :  { %5059 = sst [smem:[#allocation33_spill]] %s5034_s4 }
   0x6   :  { %5060 = sst [smem:[#allocation34_spill]] %s5035_s5 }
   0x7   :  { %5061 = sst [smem:[#allocation35_spill]] %s5036_s6 }
   0x8   :  { %5062 = sst [smem:[#allocation36_spill]] %s5052_s22 }
   0x9   :  { %27 = vsyncpa [#allocation7], 0 }
   0xa   :  { %28 = vsyncpa [#allocation9], 0 }
   0xb   :  { %29 = vsyncpa [#allocation12], 0 }
   0xc   :  { %30 = vsyncpa [#allocation15], 0 }
   0xd   :  { %31 = vsyncpa [#allocation18], 0 }
   0xe   :  { %32 = vsyncpa [#allocation21], 0  ;;  %s4434_s3 = smov [#allocation8]   ;;  %s4435_s29 = smov [#allocation11]  }
   0xf   :  { %s60_s28 = sshll.u32 %s4434_s3, 4  ;;  %s90_s30 = sshll.u32 %s4435_s29, 4  ;;  %s61_s28 = int_to_ptr.vmem [resolvable:$true] %s60_s28  ;;  %s4570_s30 = int_to_ptr.vmem [resolvable:$true] %s90_s30 }
  0x10   :  { %s5063_s23 = sld [smem:[#allocation35_spill]] }
  0x16   :  { %s4172_s1 = scalar_lea.hbm %s5063_s23, 8192 }
  0x17   :  { %p4173_p0 = scmp.ne.s32.totalorder %s5063_s23, %s4172_s1  ;;  %p4176_p1 = scmp.lt.u32.totalorder %s4172_s1, %s5063_s23 }
  0x19   :  { %p4178_p2 = pnand %p4176_p1, %p4173_p0 }
  0x1b   :  { %4181 = shalt.err (!%p4178_p2)
}
  0x1c   :  { %s4182_s26 = scalar_lea.vmem %s61_s28, 8192  ;;  %p4187_p4 = scmp.lt.s32.totalorder %s61_s28, %s61_s28 }
  0x1d   :  { %p4183_p3 = scmp.ne.s32.totalorder %s61_s28, %s4182_s26  ;;  %p4188_p5 = scmp.lt.s32.totalorder %s4182_s26, %s4182_s26 }
  0x1f   :  { %p4189_p6 = por %p4188_p5, %p4187_p4 }
  0x21   :  { %p4190_p7 = pnand %p4189_p6, %p4183_p3 }
  0x23   :  { %4193 = shalt.err (!%p4190_p7)
}
  0x24   :  { %s4436_s2 = smov 256   ;;  %s4437_s27 = smov 16  }
  0x25   :  { %66 = dma.hbm_to_vmem [thread:$0]  %s5063_s23, 8192, %s61_s28, [#allocation9], %s4436_s2, %s4436_s2, %s4437_s27  }
  0x26   :  { %s4194_s1 = scalar_lea.hbm %s5041_s11, 8192 }
  0x27   :  { %p4195_p8 = scmp.ne.s32.totalorder %s5041_s11, %s4194_s1  ;;  %p4198_p9 = scmp.lt.u32.totalorder %s4194_s1, %s5041_s11 }
  0x29   :  { %p4200_p10 = pnand %p4198_p9, %p4195_p8 }
  0x2b   :  { %4203 = shalt.err (!%p4200_p10)
}
  0x2c   :  { %s4204_s26 = scalar_lea.vmem %s4570_s30, 8192  ;;  %p4209_p12 = scmp.lt.s32.totalorder %s4570_s30, %s4570_s30 }
  0x2d   :  { %p4205_p11 = scmp.ne.s32.totalorder %s4570_s30, %s4204_s26  ;;  %p4210_p13 = scmp.lt.s32.totalorder %s4204_s26, %s4204_s26 }
  0x2f   :  { %p4211_p0 = por %p4210_p13, %p4209_p12 }
  0x31   :  { %p4212_p1 = pnand %p4211_p0, %p4205_p11 }
  0x33   :  { %4215 = shalt.err (!%p4212_p1)
}
  0x34   :  { %96 = dma.hbm_to_vmem [thread:$0]  %s5041_s11, 8192, %s4570_s30, [#allocation12], %s4436_s2, %s4436_s2, %s4437_s27  }
  0x35   :  { %s4438_s3 = smov [#allocation14]   ;;  %s4439_s4 = smov [#allocation17]  }
  0x36   :  { %s115_s29 = sshll.u32 %s4438_s3, 4  ;;  %s138_s0 = sshll.u32 %s4439_s4, 4  ;;  %s116_s29 = int_to_ptr.vmem [resolvable:$true] %s115_s29  ;;  %s4607_s0 = int_to_ptr.vmem [resolvable:$true] %s138_s0 }
  0x37   :  { %s4216_s24 = scalar_lea.hbm %s5044_s14, 64 }
  0x38   :  { %p4217_p2 = scmp.ne.s32.totalorder %s5044_s14, %s4216_s24  ;;  %p4220_p3 = scmp.lt.u32.totalorder %s4216_s24, %s5044_s14 }
  0x3a   :  { %p4222_p4 = pnand %p4220_p3, %p4217_p2 }
  0x3c   :  { %4225 = shalt.err (!%p4222_p4)
}
  0x3d   :  { %s4226_s11 = scalar_lea.vmem %s116_s29, 64  ;;  %p4231_p6 = scmp.lt.s32.totalorder %s116_s29, %s116_s29 }
  0x3e   :  { %p4227_p5 = scmp.ne.s32.totalorder %s116_s29, %s4226_s11  ;;  %p4232_p7 = scmp.lt.s32.totalorder %s4226_s11, %s4226_s11 }
  0x40   :  { %p4233_p8 = por %p4232_p7, %p4231_p6 }
  0x42   :  { %p4234_p9 = pnand %p4233_p8, %p4227_p5 }
  0x44   :  { %4237 = shalt.err (!%p4234_p9)
}
  0x45   :  { %118 = dma.hbm_to_vmem [thread:$0]  %s5044_s14, 64, %s116_s29, [#allocation15]  }
  0x46   :  { %s4238_s4 = scalar_lea.hbm %s5048_s18, 1024 }
  0x47   :  { %p4239_p10 = scmp.ne.s32.totalorder %s5048_s18, %s4238_s4  ;;  %p4242_p11 = scmp.lt.u32.totalorder %s4238_s4, %s5048_s18 }
  0x49   :  { %p4244_p12 = pnand %p4242_p11, %p4239_p10 }
  0x4b   :  { %4247 = shalt.err (!%p4244_p12)
}
  0x4c   :  { %s4248_s6 = scalar_lea.vmem %s4607_s0, 1024  ;;  %p4253_p0 = scmp.lt.s32.totalorder %s4607_s0, %s4607_s0 }
  0x4d   :  { %p4249_p13 = scmp.ne.s32.totalorder %s4607_s0, %s4248_s6  ;;  %p4254_p1 = scmp.lt.s32.totalorder %s4248_s6, %s4248_s6 }
  0x4f   :  { %p4255_p2 = por %p4254_p1, %p4253_p0 }
  0x51   :  { %p4256_p3 = pnand %p4255_p2, %p4249_p13 }
  0x53   :  { %4259 = shalt.err (!%p4256_p3)
}
  0x54   :  { %s4440_s14 = smov 64   ;;  %s4441_s29 = smov 4  }
  0x55   :  { %144 = dma.hbm_to_vmem [thread:$0]  %s5048_s18, 1024, %s4607_s0, [#allocation18], %s4440_s14, %s4440_s14, %s4441_s29  }
  0x56   :  { %s4442_s11 = smov [#allocation20]   ;;  %s4443_s28 = smov [#allocation6]  }
  0x57   :  { %s160_s30 = sshll.u32 %s4442_s11, 4  ;;  %s48_s23 = sshll.u32 %s4443_s28, 4  ;;  %s161_s30 = int_to_ptr.vmem [resolvable:$true] %s160_s30  ;;  %s4638_s23 = int_to_ptr.vmem [resolvable:$true] %s48_s23 }
  0x58   :  { %s4260_s1 = scalar_lea.hbm %s5050_s20, 1024 }
  0x59   :  { %p4261_p4 = scmp.ne.s32.totalorder %s5050_s20, %s4260_s1  ;;  %p4264_p5 = scmp.lt.u32.totalorder %s4260_s1, %s5050_s20 }
  0x5b   :  { %p4266_p6 = pnand %p4264_p5, %p4261_p4 }
  0x5d   :  { %4269 = shalt.err (!%p4266_p6)
}
  0x5e   :  { %s4270_s18 = scalar_lea.vmem %s161_s30, 1024  ;;  %p4275_p8 = scmp.lt.s32.totalorder %s161_s30, %s161_s30 }
  0x5f   :  { %p4271_p7 = scmp.ne.s32.totalorder %s161_s30, %s4270_s18  ;;  %p4276_p9 = scmp.lt.s32.totalorder %s4270_s18, %s4270_s18 }
  0x61   :  { %p4277_p10 = por %p4276_p9, %p4275_p8 }
  0x63   :  { %p4278_p11 = pnand %p4277_p10, %p4271_p7 }
  0x65   :  { %4281 = shalt.err (!%p4278_p11)
}
  0x66   :  { %166 = dma.hbm_to_vmem [thread:$0]  %s5050_s20, 1024, %s161_s30, [#allocation21], %s4440_s14, %s4440_s14, %s4441_s29  }
  0x67   :  { %s5064_s28 = sld [smem:[#allocation34_spill]] }
  0x6d   :  { %s4282_s3 = scalar_lea.hbm %s5064_s28, 4096 }
  0x6e   :  { %p4283_p12 = scmp.ne.s32.totalorder %s5064_s28, %s4282_s3  ;;  %p4286_p13 = scmp.lt.u32.totalorder %s4282_s3, %s5064_s28 }
  0x70   :  { %p4288_p0 = pnand %p4286_p13, %p4283_p12 }
  0x72   :  { %4291 = shalt.err (!%p4288_p0)
}
  0x73   :  { %s4292_s24 = scalar_lea.vmem %s4638_s23, 4096  ;;  %p4297_p2 = scmp.lt.s32.totalorder %s4638_s23, %s4638_s23 }
  0x74   :  { %p4293_p1 = scmp.ne.s32.totalorder %s4638_s23, %s4292_s24  ;;  %p4298_p3 = scmp.lt.s32.totalorder %s4292_s24, %s4292_s24 }
  0x76   :  { %p4299_p4 = por %p4298_p3, %p4297_p2 }
  0x78   :  { %p4300_p5 = pnand %p4299_p4, %p4293_p1 }
  0x7a   :  { %4303 = shalt.err (!%p4300_p5)
}
  0x7b   :  { %54 = dma.hbm_to_vmem [thread:$0]  %s5064_s28, 4096, %s4638_s23, [#allocation7], %s4436_s2, %s4436_s2, %s4437_s27  }
  0x7c   :  { %s4444_s29 = smov [#allocation10]   ;;  %s4445_s6 = smov [#allocation13]  }
  0x7d   :  { %s78_s30 = sshll.u32 %s4444_s29, 4  ;;  %s103_s18 = sshll.u32 %s4445_s6, 4  ;;  %s79_s30 = int_to_ptr.vmem [resolvable:$true] %s78_s30  ;;  %s104_s18 = int_to_ptr.vmem [resolvable:$true] %s103_s18 }
  0x7e   :  { %s4304_s26 = scalar_lea.hbm %s5040_s10, 4096 }
  0x7f   :  { %p4305_p6 = scmp.ne.s32.totalorder %s5040_s10, %s4304_s26  ;;  %p4308_p7 = scmp.lt.u32.totalorder %s4304_s26, %s5040_s10 }
  0x81   :  { %p4310_p8 = pnand %p4308_p7, %p4305_p6 }
  0x83   :  { %4313 = shalt.err (!%p4310_p8)
}
  0x84   :  { %s4314_s23 = scalar_lea.vmem %s79_s30, 4096  ;;  %p4319_p10 = scmp.lt.s32.totalorder %s79_s30, %s79_s30 }
  0x85   :  { %p4315_p9 = scmp.ne.s32.totalorder %s79_s30, %s4314_s23  ;;  %p4320_p11 = scmp.lt.s32.totalorder %s4314_s23, %s4314_s23 }
  0x87   :  { %p4321_p12 = por %p4320_p11, %p4319_p10 }
  0x89   :  { %p4322_p13 = pnand %p4321_p12, %p4315_p9 }
  0x8b   :  { %4325 = shalt.err (!%p4322_p13)
}
  0x8c   :  { %84 = dma.hbm_to_vmem [thread:$0]  %s5040_s10, 4096, %s79_s30, [#allocation9], %s4436_s2, %s4436_s2, %s4437_s27  }
  0x8d   :  { %s4326_s20 = scalar_lea.hbm %s5042_s12, 64 }
  0x8e   :  { %p4327_p0 = scmp.ne.s32.totalorder %s5042_s12, %s4326_s20  ;;  %p4330_p1 = scmp.lt.u32.totalorder %s4326_s20, %s5042_s12 }
  0x90   :  { %p4332_p2 = pnand %p4330_p1, %p4327_p0 }
  0x92   :  { %4335 = shalt.err (!%p4332_p2)
}
  0x93   :  { %s4336_s25 = scalar_lea.vmem %s104_s18, 64  ;;  %p4341_p4 = scmp.lt.s32.totalorder %s104_s18, %s104_s18 }
  0x94   :  { %p4337_p3 = scmp.ne.s32.totalorder %s104_s18, %s4336_s25  ;;  %p4342_p5 = scmp.lt.s32.totalorder %s4336_s25, %s4336_s25 }
  0x96   :  { %p4343_p6 = por %p4342_p5, %p4341_p4 }
  0x98   :  { %p4344_p7 = pnand %p4343_p6, %p4337_p3 }
  0x9a   :  { %4347 = shalt.err (!%p4344_p7)
}
  0x9b   :  { %106 = dma.hbm_to_vmem [thread:$0]  %s5042_s12, 64, %s104_s18, [#allocation12]  }
  0x9c   :  { %s4446_s27 = smov [#allocation16]   ;;  %s4447_s26 = smov [#allocation19]  }
  0x9d   :  { %s129_s30 = sshll.u32 %s4446_s27, 4  ;;  %s151_s11 = sshll.u32 %s4447_s26, 4  ;;  %s130_s30 = int_to_ptr.vmem [resolvable:$true] %s129_s30  ;;  %s152_s11 = int_to_ptr.vmem [resolvable:$true] %s151_s11 }
  0x9e   :  { %s4348_s22 = scalar_lea.hbm %s5047_s17, 16 }
  0x9f   :  { %p4349_p8 = scmp.ne.s32.totalorder %s5047_s17, %s4348_s22  ;;  %p4352_p9 = scmp.lt.u32.totalorder %s4348_s22, %s5047_s17 }
  0xa1   :  { %p4354_p10 = pnand %p4352_p9, %p4349_p8 }
  0xa3   :  { %4357 = shalt.err (!%p4354_p10)
}
  0xa4   :  { %s4358_s12 = scalar_lea.vmem %s130_s30, 16  ;;  %s4362_s18 = scalar_lea.vmem %s130_s30, 32 }
  0xa5   :  { %p4359_p11 = scmp.ne.s32.totalorder %s130_s30, %s4358_s12  ;;  %p4363_p12 = scmp.lt.s32.totalorder %s130_s30, %s130_s30 }
  0xa6   :  { %p4364_p13 = scmp.lt.s32.totalorder %s4362_s18, %s4358_s12 }
  0xa8   :  { %p4365_p0 = por %p4364_p13, %p4363_p12 }
  0xaa   :  { %p4366_p1 = pnand %p4365_p0, %p4359_p11 }
  0xac   :  { %4369 = shalt.err (!%p4366_p1)
}
  0xad   :  { %132 = dma.hbm_to_vmem [thread:$0]  %s5047_s17, 16, %s130_s30, [#allocation15]  }
  0xae   :  { %s4370_s6 = scalar_lea.hbm %s5049_s19, 16 }
  0xaf   :  { %p4371_p2 = scmp.ne.s32.totalorder %s5049_s19, %s4370_s6  ;;  %p4374_p3 = scmp.lt.u32.totalorder %s4370_s6, %s5049_s19 }
  0xb1   :  { %p4376_p4 = pnand %p4374_p3, %p4371_p2 }
  0xb3   :  { %4379 = shalt.err (!%p4376_p4)
}
  0xb4   :  { %s4380_s27 = scalar_lea.vmem %s152_s11, 16  ;;  %s4384_s26 = scalar_lea.vmem %s152_s11, 32 }
  0xb5   :  { %p4381_p5 = scmp.ne.s32.totalorder %s152_s11, %s4380_s27  ;;  %p4385_p6 = scmp.lt.s32.totalorder %s152_s11, %s152_s11 }
  0xb6   :  { %p4386_p7 = scmp.lt.s32.totalorder %s4384_s26, %s4380_s27 }
  0xb8   :  { %p4387_p8 = por %p4386_p7, %p4385_p6 }
  0xba   :  { %p4388_p9 = pnand %p4387_p8, %p4381_p5 }
  0xbc   :  { %4391 = shalt.err (!%p4388_p9)
}
  0xbd   :  { %154 = dma.hbm_to_vmem [thread:$0]  %s5049_s19, 16, %s152_s11, [#allocation18]  }
  0xbe   :  { %s4448_s3 = smov [#allocation22]   ;;  %s4392_s28 = scalar_lea.hbm %s5051_s21, 16 }
  0xbf   :  { %s173_s4 = sshll.u32 %s4448_s3, 4  ;;  %p4393_p10 = scmp.ne.s32.totalorder %s5051_s21, %s4392_s28  ;;  %s174_s4 = int_to_ptr.vmem [resolvable:$true] %s173_s4 }
  0xc0   :  { %p4396_p11 = scmp.lt.u32.totalorder %s4392_s28, %s5051_s21 }
  0xc2   :  { %p4398_p12 = pnand %p4396_p11, %p4393_p10 }
  0xc4   :  { %4401 = shalt.err (!%p4398_p12)
}
  0xc5   :  { %s4402_s24 = scalar_lea.vmem %s174_s4, 16  ;;  %s4406_s19 = scalar_lea.vmem %s174_s4, 32 }
  0xc6   :  { %p4403_p13 = scmp.ne.s32.totalorder %s174_s4, %s4402_s24  ;;  %p4407_p0 = scmp.lt.s32.totalorder %s174_s4, %s174_s4 }
  0xc7   :  { %p4408_p1 = scmp.lt.s32.totalorder %s4406_s19, %s4402_s24 }
  0xc9   :  { %p4409_p2 = por %p4408_p1, %p4407_p0 }
  0xcb   :  { %p4410_p3 = pnand %p4409_p2, %p4403_p13 }
  0xcd   :  { %4413 = shalt.err (!%p4410_p3)
}
  0xce   :  { %176 = dma.hbm_to_vmem [thread:$0]  %s5051_s21, 16, %s174_s4, [#allocation21]  }
  0xcf   :  { %4418 = dma.done.wait [#allocation7], 4096  }
  0xd0   :  { %4419 = vsyncadd [#allocation7], 4294963200 }
  0xd1   :  { %4420 = dma.done.wait [#allocation9], 12288  }
  0xd2   :  { %4421 = vsyncadd [#allocation9], 4294955008 }
  0xd3   :  { %4422 = dma.done.wait [#allocation12], 8256  }
  0xd4   :  { %4423 = vsyncadd [#allocation12], 4294959040 }
  0xd5   :  { %4424 = dma.done.wait [#allocation15], 80  }
  0xd6   :  { %4425 = vsyncadd [#allocation15], 4294967216 }
  0xd7   :  { %4426 = dma.done.wait [#allocation18], 1040  }
  0xd8   :  { %4427 = vsyncadd [#allocation18], 4294966256 }
  0xd9   :  { %4428 = dma.done.wait [#allocation21], 1040  }
  0xda   :  { %4429 = vsyncadd [#allocation21], 4294966256  ;;  %v4449_v0 = vmov 0   ;;  %s5065_s29 = sld [smem:[#allocation29_spill]]  ;;  %s5066_s25 = sld [smem:[#allocation30_spill]]  ;;  %v225_v37 = vlaneseq }
  0xdb   :  { %3658 = vset.pattern.permute.xlu0 %v4449_v0  ;;  %616 = vmatprep.mubr.bf16.mxu0 %v4449_v0  ;;  %v3659_v3 = vld [vmem:[#allocation8 + $0x4] ss:$16 sps:$4 sm:$0xff]   ;;  %v3661_v4 = vld [vmem:[#allocation8 + $0xc] ss:$16 sps:$4 sm:$0xff]   ;;  %v3663_v5 = vld [vmem:[#allocation8] ss:$16 sps:$4 sm:$0xff]  }
  0xdc   :  { %657 = vmatprep.mubr.bf16.mxu1 %v4449_v0  ;;  %v3664_v6 = vld [vmem:[#allocation8 + $0x8] ss:$16 sps:$4 sm:$0xff]   ;;  %584 = vmatprep.subr.bf16.mxu0 %v3659_v3  ;;  %v3665_v7 = vld [vmem:[#allocation8 + $0x24] ss:$16 sps:$4 sm:$0xff]   ;;  %v3667_v8 = vld [vmem:[#allocation8 + $0x2c] ss:$16 sps:$4 sm:$0xff]  }
  0xdd   :  { %625 = vmatprep.subr.bf16.mxu1 %v3661_v4  ;;  %585 = vmatpush1.bf16.msra.mxu0 %v3663_v5  ;;  %v3669_v9 = vld [vmem:[#allocation8 + $0x20] ss:$16 sps:$4 sm:$0xff]   ;;  %v3670_v10 = vld [vmem:[#allocation8 + $0x28] ss:$16 sps:$4 sm:$0xff]   ;;  %v3671_v11 = vld [vmem:[#allocation8 + $0x44] ss:$16 sps:$4 sm:$0xff]  }
  0xde   :  { %626 = vmatpush1.bf16.msra.mxu1 %v3664_v6  ;;  %586 = vmatprep.subr.bf16.mxu0 %v3665_v7  ;;  %v3673_v12 = vld [vmem:[#allocation8 + $0x4c] ss:$16 sps:$4 sm:$0xff]   ;;  %v3675_v13 = vld [vmem:[#allocation8 + $0x40] ss:$16 sps:$4 sm:$0xff]   ;;  %v3676_v14 = vld [vmem:[#allocation8 + $0x48] ss:$16 sps:$4 sm:$0xff]  }
  0xdf   :  { %627 = vmatprep.subr.bf16.mxu1 %v3667_v8  ;;  %v3677_v15 = vld [vmem:[#allocation8 + $0x64] ss:$16 sps:$4 sm:$0xff]   ;;  %v3679_v16 = vld [vmem:[#allocation8 + $0x6c] ss:$16 sps:$4 sm:$0xff]   ;;  %v3681_v17 = vld [vmem:[#allocation8 + $0x60] ss:$16 sps:$4 sm:$0xff]  }
  0xe0   :  { %v217_v1 = vld [vmem:[%s5065_s29] sm:$0xff]  ;;  %v3682_v18 = vld [vmem:[#allocation8 + $0x68] ss:$16 sps:$4 sm:$0xff]   ;;  %v3685_v20 = vld [vmem:[#allocation8 + $0x8c] ss:$16 sps:$4 sm:$0xff]   ;;  %v226_v38 = vshrl.u32 %v225_v37, 7 }
  0xe1   :  { %221 = vperm.xlu0 %3658, %v217_v1   ;;  %v218_v2 = vld [vmem:[%s5066_s25] sm:$0xff]  ;;  %587 = vmatpush1.bf16.msra.mxu0 %v3669_v9  ;;  %v3688_v22 = vld [vmem:[#allocation8 + $0x88] ss:$16 sps:$4 sm:$0xff]   ;;  %v3691_v24 = vld [vmem:[#allocation8 + $0xac] ss:$16 sps:$4 sm:$0xff]   ;;  %s5067_s27 = sld [smem:[#allocation32_spill]] }
  0xe2   :  { %628 = vmatpush1.bf16.msra.mxu1 %v3670_v10  ;;  %588 = vmatprep.subr.bf16.mxu0 %v3671_v11  ;;  %v3683_v19 = vld [vmem:[#allocation8 + $0x84] ss:$16 sps:$4 sm:$0xff]   ;;  %v3687_v21 = vld [vmem:[#allocation8 + $0x80] ss:$16 sps:$4 sm:$0xff]   ;;  %v3694_v26 = vld [vmem:[#allocation8 + $0xa8] ss:$16 sps:$4 sm:$0xff]  }
  0xe3   :  { %629 = vmatprep.subr.bf16.mxu1 %v3673_v12  ;;  %v3689_v23 = vld [vmem:[#allocation8 + $0xa4] ss:$16 sps:$4 sm:$0xff]   ;;  %v3693_v25 = vld [vmem:[#allocation8 + $0xa0] ss:$16 sps:$4 sm:$0xff]   ;;  %v3697_v28 = vld [vmem:[#allocation8 + $0xcc] ss:$16 sps:$4 sm:$0xff]  }
  0xe4   :  { %v3695_v27 = vld [vmem:[#allocation8 + $0xc4] ss:$16 sps:$4 sm:$0xff]   ;;  %v3699_v29 = vld [vmem:[#allocation8 + $0xc0] ss:$16 sps:$4 sm:$0xff]   ;;  %v3700_v30 = vld [vmem:[#allocation8 + $0xc8] ss:$16 sps:$4 sm:$0xff]  }
  0xe5   :  { %297 = vperm.xlu0 %3658, %v218_v2   ;;  %589 = vmatpush1.bf16.msra.mxu0 %v3675_v13  ;;  %v3701_v31 = vld [vmem:[#allocation8 + $0xe4] ss:$16 sps:$4 sm:$0xff]   ;;  %v3703_v32 = vld [vmem:[#allocation8 + $0xec] ss:$16 sps:$4 sm:$0xff]   ;;  %v3705_v33 = vld [vmem:[#allocation8 + $0xe0] ss:$16 sps:$4 sm:$0xff]  }
  0xe6   :  { %630 = vmatpush1.bf16.msra.mxu1 %v3676_v14  ;;  %590 = vmatprep.subr.bf16.mxu0 %v3677_v15  ;;  %v3706_v34 = vld [vmem:[#allocation8 + $0xe8] ss:$16 sps:$4 sm:$0xff]   ;;  %v3709_v35 = vld [vmem:[#allocation11 + $0x4] ss:$16 sps:$4 sm:$0xff]   ;;  %v3712_v36 = vld [vmem:[#allocation11 + $0xc] ss:$16 sps:$4 sm:$0xff]  }
  0xe7   :  { %631 = vmatprep.subr.bf16.mxu1 %v3679_v16  ;;  %v4744_v39 = vsub.s32 0, %v226_v38  ;;  %v4746_v40 = vsub.s32 1, %v226_v38  ;;  %v211_v41 = vld [vmem:[%s5067_s27] sm:$0xf]  ;;  %v4751_v42 = vsub.s32 2, %v226_v38  ;;  %s5068_s30 = sld [smem:[#allocation33_spill]] }
  0xe8   :  { %v4762_v46 = vsub.s32 3, %v226_v38  ;;  %v212_v50 = vld [vmem:[%s5038_s8] sm:$0xf] }
  0xe9   :  { %591 = vmatpush1.bf16.msra.mxu0 %v3681_v17  ;;  %v4757_v44 = vrot.slane %v211_v41, %v4744_v39  ;;  %v4760_v45 = vrot.slane %v211_v41, %v4746_v40  ;;  %v4765_v47 = vrot.slane %v211_v41, %v4751_v42  ;;  %v214_v54 = vld [vmem:[%s5039_s9] sm:$0xf]  ;;  %v4785_v56 = vrot.slane %v212_v50, %v4744_v39 }
  0xea   :  { %632 = vmatpush1.bf16.msra.mxu1 %v3682_v18  ;;  %592 = vmatprep.subr.bf16.mxu0 %v3683_v19  ;;  %v4782_v55 = vrot.slane %v211_v41, %v4762_v46  ;;  %v4788_v57 = vrot.slane %v212_v50, %v4746_v40  ;;  %v4797_v63 = vrot.slane %v212_v50, %v4751_v42 }
  0xeb   :  { %633 = vmatprep.subr.bf16.mxu1 %v3685_v20  ;;  %v4800_v1 = vrot.slane %v214_v54, %v4744_v39  ;;  %v4803_v2 = vrot.slane %v214_v54, %v4746_v40  ;;  %v4809_v6 = vrot.slane %v212_v50, %v4762_v46  ;;  %v4816_v11 = vrot.slane %v214_v54, %v4751_v42 }
  0xec   :  { %v4824_v19 = vrot.slane %v214_v54, %v4762_v46 }
  0xed   :  { %593 = vmatpush1.bf16.msra.mxu0 %v3687_v21  ;;  %v213_v43 = vld [vmem:[%s5068_s30] sm:$0xf] }
  0xee   :  { %634 = vmatpush1.bf16.msra.mxu1 %v3688_v22  ;;  %594 = vmatprep.subr.bf16.mxu0 %v3689_v23  ;;  %v4768_v48 = vrot.slane %v213_v43, %v4744_v39  ;;  %v4771_v49 = vrot.slane %v213_v43, %v4746_v40  ;;  %v4792_v59 = vrot.slane %v213_v43, %v4751_v42 }
  0xef   :  { %635 = vmatprep.subr.bf16.mxu1 %v3691_v24  ;;  %v4806_v5 = vrot.slane %v213_v43, %v4762_v46 }
  0xf1   :  { %595 = vmatpush1.bf16.msra.mxu0 %v3693_v25 }
  0xf2   :  { %636 = vmatpush1.bf16.msra.mxu1 %v3694_v26  ;;  %596 = vmatprep.subr.bf16.mxu0 %v3695_v27 }
  0xf3   :  { %637 = vmatprep.subr.bf16.mxu1 %v3697_v28 }
  0xf5   :  { %597 = vmatpush1.bf16.msra.mxu0 %v3699_v29 }
  0xf6   :  { %638 = vmatpush1.bf16.msra.mxu1 %v3700_v30  ;;  %598 = vmatprep.subr.bf16.mxu0 %v3701_v31 }
  0xf7   :  { %639 = vmatprep.subr.bf16.mxu1 %v3703_v32 }
  0xf9   :  { %599 = vmatpush1.bf16.msra.mxu0 %v3705_v33 }
  0xfa   :  { %640 = vmatpush1.bf16.msra.mxu1 %v3706_v34  ;;  %900 = vmatprep.subr.bf16.mxu0 %v3709_v35 }
  0xfb   :  { %941 = vmatprep.subr.bf16.mxu1 %v3712_v36 }
 0x160   :  { %v222_v51 = vpop.permute.xlu0 %221 }
 0x161   :  { %v245_v52 = vmul.f32 %v4757_v44, %v222_v51  ;;  %v246_v53 = vmul.f32 %v4760_v45, %v222_v51  ;;  %v247_v58 = vmul.f32 %v4765_v47, %v222_v51  ;;  %v248_v9 = vmul.f32 %v4782_v55, %v222_v51 }
 0x163   :  { %v270_v60 = vadd.f32 %v4768_v48, %v245_v52  ;;  %v271_v61 = vadd.f32 %v4771_v49, %v246_v53  ;;  %v272_v10 = vadd.f32 %v4792_v59, %v247_v58  ;;  %v273_v17 = vadd.f32 %v4806_v5, %v248_v9  ;;  %v3715_v9 = vld [vmem:[#allocation11 + $0x24] ss:$16 sps:$4 sm:$0xff]  }
 0x164   :  { %v298_v62 = vpop.permute.xlu0 %297 }
 0x165   :  { %v274_v3 = vmul.f32 0.5, %v270_v60  ;;  %v278_v4 = vmul.f32 0.5, %v271_v61  ;;  %v321_v7 = vmul.f32 %v4785_v56, %v298_v62  ;;  %v322_v8 = vmul.f32 %v4788_v57, %v298_v62 }
 0x166   :  { %v323_v12 = vmul.f32 %v4797_v63, %v298_v62  ;;  %v324_v18 = vmul.f32 %v4809_v6, %v298_v62  ;;  %v283_v21 = vmul.f32 0.5, %v273_v17  ;;  %v3721_v17 = vld [vmem:[#allocation11 + $0x44] ss:$16 sps:$4 sm:$0xff]  }
 0x167   :  { %3755 = vtanh.f32 %v274_v3  ;;  %v346_v13 = vadd.f32 %v4800_v1, %v321_v7  ;;  %v347_v14 = vadd.f32 %v4803_v2, %v322_v8  ;;  %v3710_v7 = vld [vmem:[#allocation11 + $0x8] ss:$16 sps:$4 sm:$0xff]  }
 0x168   :  { %3757 = vtanh.f32 %v278_v4  ;;  %v348_v20 = vadd.f32 %v4816_v11, %v323_v12  ;;  %v349_v22 = vadd.f32 %v4824_v19, %v324_v18  ;;  %v3707_v4 = vld [vmem:[#allocation11] ss:$16 sps:$4 sm:$0xff]   ;;  %v3724_v18 = vld [vmem:[#allocation11 + $0x4c] ss:$16 sps:$4 sm:$0xff]  }
 0x169   :  { %v350_v15 = vmul.f32 0.5, %v346_v13  ;;  %v354_v16 = vmul.f32 0.5, %v347_v14  ;;  %3759 = vtanh.f32 %v272_v10  ;;  %v3718_v10 = vld [vmem:[#allocation11 + $0x2c] ss:$16 sps:$4 sm:$0xff]   ;;  %v3713_v14 = vld [vmem:[#allocation11 + $0x20] ss:$16 sps:$4 sm:$0xff]  }
 0x16a   :  { %v359_v28 = vmul.f32 0.5, %v349_v22  ;;  %v3722_v22 = vld [vmem:[#allocation11 + $0x48] ss:$16 sps:$4 sm:$0xff]  }
 0x16b   :  { %3761 = vtanh.f32 %v350_v15  ;;  %v3716_v15 = vld [vmem:[#allocation11 + $0x28] ss:$16 sps:$4 sm:$0xff]  }
 0x16c   :  { %3763 = vtanh.f32 %v354_v16 }
 0x16d   :  { %3765 = vtanh.f32 %v348_v20 }
 0x16e   :  { %3767 = vtanh.f32 %v283_v21  ;;  %v3719_v21 = vld [vmem:[#allocation11 + $0x40] ss:$16 sps:$4 sm:$0xff]  }
 0x16f   :  { %3769 = vtanh.f32 %v359_v28  ;;  %v3736_v28 = vld [vmem:[#allocation11 + $0x8c] ss:$16 sps:$4 sm:$0xff]  }
 0x171   :  { %v3756_v23 = vpop.eup %3755 }
 0x172   :  { %v3758_v24 = vpop.eup %3757  ;;  %v276_v25 = vmul.f32 0.5, %v3756_v23  ;;  %v3727_v23 = vld [vmem:[#allocation11 + $0x64] ss:$16 sps:$4 sm:$0xff]  }
 0x173   :  { %v280_v26 = vmul.f32 0.5, %v3758_v24  ;;  %v3760_v29 = vpop.eup %3759  ;;  %v3730_v24 = vld [vmem:[#allocation11 + $0x6c] ss:$16 sps:$4 sm:$0xff]  }
 0x174   :  { %v277_v27 = vadd.f32 0.5, %v276_v25  ;;  %v3725_v25 = vld [vmem:[#allocation11 + $0x60] ss:$16 sps:$4 sm:$0xff]  }
 0x175   :  { %v281_v30 = vadd.f32 0.5, %v280_v26  ;;  %v3762_v31 = vpop.eup %3761  ;;  %v3728_v26 = vld [vmem:[#allocation11 + $0x68] ss:$16 sps:$4 sm:$0xff]  }
 0x176   :  { %v288_v32 = vmul.f32 %v3760_v29, %v277_v27  ;;  %v3764_v33 = vpop.eup %3763  ;;  %v352_v35 = vmul.f32 0.5, %v3762_v31  ;;  %v3733_v27 = vld [vmem:[#allocation11 + $0x84] ss:$16 sps:$4 sm:$0xff]   ;;  %v3731_v29 = vld [vmem:[#allocation11 + $0x80] ss:$16 sps:$4 sm:$0xff]  }
 0x177   :  { %v287_v34 = vmul.f32 0.0, %v281_v30  ;;  %v356_v36 = vmul.f32 0.5, %v3764_v33  ;;  %v3766_v41 = vpop.eup %3765  ;;  %v3734_v30 = vld [vmem:[#allocation11 + $0x88] ss:$16 sps:$4 sm:$0xff]   ;;  %v3739_v31 = vld [vmem:[#allocation11 + $0xa4] ss:$16 sps:$4 sm:$0xff]  }
 0x178   :  { %v353_v38 = vadd.f32 0.5, %v352_v35  ;;  %v3768_v52 = vpop.eup %3767  ;;  %v3737_v33 = vld [vmem:[#allocation11 + $0xa0] ss:$16 sps:$4 sm:$0xff]   ;;  %v3745_v35 = vld [vmem:[#allocation11 + $0xc4] ss:$16 sps:$4 sm:$0xff]  }
 0x179   :  { %v289_v37 = vadd.f32 %v288_v32, %v287_v34  ;;  %v357_v43 = vadd.f32 0.5, %v356_v36  ;;  %v285_v54 = vmul.f32 0.5, %v3768_v52  ;;  %v3770_v58 = vpop.eup %3769  ;;  %v3742_v32 = vld [vmem:[#allocation11 + $0xac] ss:$16 sps:$4 sm:$0xff]   ;;  %v3740_v34 = vld [vmem:[#allocation11 + $0xa8] ss:$16 sps:$4 sm:$0xff]  }
 0x17a   :  { %v364_v50 = vmul.f32 %v3766_v41, %v353_v38  ;;  %v361_v62 = vmul.f32 0.5, %v3770_v58  ;;  %v3748_v36 = vld [vmem:[#allocation11 + $0xcc] ss:$16 sps:$4 sm:$0xff]   ;;  %v3746_v38 = vld [vmem:[#allocation11 + $0xc8] ss:$16 sps:$4 sm:$0xff]  }
 0x17b   :  { %294 = vst [vmem:[#allocation4] sm:$0xff] %v289_v37  ;;  %3771 = vtanh.f32 %v289_v37  ;;  %v363_v51 = vmul.f32 0.0, %v357_v43  ;;  %v286_v60 = vadd.f32 0.5, %v285_v54  ;;  %v3743_v37 = vld [vmem:[#allocation11 + $0xc0] ss:$16 sps:$4 sm:$0xff]  }
 0x17c   :  { %v362_v12 = vadd.f32 0.5, %v361_v62  ;;  %v3751_v41 = vld [vmem:[#allocation11 + $0xe4] ss:$16 sps:$4 sm:$0xff]   ;;  %v3754_v43 = vld [vmem:[#allocation11 + $0xec] ss:$16 sps:$4 sm:$0xff]  }
 0x17d   :  { %v365_v53 = vadd.f32 %v364_v50, %v363_v51  ;;  %v3749_v50 = vld [vmem:[#allocation11 + $0xe0] ss:$16 sps:$4 sm:$0xff]   ;;  %v3752_v51 = vld [vmem:[#allocation11 + $0xe8] ss:$16 sps:$4 sm:$0xff]  }
 0x17e   :  { %v215_v52 = vld [vmem:[%s5037_s7] sm:$0xf]  ;;  %s4865_s7 = smov 0  }
 0x17f   :  { %3773 = vtanh.f32 %v365_v53  ;;  %370 = vst [vmem:[#allocation5] sm:$0xff] %v365_v53  ;;  %v4834_v53 = vrot.slane %v215_v52, %v4744_v39  ;;  %v4837_v54 = vrot.slane %v215_v52, %v4746_v40  ;;  %v4841_v62 = vrot.slane %v215_v52, %v4751_v42 }
 0x185   :  { %v3772_v61 = vpop.eup %3771 }
 0x186   :  { %v291_v3 = vmul.f32 %v3772_v61, %v286_v60 }
 0x188   :  { %v292_v8 = vpack.c.bf16 %v291_v3, %v291_v3 }
 0x189   :  { %v3774_v13 = vpop.eup %3773 }
 0x18a   :  { %293 = vst [vmem:[#allocation2] sm:$0xf] %v292_v8  ;;  %617 = vmatmul.mubr.bf16.vlgmr.msra.gmra.mrb[0].mxu0 %v292_v8  ;;  %658 = vmatmul.mubr.bf16.vlgmr.msra.gmra.mrb[0].mxu1 %v292_v8  ;;  %v367_v16 = vmul.f32 %v3774_v13, %v362_v12 }
 0x18b   :  { %901 = vmatpush1.bf16.msra.mxu0 %v3707_v4  ;;  %942 = vmatpush1.bf16.msra.mxu1 %v3710_v7 }
 0x18c   :  { %902 = vmatprep.subr.bf16.mxu0 %v3715_v9  ;;  %943 = vmatprep.subr.bf16.mxu1 %v3718_v10  ;;  %v368_v20 = vpack.c.bf16 %v367_v16, %v367_v16  ;;  %v4846_v16 = vrot.slane %v215_v52, %v4762_v46 }
 0x18d   :  { %932 = vmatprep.mubr.bf16.mxu0 %v4449_v0  ;;  %973 = vmatprep.mubr.bf16.mxu1 %v4449_v0 }
 0x18e   :  { %369 = vst [vmem:[#allocation3] sm:$0xf] %v368_v20 }
 0x18f   :  { %903 = vmatpush1.bf16.msra.mxu0 %v3713_v14  ;;  %944 = vmatpush1.bf16.msra.mxu1 %v3716_v15 }
 0x190   :  { %904 = vmatprep.subr.bf16.mxu0 %v3721_v17  ;;  %945 = vmatprep.subr.bf16.mxu1 %v3724_v18 }
 0x193   :  { %905 = vmatpush1.bf16.msra.mxu0 %v3719_v21  ;;  %946 = vmatpush1.bf16.msra.mxu1 %v3722_v22 }
 0x194   :  { %906 = vmatprep.subr.bf16.mxu0 %v3727_v23  ;;  %947 = vmatprep.subr.bf16.mxu1 %v3730_v24 }
 0x197   :  { %907 = vmatpush1.bf16.msra.mxu0 %v3725_v25  ;;  %948 = vmatpush1.bf16.msra.mxu1 %v3728_v26 }
 0x198   :  { %908 = vmatprep.subr.bf16.mxu0 %v3733_v27  ;;  %949 = vmatprep.subr.bf16.mxu1 %v3736_v28 }
 0x19b   :  { %909 = vmatpush1.bf16.msra.mxu0 %v3731_v29  ;;  %950 = vmatpush1.bf16.msra.mxu1 %v3734_v30  ;;  %v216_v30 = vld [vmem:[#allocation13] sm:$0xf] }
 0x19c   :  { %910 = vmatprep.subr.bf16.mxu0 %v3739_v31  ;;  %951 = vmatprep.subr.bf16.mxu1 %v3742_v32  ;;  %v4850_v32 = vrot.slane %v216_v30, %v4744_v39 }
 0x19f   :  { %911 = vmatpush1.bf16.msra.mxu0 %v3737_v33  ;;  %952 = vmatpush1.bf16.msra.mxu1 %v3740_v34  ;;  %v4853_v34 = vrot.slane %v216_v30, %v4746_v40 }
 0x1a0   :  { %912 = vmatprep.subr.bf16.mxu0 %v3745_v35  ;;  %953 = vmatprep.subr.bf16.mxu1 %v3748_v36 }
 0x1a3   :  { %913 = vmatpush1.bf16.msra.mxu0 %v3743_v37  ;;  %954 = vmatpush1.bf16.msra.mxu1 %v3746_v38  ;;  %v4857_v38 = vrot.slane %v216_v30, %v4751_v42 }
 0x1a4   :  { %914 = vmatprep.subr.bf16.mxu0 %v3751_v41  ;;  %955 = vmatprep.subr.bf16.mxu1 %v3754_v43 }
 0x1a7   :  { %915 = vmatpush1.bf16.msra.mxu0 %v3749_v50  ;;  %956 = vmatpush1.bf16.msra.mxu1 %v3752_v51 }
 0x1aa   :  { %933 = vmatmul.mubr.bf16.vlgmr.msra.gmra.mrb[4].mxu0 %v368_v20  ;;  %974 = vmatmul.mubr.bf16.vlgmr.msra.gmra.mrb[4].mxu1 %v368_v20 }
 0x25d   :  { %v618_v58 = vpop.f32.mrb[0].mxu0  ;;  %v659_v60 = vpop.f32.mrb[0].mxu1 }
 0x25e   :  { %v619_v61 = vadd.f32 %v618_v58, %v4834_v53  ;;  %v620_v3 = vpop.f32.mrb[1].mxu0  ;;  %v661_v4 = vpop.f32.mrb[1].mxu1  ;;  %v660_v15 = vadd.f32 %v659_v60, %v4841_v62 }
 0x25f   :  { %v621_v7 = vadd.f32 %v620_v3, %v4837_v54  ;;  %v622_v8 = vpop.f32.mrb[2].mxu0  ;;  %v663_v9 = vpop.f32.mrb[2].mxu1  ;;  %v662_v17 = vadd.f32 %v661_v4, %v4846_v16 }
 0x260   :  { %v666_v10 = vmul.f32 0.5, %v619_v61  ;;  %v623_v12 = vpop.f32.mrb[3].mxu0  ;;  %v664_v13 = vpop.f32.mrb[3].mxu1 }
 0x261   :  { %v670_v14 = vmul.f32 0.5, %v621_v7  ;;  %v675_v18 = vmul.f32 0.5, %v662_v17 }
 0x262   :  { %3775 = vtanh.f32 %v666_v10  ;;  %v4862_v10 = vrot.slane %v216_v30, %v4762_v46 }
 0x263   :  { %3777 = vtanh.f32 %v670_v14 }
 0x264   :  { %3779 = vtanh.f32 %v660_v15 }
 0x265   :  { %3781 = vtanh.f32 %v675_v18 }
 0x26c   :  { %v3776_v20 = vpop.eup %3775 }
 0x26d   :  { %v3778_v21 = vpop.eup %3777  ;;  %v668_v22 = vmul.f32 0.5, %v3776_v20 }
 0x26e   :  { %v672_v23 = vmul.f32 0.5, %v3778_v21  ;;  %v3780_v25 = vpop.eup %3779 }
 0x26f   :  { %v669_v24 = vadd.f32 0.5, %v668_v22  ;;  %v3782_v31 = vpop.eup %3781 }
 0x270   :  { %v673_v26 = vadd.f32 0.5, %v672_v23  ;;  %v677_v33 = vmul.f32 0.5, %v3782_v31 }
 0x271   :  { %v680_v27 = vmul.f32 %v3780_v25, %v669_v24 }
 0x272   :  { %v679_v28 = vmul.f32 0.0, %v673_v26  ;;  %v678_v50 = vadd.f32 0.5, %v677_v33 }
 0x274   :  { %v681_v29 = vadd.f32 %v680_v27, %v679_v28 }
 0x276   :  { %3783 = vtanh.f32 %v681_v29  ;;  %686 = vst [vmem:[#allocation4 + $0x8] sm:$0xff] %v681_v29 }
 0x27d   :  { %v934_v35 = vpop.f32.mrb[4].mxu0  ;;  %v975_v36 = vpop.f32.mrb[4].mxu1 }
 0x27e   :  { %v935_v37 = vadd.f32 %v934_v35, %v4850_v32  ;;  %v936_v41 = vpop.f32.mrb[5].mxu0  ;;  %v977_v43 = vpop.f32.mrb[5].mxu1  ;;  %v976_v9 = vadd.f32 %v975_v36, %v4857_v38 }
 0x27f   :  { %v937_v51 = vadd.f32 %v936_v41, %v4853_v34  ;;  %v938_v52 = vpop.f32.mrb[6].mxu0  ;;  %v979_v58 = vpop.f32.mrb[6].mxu1  ;;  %v978_v13 = vadd.f32 %v977_v43, %v4862_v10 }
 0x280   :  { %v3784_v60 = vpop.eup %3783  ;;  %v982_v61 = vmul.f32 0.5, %v935_v37  ;;  %v939_v3 = vpop.f32.mrb[7].mxu0 }
 0x281   :  { %v980_v4 = vpop.f32.mrb[7].mxu1  ;;  %v683_v7 = vmul.f32 %v3784_v60, %v678_v50  ;;  %v986_v8 = vmul.f32 0.5, %v937_v51  ;;  %v991_v14 = vmul.f32 0.5, %v978_v13 }
 0x282   :  { %3785 = vtanh.f32 %v982_v61 }
 0x283   :  { %v684_v12 = vpack.c.bf16 %v683_v7, %v683_v7  ;;  %3787 = vtanh.f32 %v986_v8 }
 0x284   :  { %3789 = vtanh.f32 %v976_v9 }
 0x285   :  { %685 = vst [vmem:[#allocation2 + $0x4] sm:$0xf] %v684_v12  ;;  %3791 = vtanh.f32 %v991_v14 }
 0x28c   :  { %v3786_v15 = vpop.eup %3785 }
 0x28d   :  { %v3788_v17 = vpop.eup %3787  ;;  %v984_v18 = vmul.f32 0.5, %v3786_v15 }
 0x28e   :  { %v988_v20 = vmul.f32 0.5, %v3788_v17  ;;  %v3790_v22 = vpop.eup %3789 }
 0x28f   :  { %v985_v21 = vadd.f32 0.5, %v984_v18  ;;  %v3792_v46 = vpop.eup %3791 }
 0x290   :  { %v989_v23 = vadd.f32 0.5, %v988_v20  ;;  %v993_v27 = vmul.f32 0.5, %v3792_v46 }
 0x291   :  { %v996_v24 = vmul.f32 %v3790_v22, %v985_v21 }
 0x292   :  { %v995_v25 = vmul.f32 0.0, %v989_v23  ;;  %v994_v28 = vadd.f32 0.5, %v993_v27 }
 0x294   :  { %v997_v26 = vadd.f32 %v996_v24, %v995_v25 }
 0x296   :  { %3793 = vtanh.f32 %v997_v26  ;;  %1002 = vst [vmem:[#allocation5 + $0x8] sm:$0xff] %v997_v26 }
 0x2a0   :  { %v3794_v29 = vpop.eup %3793 }
 0x2a1   :  { %v999_v30 = vmul.f32 %v3794_v29, %v994_v28 }
 0x2a3   :  { %v1000_v31 = vpack.c.bf16 %v999_v30, %v999_v30 }
 0x2a5   :  { %1001 = vst [vmem:[#allocation3 + $0x4] sm:$0xf] %v1000_v31 }
 0x2a6 LB: > { %v3796_v33 = vld [vmem:[#allocation6 + $0x4] ss:$16 sps:$4 sm:$0xff]   ;;  %v3798_v35 = vld [vmem:[#allocation6 + $0xc] ss:$16 sps:$4 sm:$0xff]   ;;  %v4450_v36 = vmov 0   ;;  %s3276_s28 = sshll.u32 %s4432_s7, 3  ;;  %s4432_s7 = sphi %s4865_s7, %s1008_s7  }
 0x2a7   : > { %1253 = vmatprep.mubr.bf16.mxu0 %v4450_v36  ;;  %1294 = vmatprep.mubr.bf16.mxu1 %v4450_v36  ;;  %v3800_v37 = vld [vmem:[#allocation6] ss:$16 sps:$4 sm:$0xff]   ;;  %v3801_v41 = vld [vmem:[#allocation6 + $0x8] ss:$16 sps:$4 sm:$0xff]   ;;  %v3802_v43 = vld [vmem:[#allocation6 + $0x24] ss:$16 sps:$4 sm:$0xff]  }
 0x2a8   : > { %1221 = vmatprep.subr.bf16.mxu0 %v3796_v33  ;;  %3795 = vset.pattern.permute.xlu0 %v4450_v36  ;;  %v3804_v50 = vld [vmem:[#allocation6 + $0x2c] ss:$16 sps:$4 sm:$0xff]   ;;  %v3806_v51 = vld [vmem:[#allocation6 + $0x20] ss:$16 sps:$4 sm:$0xff]   ;;  %v3807_v52 = vld [vmem:[#allocation6 + $0x28] ss:$16 sps:$4 sm:$0xff]  }
 0x2a9   : > { %1262 = vmatprep.subr.bf16.mxu1 %v3798_v35  ;;  %1222 = vmatpush1.bf16.msra.mxu0 %v3800_v37  ;;  %v3808_v58 = vld [vmem:[#allocation6 + $0x44] ss:$16 sps:$4 sm:$0xff]   ;;  %v3810_v60 = vld [vmem:[#allocation6 + $0x4c] ss:$16 sps:$4 sm:$0xff]   ;;  %v3812_v61 = vld [vmem:[#allocation6 + $0x40] ss:$16 sps:$4 sm:$0xff]  }
 0x2aa   : > { %1263 = vmatpush1.bf16.msra.mxu1 %v3801_v41  ;;  %1223 = vmatprep.subr.bf16.mxu0 %v3802_v43  ;;  %v3813_v3 = vld [vmem:[#allocation6 + $0x48] ss:$16 sps:$4 sm:$0xff]   ;;  %v3814_v4 = vld [vmem:[#allocation6 + $0x64] ss:$16 sps:$4 sm:$0xff]   ;;  %v3816_v7 = vld [vmem:[#allocation6 + $0x6c] ss:$16 sps:$4 sm:$0xff]  }
 0x2ab   : > { %1264 = vmatprep.subr.bf16.mxu1 %v3804_v50  ;;  %v3818_v8 = vld [vmem:[#allocation6 + $0x60] ss:$16 sps:$4 sm:$0xff]   ;;  %v3819_v9 = vld [vmem:[#allocation6 + $0x68] ss:$16 sps:$4 sm:$0xff]   ;;  %v3820_v12 = vld [vmem:[#allocation6 + $0x84] ss:$16 sps:$4 sm:$0xff]  }
 0x2ac   : > { %v3822_v13 = vld [vmem:[#allocation6 + $0x8c] ss:$16 sps:$4 sm:$0xff]   ;;  %v3824_v14 = vld [vmem:[#allocation6 + $0x80] ss:$16 sps:$4 sm:$0xff]   ;;  %v3825_v15 = vld [vmem:[#allocation6 + $0x88] ss:$16 sps:$4 sm:$0xff]  }
 0x2ad   : > { %1224 = vmatpush1.bf16.msra.mxu0 %v3806_v51  ;;  %v3826_v17 = vld [vmem:[#allocation6 + $0xa4] ss:$16 sps:$4 sm:$0xff]   ;;  %v3828_v18 = vld [vmem:[#allocation6 + $0xac] ss:$16 sps:$4 sm:$0xff]   ;;  %v3830_v20 = vld [vmem:[#allocation6 + $0xa0] ss:$16 sps:$4 sm:$0xff]  }
 0x2ae   : > { %1265 = vmatpush1.bf16.msra.mxu1 %v3807_v52  ;;  %1225 = vmatprep.subr.bf16.mxu0 %v3808_v58  ;;  %v3831_v21 = vld [vmem:[#allocation6 + $0xa8] ss:$16 sps:$4 sm:$0xff]   ;;  %v3832_v22 = vld [vmem:[#allocation6 + $0xc4] ss:$16 sps:$4 sm:$0xff]   ;;  %v3834_v23 = vld [vmem:[#allocation6 + $0xcc] ss:$16 sps:$4 sm:$0xff]  }
 0x2af   : > { %1266 = vmatprep.subr.bf16.mxu1 %v3810_v60  ;;  %v3836_v24 = vld [vmem:[#allocation6 + $0xc0] ss:$16 sps:$4 sm:$0xff]   ;;  %v3837_v25 = vld [vmem:[#allocation6 + $0xc8] ss:$16 sps:$4 sm:$0xff]   ;;  %v3838_v26 = vld [vmem:[#allocation6 + $0xe4] ss:$16 sps:$4 sm:$0xff]  }
 0x2b0   : > { %v3840_v46 = vld [vmem:[#allocation6 + $0xec] ss:$16 sps:$4 sm:$0xff]   ;;  %v3842_v27 = vld [vmem:[#allocation6 + $0xe0] ss:$16 sps:$4 sm:$0xff]   ;;  %v3843_v28 = vld [vmem:[#allocation6 + $0xe8] ss:$16 sps:$4 sm:$0xff]  }
 0x2b1   : > { %1226 = vmatpush1.bf16.msra.mxu0 %v3812_v61  ;;  %v3846_v29 = vld [vmem:[#allocation10 + $0x4] ss:$16 sps:$4 sm:$0xff]   ;;  %v3849_v30 = vld [vmem:[#allocation10 + $0xc] ss:$16 sps:$4 sm:$0xff]   ;;  %v1028_v31 = vld [vmem:[#allocation2] sm:$0xf] }
 0x2b2   : > { %1267 = vmatpush1.bf16.msra.mxu1 %v3813_v3  ;;  %1227 = vmatprep.subr.bf16.mxu0 %v3814_v4  ;;  %v3844_v33 = vld [vmem:[#allocation10] ss:$16 sps:$4 sm:$0xff]   ;;  %v3847_v35 = vld [vmem:[#allocation10 + $0x8] ss:$16 sps:$4 sm:$0xff]   ;;  %v3852_v37 = vld [vmem:[#allocation10 + $0x24] ss:$16 sps:$4 sm:$0xff]  }
 0x2b3   : > { %1268 = vmatprep.subr.bf16.mxu1 %v3816_v7  ;;  %v3855_v41 = vld [vmem:[#allocation10 + $0x2c] ss:$16 sps:$4 sm:$0xff]   ;;  %v3850_v43 = vld [vmem:[#allocation10 + $0x20] ss:$16 sps:$4 sm:$0xff]   ;;  %v3853_v50 = vld [vmem:[#allocation10 + $0x28] ss:$16 sps:$4 sm:$0xff]  }
 0x2b4   : > { %v3858_v51 = vld [vmem:[#allocation10 + $0x44] ss:$16 sps:$4 sm:$0xff]   ;;  %v3861_v52 = vld [vmem:[#allocation10 + $0x4c] ss:$16 sps:$4 sm:$0xff]   ;;  %v3856_v58 = vld [vmem:[#allocation10 + $0x40] ss:$16 sps:$4 sm:$0xff]  }
 0x2b5   : > { %1228 = vmatpush1.bf16.msra.mxu0 %v3818_v8  ;;  %v3859_v60 = vld [vmem:[#allocation10 + $0x48] ss:$16 sps:$4 sm:$0xff]   ;;  %s5069_s12 = sld [smem:[#allocation29_spill]]  ;;  %v3864_v61 = vld [vmem:[#allocation10 + $0x64] ss:$16 sps:$4 sm:$0xff]   ;;  %s5070_s11 = sld [smem:[#allocation30_spill]] }
 0x2b6   : > { %1269 = vmatpush1.bf16.msra.mxu1 %v3819_v9  ;;  %1229 = vmatprep.subr.bf16.mxu0 %v3820_v12  ;;  %v3867_v3 = vld [vmem:[#allocation10 + $0x6c] ss:$16 sps:$4 sm:$0xff]   ;;  %v3862_v4 = vld [vmem:[#allocation10 + $0x60] ss:$16 sps:$4 sm:$0xff]   ;;  %v3865_v7 = vld [vmem:[#allocation10 + $0x68] ss:$16 sps:$4 sm:$0xff]  }
 0x2b7   : > { %1270 = vmatprep.subr.bf16.mxu1 %v3822_v13  ;;  %v3870_v9 = vld [vmem:[#allocation10 + $0x84] ss:$16 sps:$4 sm:$0xff]   ;;  %v3868_v12 = vld [vmem:[#allocation10 + $0x80] ss:$16 sps:$4 sm:$0xff]   ;;  %v3871_v13 = vld [vmem:[#allocation10 + $0x88] ss:$16 sps:$4 sm:$0xff]  }
 0x2b8   : > { %s1008_s7 = sadd.s32 1, %s4432_s7  }
 0x2b9   : > { %1230 = vmatpush1.bf16.msra.mxu0 %v3824_v14  ;;  %p1005_p4 = scmp.ge.s32.totalorder %s1008_s7, 4  }
 0x2ba   : > { %1271 = vmatpush1.bf16.msra.mxu1 %v3825_v15  ;;  %1231 = vmatprep.subr.bf16.mxu0 %v3826_v17  ;;  %v3876_v15 = vld [vmem:[#allocation10 + $0xa4] ss:$16 sps:$4 sm:$0xff]   ;;  %v3879_v17 = vld [vmem:[#allocation10 + $0xac] ss:$16 sps:$4 sm:$0xff]   ;;  %s5071_s24 = sld [smem:[#allocation31_spill]] (%p1005_p4)  ;;  %vm4454_vm0 = vmmov (%p1005_p4), 0  }
 0x2bb   : > { %1272 = vmatprep.subr.bf16.mxu1 %v3828_v18  ;;  %s3202_s18 = scalar_lea.vmem %s5069_s12, %s3276_s28  ;;  %s3205_s20 = scalar_lea.vmem %s5070_s11, %s3276_s28  ;;  %v3874_v18 = vld [vmem:[#allocation10 + $0xa0] ss:$16 sps:$4 sm:$0xff]  }
 0x2bc   : > { %v3277_v8 = vld [vmem:[%s3202_s18 + $0x8] sm:$0xff] }
 0x2bd   : > { %1232 = vmatpush1.bf16.msra.mxu0 %v3830_v20  ;;  %1017 = vperm.xlu0 %3795, %v3277_v8   ;;  %v3279_v14 = vld [vmem:[%s3205_s20 + $0x8] sm:$0xff] }
 0x2be   : > { %1273 = vmatpush1.bf16.msra.mxu1 %v3831_v21  ;;  %1233 = vmatprep.subr.bf16.mxu0 %v3832_v22  ;;  %v3877_v20 = vld [vmem:[#allocation10 + $0xa8] ss:$16 sps:$4 sm:$0xff]   ;;  %v3882_v21 = vld [vmem:[#allocation10 + $0xc4] ss:$16 sps:$4 sm:$0xff]   ;;  %v3885_v22 = vld [vmem:[#allocation10 + $0xcc] ss:$16 sps:$4 sm:$0xff]  }
 0x2bf   : > { %1274 = vmatprep.subr.bf16.mxu1 %v3834_v23  ;;  %v3880_v23 = vld [vmem:[#allocation10 + $0xc0] ss:$16 sps:$4 sm:$0xff]   ;;  %v3921_v8 = vld [vmem:[#allocation8 + $0x8c] ss:$16 sps:$4 sm:$0xff]  }
 0x2c1   : > { %1234 = vmatpush1.bf16.msra.mxu0 %v3836_v24  ;;  %1331 = vperm.xlu0 %3795, %v3279_v14   ;;  %v3883_v24 = vld [vmem:[#allocation10 + $0xc8] ss:$16 sps:$4 sm:$0xff]   ;;  %v3922_v14 = vld [vmem:[#allocation8 + $0xa0] ss:$16 sps:$4 sm:$0xff]  }
 0x2c2   : > { %1275 = vmatpush1.bf16.msra.mxu1 %v3837_v25  ;;  %1235 = vmatprep.subr.bf16.mxu0 %v3838_v26  ;;  %v3888_v25 = vld [vmem:[#allocation10 + $0xe4] ss:$16 sps:$4 sm:$0xff]   ;;  %v3891_v26 = vld [vmem:[#allocation10 + $0xec] ss:$16 sps:$4 sm:$0xff]  }
 0x2c3   : > { %1276 = vmatprep.subr.bf16.mxu1 %v3840_v46  ;;  %v3886_v46 = vld [vmem:[#allocation10 + $0xe0] ss:$16 sps:$4 sm:$0xff]  }
 0x2c5   : > { %1236 = vmatpush1.bf16.msra.mxu0 %v3842_v27  ;;  %v3889_v27 = vld [vmem:[#allocation10 + $0xe8] ss:$16 sps:$4 sm:$0xff]   ;;  %4128 = vset.pattern.permute.xlu0 (%p1005_p4), %v4449_v0  ;;  %v4136_v0 = vld [vmem:[%s5043_s13 + $0x50] sm:$0xff] (%p1005_p4)  }
 0x2c6   : > { %1277 = vmatpush1.bf16.msra.mxu1 %v3843_v28  ;;  %1535 = vmatprep.subr.bf16.mxu0 %v3846_v29  ;;  %v3894_v28 = vld [vmem:[#allocation8 + $0x4] ss:$16 sps:$4 sm:$0xff]   ;;  %v3897_v29 = vld [vmem:[#allocation8 + $0xc] ss:$16 sps:$4 sm:$0xff]  }
 0x2c7   : > { %1576 = vmatprep.subr.bf16.mxu1 %v3849_v30  ;;  %v1342_v30 = vld [vmem:[#allocation3] sm:$0xf] }
 0x2c8   : > { %1254 = vmatmul.mubr.bf16.vlgmr.msra.gmra.mrb[0].mxu0 %v1028_v31 }
 0x2c9   : > { %1295 = vmatmul.mubr.bf16.vlgmr.msra.gmra.mrb[0].mxu1 %v1028_v31  ;;  %1536 = vmatpush1.bf16.msra.mxu0 %v3844_v33  ;;  %v3892_v31 = vld [vmem:[#allocation8] ss:$16 sps:$4 sm:$0xff]   ;;  %v3895_v33 = vld [vmem:[#allocation8 + $0x8] ss:$16 sps:$4 sm:$0xff]  }
 0x2ca   : > { %1577 = vmatpush1.bf16.msra.mxu1 %v3847_v35  ;;  %1537 = vmatprep.subr.bf16.mxu0 %v3852_v37  ;;  %v3900_v35 = vld [vmem:[#allocation8 + $0x24] ss:$16 sps:$4 sm:$0xff]   ;;  %v3903_v37 = vld [vmem:[#allocation8 + $0x2c] ss:$16 sps:$4 sm:$0xff]  }
 0x2cb   : > { %1578 = vmatprep.subr.bf16.mxu1 %v3855_v41  ;;  %1567 = vmatprep.mubr.bf16.mxu0 %v4450_v36  ;;  %v3898_v41 = vld [vmem:[#allocation8 + $0x20] ss:$16 sps:$4 sm:$0xff]  }
 0x2cc   : > { %1608 = vmatprep.mubr.bf16.mxu1 %v4450_v36  ;;  %v3873_v36 = vld [vmem:[#allocation10 + $0x8c] ss:$16 sps:$4 sm:$0xff]  }
 0x2cd   : > { %1538 = vmatpush1.bf16.msra.mxu0 %v3850_v43  ;;  %v3901_v43 = vld [vmem:[#allocation8 + $0x28] ss:$16 sps:$4 sm:$0xff]  }
 0x2ce   : > { %1579 = vmatpush1.bf16.msra.mxu1 %v3853_v50  ;;  %1539 = vmatprep.subr.bf16.mxu0 %v3858_v51  ;;  %v3906_v50 = vld [vmem:[#allocation8 + $0x44] ss:$16 sps:$4 sm:$0xff]   ;;  %v3909_v51 = vld [vmem:[#allocation8 + $0x4c] ss:$16 sps:$4 sm:$0xff]  }
 0x2cf   : > { %1580 = vmatprep.subr.bf16.mxu1 %v3861_v52  ;;  %v3904_v52 = vld [vmem:[#allocation8 + $0x40] ss:$16 sps:$4 sm:$0xff]  }
 0x2d1   : > { %1540 = vmatpush1.bf16.msra.mxu0 %v3856_v58  ;;  %v3907_v58 = vld [vmem:[#allocation8 + $0x48] ss:$16 sps:$4 sm:$0xff]  }
 0x2d2   : > { %1581 = vmatpush1.bf16.msra.mxu1 %v3859_v60  ;;  %1541 = vmatprep.subr.bf16.mxu0 %v3864_v61  ;;  %v3912_v60 = vld [vmem:[#allocation8 + $0x64] ss:$16 sps:$4 sm:$0xff]   ;;  %v3915_v61 = vld [vmem:[#allocation8 + $0x6c] ss:$16 sps:$4 sm:$0xff]  }
 0x2d3   : > { %1582 = vmatprep.subr.bf16.mxu1 %v3867_v3  ;;  %v3910_v3 = vld [vmem:[#allocation8 + $0x60] ss:$16 sps:$4 sm:$0xff]  }
 0x2d5   : > { %1542 = vmatpush1.bf16.msra.mxu0 %v3862_v4  ;;  %v3913_v4 = vld [vmem:[#allocation8 + $0x68] ss:$16 sps:$4 sm:$0xff]  }
 0x2d6   : > { %1583 = vmatpush1.bf16.msra.mxu1 %v3865_v7  ;;  %1543 = vmatprep.subr.bf16.mxu0 %v3870_v9  ;;  %v3918_v7 = vld [vmem:[#allocation8 + $0x84] ss:$16 sps:$4 sm:$0xff]   ;;  %v3916_v9 = vld [vmem:[#allocation8 + $0x80] ss:$16 sps:$4 sm:$0xff]  }
 0x2d7   : > { %1584 = vmatprep.subr.bf16.mxu1 %v3873_v36  ;;  %v3919_v36 = vld [vmem:[#allocation8 + $0x88] ss:$16 sps:$4 sm:$0xff]  }
 0x2d9   : > { %1544 = vmatpush1.bf16.msra.mxu0 %v3868_v12  ;;  %v3924_v12 = vld [vmem:[#allocation8 + $0xa4] ss:$16 sps:$4 sm:$0xff]  }
 0x2da   : > { %1585 = vmatpush1.bf16.msra.mxu1 %v3871_v13  ;;  %1545 = vmatprep.subr.bf16.mxu0 %v3876_v15  ;;  %v3927_v13 = vld [vmem:[#allocation8 + $0xac] ss:$16 sps:$4 sm:$0xff]   ;;  %v3925_v15 = vld [vmem:[#allocation8 + $0xa8] ss:$16 sps:$4 sm:$0xff]  }
 0x2db   : > { %1586 = vmatprep.subr.bf16.mxu1 %v3879_v17  ;;  %v3930_v17 = vld [vmem:[#allocation8 + $0xc4] ss:$16 sps:$4 sm:$0xff]  }
 0x2dd   : > { %1546 = vmatpush1.bf16.msra.mxu0 %v3874_v18  ;;  %v3933_v18 = vld [vmem:[#allocation8 + $0xcc] ss:$16 sps:$4 sm:$0xff]  }
 0x2de   : > { %1587 = vmatpush1.bf16.msra.mxu1 %v3877_v20  ;;  %1547 = vmatprep.subr.bf16.mxu0 %v3882_v21  ;;  %v3928_v20 = vld [vmem:[#allocation8 + $0xc0] ss:$16 sps:$4 sm:$0xff]   ;;  %v3931_v21 = vld [vmem:[#allocation8 + $0xc8] ss:$16 sps:$4 sm:$0xff]  }
 0x2df   : > { %1588 = vmatprep.subr.bf16.mxu1 %v3885_v22  ;;  %v3936_v22 = vld [vmem:[#allocation8 + $0xe4] ss:$16 sps:$4 sm:$0xff]  }
 0x2e1   : > { %1548 = vmatpush1.bf16.msra.mxu0 %v3880_v23  ;;  %v3939_v23 = vld [vmem:[#allocation8 + $0xec] ss:$16 sps:$4 sm:$0xff]  }
 0x2e2   : > { %1589 = vmatpush1.bf16.msra.mxu1 %v3883_v24  ;;  %1549 = vmatprep.subr.bf16.mxu0 %v3888_v25  ;;  %v3934_v24 = vld [vmem:[#allocation8 + $0xe0] ss:$16 sps:$4 sm:$0xff]   ;;  %v3937_v25 = vld [vmem:[#allocation8 + $0xe8] ss:$16 sps:$4 sm:$0xff]  }
 0x2e3   : > { %1590 = vmatprep.subr.bf16.mxu1 %v3891_v26  ;;  %v3942_v26 = vld [vmem:[#allocation8 + $0x104] ss:$16 sps:$4 sm:$0xff]  }
 0x2e5   : > { %1550 = vmatpush1.bf16.msra.mxu0 %v3886_v46  ;;  %v3945_v46 = vld [vmem:[#allocation8 + $0x10c] ss:$16 sps:$4 sm:$0xff]  }
 0x2e6   : > { %1591 = vmatpush1.bf16.msra.mxu1 %v3889_v27  ;;  %2035 = vmatprep.subr.bf16.mxu0 %v3894_v28  ;;  %v3940_v27 = vld [vmem:[#allocation8 + $0x100] ss:$16 sps:$4 sm:$0xff]   ;;  %v3943_v28 = vld [vmem:[#allocation8 + $0x108] ss:$16 sps:$4 sm:$0xff]  }
 0x2e7   : > { %2076 = vmatprep.subr.bf16.mxu1 %v3897_v29  ;;  %v3948_v29 = vld [vmem:[#allocation8 + $0x124] ss:$16 sps:$4 sm:$0xff]  }
 0x2e8   : > { %1568 = vmatmul.mubr.bf16.vlgmr.msra.gmra.mrb[4].mxu0 %v1342_v30 }
 0x2e9   : > { %1609 = vmatmul.mubr.bf16.vlgmr.msra.gmra.mrb[4].mxu1 %v1342_v30  ;;  %2036 = vmatpush1.bf16.msra.mxu0 %v3892_v31  ;;  %v3951_v30 = vld [vmem:[#allocation8 + $0x12c] ss:$16 sps:$4 sm:$0xff]   ;;  %v3946_v31 = vld [vmem:[#allocation8 + $0x120] ss:$16 sps:$4 sm:$0xff]  }
 0x2ea   : > { %2077 = vmatpush1.bf16.msra.mxu1 %v3895_v33  ;;  %2037 = vmatprep.subr.bf16.mxu0 %v3900_v35  ;;  %v3949_v33 = vld [vmem:[#allocation8 + $0x128] ss:$16 sps:$4 sm:$0xff]   ;;  %v3954_v35 = vld [vmem:[#allocation8 + $0x144] ss:$16 sps:$4 sm:$0xff]  }
 0x2eb   : > { %2078 = vmatprep.subr.bf16.mxu1 %v3903_v37  ;;  %v3957_v37 = vld [vmem:[#allocation8 + $0x14c] ss:$16 sps:$4 sm:$0xff]  }
 0x2ed   : > { %2038 = vmatpush1.bf16.msra.mxu0 %v3898_v41  ;;  %v3952_v41 = vld [vmem:[#allocation8 + $0x140] ss:$16 sps:$4 sm:$0xff]  }
 0x2ee   : > { %2079 = vmatpush1.bf16.msra.mxu1 %v3901_v43  ;;  %2039 = vmatprep.subr.bf16.mxu0 %v3906_v50  ;;  %v3955_v43 = vld [vmem:[#allocation8 + $0x148] ss:$16 sps:$4 sm:$0xff]   ;;  %v3960_v50 = vld [vmem:[#allocation8 + $0x164] ss:$16 sps:$4 sm:$0xff]  }
 0x2ef   : > { %2080 = vmatprep.subr.bf16.mxu1 %v3909_v51  ;;  %v3963_v51 = vld [vmem:[#allocation8 + $0x16c] ss:$16 sps:$4 sm:$0xff]  }
 0x2f1   : > { %2040 = vmatpush1.bf16.msra.mxu0 %v3904_v52  ;;  %v3958_v52 = vld [vmem:[#allocation8 + $0x160] ss:$16 sps:$4 sm:$0xff]  }
 0x2f2   : > { %2081 = vmatpush1.bf16.msra.mxu1 %v3907_v58  ;;  %2041 = vmatprep.subr.bf16.mxu0 %v3912_v60  ;;  %v3961_v58 = vld [vmem:[#allocation8 + $0x168] ss:$16 sps:$4 sm:$0xff]   ;;  %v3966_v60 = vld [vmem:[#allocation8 + $0x184] ss:$16 sps:$4 sm:$0xff]  }
 0x2f3   : > { %2082 = vmatprep.subr.bf16.mxu1 %v3915_v61  ;;  %v3969_v61 = vld [vmem:[#allocation8 + $0x18c] ss:$16 sps:$4 sm:$0xff]  }
 0x2f5   : > { %2042 = vmatpush1.bf16.msra.mxu0 %v3910_v3  ;;  %v3964_v3 = vld [vmem:[#allocation8 + $0x180] ss:$16 sps:$4 sm:$0xff]  }
 0x2f6   : > { %2083 = vmatpush1.bf16.msra.mxu1 %v3913_v4  ;;  %2043 = vmatprep.subr.bf16.mxu0 %v3918_v7  ;;  %v3967_v4 = vld [vmem:[#allocation8 + $0x188] ss:$16 sps:$4 sm:$0xff]   ;;  %v3972_v7 = vld [vmem:[#allocation8 + $0x1a4] ss:$16 sps:$4 sm:$0xff]  }
 0x2f7   : > { %2084 = vmatprep.subr.bf16.mxu1 %v3921_v8  ;;  %v3975_v8 = vld [vmem:[#allocation8 + $0x1ac] ss:$16 sps:$4 sm:$0xff]  }
 0x2f9   : > { %2044 = vmatpush1.bf16.msra.mxu0 %v3916_v9  ;;  %v3970_v9 = vld [vmem:[#allocation8 + $0x1a0] ss:$16 sps:$4 sm:$0xff]  }
 0x2fa   : > { %2085 = vmatpush1.bf16.msra.mxu1 %v3919_v36  ;;  %2045 = vmatprep.subr.bf16.mxu0 %v3924_v12  ;;  %v3973_v36 = vld [vmem:[#allocation8 + $0x1a8] ss:$16 sps:$4 sm:$0xff]   ;;  %v3978_v12 = vld [vmem:[#allocation8 + $0x1c4] ss:$16 sps:$4 sm:$0xff]  }
 0x2fb   : > { %2086 = vmatprep.subr.bf16.mxu1 %v3927_v13  ;;  %v3981_v13 = vld [vmem:[#allocation8 + $0x1cc] ss:$16 sps:$4 sm:$0xff]  }
 0x2fd   : > { %2046 = vmatpush1.bf16.msra.mxu0 %v3922_v14  ;;  %v3976_v14 = vld [vmem:[#allocation8 + $0x1c0] ss:$16 sps:$4 sm:$0xff]  }
 0x2fe   : > { %2087 = vmatpush1.bf16.msra.mxu1 %v3925_v15  ;;  %2047 = vmatprep.subr.bf16.mxu0 %v3930_v17  ;;  %v3979_v15 = vld [vmem:[#allocation8 + $0x1c8] ss:$16 sps:$4 sm:$0xff]   ;;  %v3984_v17 = vld [vmem:[#allocation8 + $0x1e4] ss:$16 sps:$4 sm:$0xff]  }
 0x2ff   : > { %2088 = vmatprep.subr.bf16.mxu1 %v3933_v18  ;;  %v3987_v18 = vld [vmem:[#allocation8 + $0x1ec] ss:$16 sps:$4 sm:$0xff]  }
 0x301   : > { %2048 = vmatpush1.bf16.msra.mxu0 %v3928_v20  ;;  %v3982_v20 = vld [vmem:[#allocation8 + $0x1e0] ss:$16 sps:$4 sm:$0xff]  }
 0x302   : > { %2089 = vmatpush1.bf16.msra.mxu1 %v3931_v21  ;;  %2049 = vmatprep.subr.bf16.mxu0 %v3936_v22  ;;  %v3985_v21 = vld [vmem:[#allocation8 + $0x1e8] ss:$16 sps:$4 sm:$0xff]   ;;  %v3991_v22 = vld [vmem:[#allocation11 + $0x4] ss:$16 sps:$4 sm:$0xff]  }
 0x303   : > { %2090 = vmatprep.subr.bf16.mxu1 %v3939_v23  ;;  %v3994_v23 = vld [vmem:[#allocation11 + $0xc] ss:$16 sps:$4 sm:$0xff]  }
 0x305   : > { %2050 = vmatpush1.bf16.msra.mxu0 %v3934_v24 }
 0x306   : > { %2091 = vmatpush1.bf16.msra.mxu1 %v3937_v25  ;;  %2051 = vmatprep.subr.bf16.mxu0 %v3942_v26 }
 0x307   : > { %2092 = vmatprep.subr.bf16.mxu1 %v3945_v46 }
 0x309   : > { %2052 = vmatpush1.bf16.msra.mxu0 %v3940_v27 }
 0x30a   : > { %2093 = vmatpush1.bf16.msra.mxu1 %v3943_v28  ;;  %2053 = vmatprep.subr.bf16.mxu0 %v3948_v29 }
 0x30b   : > { %2094 = vmatprep.subr.bf16.mxu1 %v3951_v30 }
 0x30d   : > { %2054 = vmatpush1.bf16.msra.mxu0 %v3946_v31 }
 0x30e   : > { %2095 = vmatpush1.bf16.msra.mxu1 %v3949_v33  ;;  %2055 = vmatprep.subr.bf16.mxu0 %v3954_v35 }
 0x30f   : > { %2096 = vmatprep.subr.bf16.mxu1 %v3957_v37 }
 0x311   : > { %2056 = vmatpush1.bf16.msra.mxu0 %v3952_v41 }
 0x312   : > { %2097 = vmatpush1.bf16.msra.mxu1 %v3955_v43  ;;  %2057 = vmatprep.subr.bf16.mxu0 %v3960_v50 }
 0x313   : > { %2098 = vmatprep.subr.bf16.mxu1 %v3963_v51 }
 0x315   : > { %2058 = vmatpush1.bf16.msra.mxu0 %v3958_v52 }
 0x316   : > { %2099 = vmatpush1.bf16.msra.mxu1 %v3961_v58  ;;  %2059 = vmatprep.subr.bf16.mxu0 %v3966_v60 }
 0x317   : > { %2100 = vmatprep.subr.bf16.mxu1 %v3969_v61 }
 0x319   : > { %2060 = vmatpush1.bf16.msra.mxu0 %v3964_v3 }
 0x31a   : > { %2101 = vmatpush1.bf16.msra.mxu1 %v3967_v4  ;;  %2061 = vmatprep.subr.bf16.mxu0 %v3972_v7 }
 0x31b   : > { %2102 = vmatprep.subr.bf16.mxu1 %v3975_v8 }
 0x31d   : > { %2062 = vmatpush1.bf16.msra.mxu0 %v3970_v9 }
 0x31e   : > { %2103 = vmatpush1.bf16.msra.mxu1 %v3973_v36  ;;  %2063 = vmatprep.subr.bf16.mxu0 %v3978_v12 }
 0x31f   : > { %2104 = vmatprep.subr.bf16.mxu1 %v3981_v13 }
 0x321   : > { %2064 = vmatpush1.bf16.msra.mxu0 %v3976_v14 }
 0x322   : > { %2105 = vmatpush1.bf16.msra.mxu1 %v3979_v15  ;;  %2065 = vmatprep.subr.bf16.mxu0 %v3984_v17  ;;  %v1307_v15 = vld [vmem:[#allocation4] sm:$0xff] }
 0x323   : > { %2106 = vmatprep.subr.bf16.mxu1 %v3987_v18 }
 0x325   : > { %2066 = vmatpush1.bf16.msra.mxu0 %v3982_v20 }
 0x326   : > { %2107 = vmatpush1.bf16.msra.mxu1 %v3985_v21  ;;  %2531 = vmatprep.subr.bf16.mxu0 %v3991_v22 }
 0x327   : > { %2572 = vmatprep.subr.bf16.mxu1 %v3994_v23 }
 0x33c   : > { %v1018_v24 = vpop.permute.xlu0 %1017 }
 0x33d   : > { %v1020_v25 = vmul.f32 %v1018_v24, %v4757_v44  ;;  %v1021_v26 = vmul.f32 %v1018_v24, %v4760_v45  ;;  %v1022_v27 = vmul.f32 %v1018_v24, %v4765_v47  ;;  %v1023_v37 = vmul.f32 %v1018_v24, %v4782_v55  ;;  %v4135_v44 = vld [vmem:[%s5043_s13 + $0x8] sm:$0xff] (%p1005_p4)   ;;  %v4137_v47 = vld [vmem:[%s5043_s13 + $0x10] sm:$0xff] (%p1005_p4)   ;;  %v4140_v55 = vld [vmem:[%s5043_s13 + $0x60] sm:$0xff] (%p1005_p4)  }
 0x33e   :  { %v4452_v45 = vmov (%p1005_p4), 0.0  }
 0x33f   : > { %v1024_v46 = vadd.f32 %v1020_v25, %v4768_v48  ;;  %v1025_v28 = vadd.f32 %v1021_v26, %v4771_v49  ;;  %v1026_v33 = vadd.f32 %v1022_v27, %v4792_v59  ;;  %v1027_v4 = vadd.f32 %v1023_v37, %v4806_v5  ;;  %v4138_v48 = vld [vmem:[%s5043_s13 + $0x58] sm:$0xff] (%p1005_p4)   ;;  %v4149_v5 = vld [vmem:[%s5046_s16 + $0x8] sm:$0xff] (%p1005_p4)  }
 0x340   : > { %v1332_v23 = vpop.permute.xlu0 %1331  ;;  %v4139_v49 = vld [vmem:[%s5043_s13 + $0x18] sm:$0xff] (%p1005_p4)  }
 0x341   : > { %v1334_v25 = vmul.f32 %v1332_v23, %v4785_v56  ;;  %v1335_v26 = vmul.f32 %v1332_v23, %v4788_v57  ;;  %v4141_v56 = vld [vmem:[%s5043_s13 + $0x20] sm:$0xff] (%p1005_p4)   ;;  %v4142_v57 = vld [vmem:[%s5043_s13 + $0x68] sm:$0xff] (%p1005_p4)  }
 0x343   : > { %v1338_v27 = vadd.f32 %v1334_v25, %v4800_v1  ;;  %v4148_v1 = vld [vmem:[%s5046_s16] sm:$0xff] (%p1005_p4)  }
 0x39b   : > { %v1255_v29 = vpop.f32.mrb[0].mxu0 }
 0x39c   : > { %v1296_v30 = vpop.f32.mrb[0].mxu1  ;;  %v1303_v31 = vadd.f32 %v1255_v29, %v1024_v46  ;;  %v1257_v35 = vpop.f32.mrb[1].mxu0 }
 0x39d   : > { %v1298_v41 = vpop.f32.mrb[1].mxu1  ;;  %v1304_v43 = vadd.f32 %v1257_v35, %v1025_v28  ;;  %v1259_v50 = vpop.f32.mrb[2].mxu0  ;;  %v1305_v3 = vadd.f32 %v1296_v30, %v1026_v33  ;;  %v1336_v28 = vmul.f32 %v1332_v23, %v4797_v63  ;;  %v2812_v63 = vld [vmem:[%s5071_s24] sm:$0xff] (%p1005_p4)  ;;  %s5072_s24 = sld [smem:[#allocation36_spill]] (%p1005_p4) }
 0x39e   : > { %v1300_v51 = vpop.f32.mrb[2].mxu1  ;;  %v1308_v52 = vmul.f32 0.5, %v1303_v31  ;;  %v1260_v58 = vpop.f32.mrb[3].mxu0  ;;  %v1306_v7 = vadd.f32 %v1298_v41, %v1027_v4  ;;  %v1339_v31 = vadd.f32 %v1335_v26, %v4803_v2  ;;  %v3998_v26 = vld [vmem:[#allocation11 + $0x24] ss:$16 sps:$4 sm:$0xff]   ;;  %2816 = vperm.xlu0 (%p1005_p4), %4128, %v2812_v63   ;;  %v4143_v2 = vld [vmem:[%s5043_s13 + $0x28] sm:$0xff] (%p1005_p4)  }
 0x39f   : > { %v1301_v60 = vpop.f32.mrb[3].mxu1  ;;  %v1312_v61 = vmul.f32 0.5, %v1304_v43 }
 0x3a0   : > { %4088 = vtanh.f32 %v1308_v52  ;;  %v1317_v8 = vmul.f32 0.5, %v1306_v7  ;;  %v1340_v60 = vadd.f32 %v1336_v28, %v4816_v11  ;;  %v1621_v28 = vld [vmem:[#allocation5] sm:$0xff]  ;;  %v4145_v11 = vld [vmem:[%s5043_s13 + $0x30] sm:$0xff] (%p1005_p4)  }
 0x3a1   : > { %4090 = vtanh.f32 %v1312_v61  ;;  %v1337_v61 = vmul.f32 %v1332_v23, %v4809_v6  ;;  %v3992_v23 = vld [vmem:[#allocation11 + $0x8] ss:$16 sps:$4 sm:$0xff]   ;;  %v4144_v6 = vld [vmem:[%s5043_s13 + $0x70] sm:$0xff] (%p1005_p4)  }
 0x3a2   : > { %4092 = vtanh.f32 %v1305_v3 }
 0x3a3   : > { %4094 = vtanh.f32 %v1317_v8 }
 0x3aa   : > { %v4089_v9 = vpop.eup %4088 }
 0x3ab   : > { %v4091_v36 = vpop.eup %4090  ;;  %v1310_v12 = vmul.f32 0.5, %v4089_v9 }
 0x3ac   : > { %v1314_v13 = vmul.f32 0.5, %v4091_v36  ;;  %v4093_v17 = vpop.eup %4092 }
 0x3ad   : > { %v1311_v14 = vadd.f32 0.5, %v1310_v12  ;;  %v4095_v24 = vpop.eup %4094  ;;  %v1341_v12 = vadd.f32 %v1337_v61, %v4824_v19  ;;  %v4453_v19 = vmov (%p1005_p4), 1  }
 0x3ae   : > { %v1315_v18 = vadd.f32 0.5, %v1314_v13  ;;  %v1319_v46 = vmul.f32 0.5, %v4095_v24  ;;  %4129 = vset.pattern.permute.xlu0 (%p1005_p4), %v4453_v19 }
 0x3af   : > { %v1322_v20 = vmul.f32 %v4093_v17, %v1311_v14  ;;  %2826 = vperm.xlu0 (%p1005_p4), %4129, %v2812_v63  }
 0x3b0   : > { %v1321_v21 = vmul.f32 %v1315_v18, %v1307_v15  ;;  %v1320_v41 = vadd.f32 0.5, %v1319_v46  ;;  %v4001_v46 = vld [vmem:[#allocation11 + $0x2c] ss:$16 sps:$4 sm:$0xff]  }
 0x3b2   : > { %v1323_v22 = vadd.f32 %v1322_v20, %v1321_v21 }
 0x3b4   : > { %4096 = vtanh.f32 %v1323_v22  ;;  %1328 = vst [vmem:[#allocation4] sm:$0xff] %v1323_v22  ;;  %v3989_v22 = vld [vmem:[#allocation11] ss:$16 sps:$4 sm:$0xff]  }
 0x3bb   : > { %v1569_v29 = vpop.f32.mrb[4].mxu0 }
 0x3bc   : > { %v1610_v30 = vpop.f32.mrb[4].mxu1  ;;  %v1617_v33 = vadd.f32 %v1569_v29, %v1338_v27  ;;  %v1571_v35 = vpop.f32.mrb[5].mxu0 }
 0x3bd   : > { %v1612_v37 = vpop.f32.mrb[5].mxu1  ;;  %v1618_v43 = vadd.f32 %v1571_v35, %v1339_v31  ;;  %v1573_v50 = vpop.f32.mrb[6].mxu0  ;;  %v1619_v9 = vadd.f32 %v1610_v30, %v1340_v60  ;;  %v3999_v35 = vld [vmem:[#allocation11 + $0x28] ss:$16 sps:$4 sm:$0xff]   ;;  %v4013_v60 = vld [vmem:[#allocation11 + $0x6c] ss:$16 sps:$4 sm:$0xff]  }
 0x3be   : > { %v1614_v51 = vpop.f32.mrb[6].mxu1  ;;  %v4097_v52 = vpop.eup %4096  ;;  %v1622_v58 = vmul.f32 0.5, %v1617_v33  ;;  %v1620_v13 = vadd.f32 %v1612_v37, %v1341_v12  ;;  %v3996_v33 = vld [vmem:[#allocation11 + $0x20] ss:$16 sps:$4 sm:$0xff]   ;;  %v4017_v12 = vld [vmem:[#allocation11 + $0x88] ss:$16 sps:$4 sm:$0xff]  }
 0x3bf   : > { %v1574_v3 = vpop.f32.mrb[7].mxu0  ;;  %v1615_v4 = vpop.f32.mrb[7].mxu1  ;;  %v1325_v7 = vmul.f32 %v4097_v52, %v1320_v41  ;;  %v1626_v8 = vmul.f32 0.5, %v1618_v43  ;;  %v4004_v41 = vld [vmem:[#allocation11 + $0x44] ss:$16 sps:$4 sm:$0xff]  }
 0x3c0   : > { %4098 = vtanh.f32 %v1622_v58  ;;  %v1631_v14 = vmul.f32 0.5, %v1620_v13  ;;  %v4007_v43 = vld [vmem:[#allocation11 + $0x4c] ss:$16 sps:$4 sm:$0xff]   ;;  %v4002_v51 = vld [vmem:[#allocation11 + $0x40] ss:$16 sps:$4 sm:$0xff]  }
 0x3c1   : > { %v1326_v36 = vpack.c.bf16 %v1325_v7, %v1325_v7  ;;  %4100 = vtanh.f32 %v1626_v8  ;;  %v4005_v52 = vld [vmem:[#allocation11 + $0x48] ss:$16 sps:$4 sm:$0xff]   ;;  %v4010_v58 = vld [vmem:[#allocation11 + $0x64] ss:$16 sps:$4 sm:$0xff]   ;;  %v4008_v3 = vld [vmem:[#allocation11 + $0x60] ss:$16 sps:$4 sm:$0xff]  }
 0x3c2   : > { %4102 = vtanh.f32 %v1619_v9  ;;  %v4011_v4 = vld [vmem:[#allocation11 + $0x68] ss:$16 sps:$4 sm:$0xff]   ;;  %v4016_v7 = vld [vmem:[#allocation11 + $0x84] ss:$16 sps:$4 sm:$0xff]   ;;  %v4019_v8 = vld [vmem:[#allocation11 + $0x8c] ss:$16 sps:$4 sm:$0xff]  }
 0x3c3   : > { %1327 = vst [vmem:[#allocation2] sm:$0xf] %v1326_v36  ;;  %4104 = vtanh.f32 %v1631_v14  ;;  %v4014_v36 = vld [vmem:[#allocation11 + $0x80] ss:$16 sps:$4 sm:$0xff]   ;;  %v4022_v13 = vld [vmem:[#allocation11 + $0xa4] ss:$16 sps:$4 sm:$0xff]  }
 0x3c4   : > { %v4025_v14 = vld [vmem:[#allocation11 + $0xac] ss:$16 sps:$4 sm:$0xff]  }
 0x3ca   : > { %v4099_v15 = vpop.eup %4098  ;;  %v1643_v17 = vld [vmem:[#allocation2] sm:$0xff] }
 0x3cb   : > { %v4101_v18 = vpop.eup %4100  ;;  %v1624_v20 = vmul.f32 0.5, %v4099_v15  ;;  %v3345_v21 = vcombine.high %v1643_v17, %v1643_v17  ;;  %v3344_v24 = vcombine.low %v1643_v17, %v1643_v17 }
 0x3cc   : > { %v1628_v25 = vmul.f32 0.5, %v4101_v18  ;;  %v4103_v29 = vpop.eup %4102 }
 0x3cd   : > { %v1625_v27 = vadd.f32 0.5, %v1624_v20  ;;  %2067 = vmatprep.mubr.bf16.mxu0 %v3345_v21  ;;  %2108 = vmatprep.mubr.bf16.mxu1 %v3345_v21  ;;  %v4105_v61 = vpop.eup %4104  ;;  %v4020_v20 = vld [vmem:[#allocation11 + $0xa0] ss:$16 sps:$4 sm:$0xff]   ;;  %v4023_v21 = vld [vmem:[#allocation11 + $0xa8] ss:$16 sps:$4 sm:$0xff]  }
 0x3ce   : > { %v1629_v30 = vadd.f32 0.5, %v1628_v25  ;;  %2068 = vmatmul.mubr.bf16.vlgmr.msra.gmra.mrb[8].mxu0 %v3344_v24  ;;  %2109 = vmatmul.mubr.bf16.vlgmr.msra.gmra.mrb[8].mxu1 %v3344_v24  ;;  %v1633_v9 = vmul.f32 0.5, %v4105_v61  ;;  %v4026_v25 = vld [vmem:[#allocation11 + $0xc0] ss:$16 sps:$4 sm:$0xff]  }
 0x3cf   : > { %v1636_v31 = vmul.f32 %v4103_v29, %v1625_v27  ;;  %2532 = vmatpush1.bf16.msra.mxu0 %v3989_v22  ;;  %2573 = vmatpush1.bf16.msra.mxu1 %v3992_v23  ;;  %v4028_v22 = vld [vmem:[#allocation11 + $0xc4] ss:$16 sps:$4 sm:$0xff]   ;;  %v4031_v23 = vld [vmem:[#allocation11 + $0xcc] ss:$16 sps:$4 sm:$0xff]   ;;  %v4035_v29 = vld [vmem:[#allocation11 + $0xe8] ss:$16 sps:$4 sm:$0xff]  }
 0x3d0   : > { %v1635_v37 = vmul.f32 %v1629_v30, %v1621_v28  ;;  %2533 = vmatprep.subr.bf16.mxu0 %v3998_v26  ;;  %2574 = vmatprep.subr.bf16.mxu1 %v4001_v46  ;;  %v1634_v15 = vadd.f32 0.5, %v1633_v9  ;;  %v4029_v26 = vld [vmem:[#allocation11 + $0xc8] ss:$16 sps:$4 sm:$0xff]   ;;  %v4034_v46 = vld [vmem:[#allocation11 + $0xe4] ss:$16 sps:$4 sm:$0xff]  }
 0x3d1   : > { %v4037_v27 = vld [vmem:[#allocation11 + $0xec] ss:$16 sps:$4 sm:$0xff]   ;;  %v4032_v28 = vld [vmem:[#allocation11 + $0xe0] ss:$16 sps:$4 sm:$0xff]   ;;  %v4040_v30 = vld [vmem:[#allocation11 + $0x104] ss:$16 sps:$4 sm:$0xff]  }
 0x3d2   : > { %v1637_v50 = vadd.f32 %v1636_v31, %v1635_v37  ;;  %v4044_v31 = vld [vmem:[#allocation11 + $0x10c] ss:$16 sps:$4 sm:$0xff]   ;;  %v4051_v61 = vld [vmem:[#allocation11 + $0x140] ss:$16 sps:$4 sm:$0xff]   ;;  %v4060_v9 = vld [vmem:[#allocation11 + $0x168] ss:$16 sps:$4 sm:$0xff]  }
 0x3d3   : > { %2534 = vmatpush1.bf16.msra.mxu0 %v3996_v33  ;;  %2575 = vmatpush1.bf16.msra.mxu1 %v3999_v35  ;;  %v4038_v35 = vld [vmem:[#allocation11 + $0x100] ss:$16 sps:$4 sm:$0xff]  }
 0x3d4   : > { %4106 = vtanh.f32 %v1637_v50  ;;  %1642 = vst [vmem:[#allocation5] sm:$0xff] %v1637_v50  ;;  %2535 = vmatprep.subr.bf16.mxu0 %v4004_v41  ;;  %2576 = vmatprep.subr.bf16.mxu1 %v4007_v43  ;;  %v4042_v41 = vld [vmem:[#allocation11 + $0x108] ss:$16 sps:$4 sm:$0xff]   ;;  %v4047_v43 = vld [vmem:[#allocation11 + $0x124] ss:$16 sps:$4 sm:$0xff]  }
 0x3d5   : > { %v4050_v50 = vld [vmem:[#allocation11 + $0x12c] ss:$16 sps:$4 sm:$0xff]  }
 0x3d7   : > { %2536 = vmatpush1.bf16.msra.mxu0 %v4002_v51  ;;  %2577 = vmatpush1.bf16.msra.mxu1 %v4005_v52  ;;  %v4045_v51 = vld [vmem:[#allocation11 + $0x120] ss:$16 sps:$4 sm:$0xff]   ;;  %v4048_v52 = vld [vmem:[#allocation11 + $0x128] ss:$16 sps:$4 sm:$0xff]  }
 0x3d8   : > { %2537 = vmatprep.subr.bf16.mxu0 %v4010_v58  ;;  %2578 = vmatprep.subr.bf16.mxu1 %v4013_v60  ;;  %v4053_v58 = vld [vmem:[#allocation11 + $0x144] ss:$16 sps:$4 sm:$0xff]   ;;  %v4056_v60 = vld [vmem:[#allocation11 + $0x14c] ss:$16 sps:$4 sm:$0xff]  }
 0x3db   : > { %2538 = vmatpush1.bf16.msra.mxu0 %v4008_v3  ;;  %2579 = vmatpush1.bf16.msra.mxu1 %v4011_v4  ;;  %v4054_v3 = vld [vmem:[#allocation11 + $0x148] ss:$16 sps:$4 sm:$0xff]   ;;  %v4059_v4 = vld [vmem:[#allocation11 + $0x164] ss:$16 sps:$4 sm:$0xff]  }
 0x3dc   : > { %2539 = vmatprep.subr.bf16.mxu0 %v4016_v7  ;;  %2580 = vmatprep.subr.bf16.mxu1 %v4019_v8  ;;  %v4062_v7 = vld [vmem:[#allocation11 + $0x16c] ss:$16 sps:$4 sm:$0xff]   ;;  %v4057_v8 = vld [vmem:[#allocation11 + $0x160] ss:$16 sps:$4 sm:$0xff]  }
 0x3de   : > { %v4107_v17 = vpop.eup %4106 }
 0x3df   : > { %v1639_v18 = vmul.f32 %v4107_v17, %v1634_v15  ;;  %2540 = vmatpush1.bf16.msra.mxu0 %v4014_v36  ;;  %2581 = vmatpush1.bf16.msra.mxu1 %v4017_v12  ;;  %v4065_v36 = vld [vmem:[#allocation11 + $0x184] ss:$16 sps:$4 sm:$0xff]   ;;  %v4068_v12 = vld [vmem:[#allocation11 + $0x18c] ss:$16 sps:$4 sm:$0xff]  }
 0x3e0   : > { %2541 = vmatprep.subr.bf16.mxu0 %v4022_v13  ;;  %2582 = vmatprep.subr.bf16.mxu1 %v4025_v14  ;;  %v4063_v13 = vld [vmem:[#allocation11 + $0x180] ss:$16 sps:$4 sm:$0xff]   ;;  %v4066_v14 = vld [vmem:[#allocation11 + $0x188] ss:$16 sps:$4 sm:$0xff]   ;;  %v4071_v15 = vld [vmem:[#allocation11 + $0x1a4] ss:$16 sps:$4 sm:$0xff]  }
 0x3e1   : > { %v1640_v24 = vpack.c.bf16 %v1639_v18, %v1639_v18  ;;  %v4074_v17 = vld [vmem:[#allocation11 + $0x1ac] ss:$16 sps:$4 sm:$0xff]   ;;  %v4069_v18 = vld [vmem:[#allocation11 + $0x1a0] ss:$16 sps:$4 sm:$0xff]  }
 0x3e3   : > { %1641 = vst [vmem:[#allocation3] sm:$0xf] %v1640_v24  ;;  %2542 = vmatpush1.bf16.msra.mxu0 %v4020_v20  ;;  %2583 = vmatpush1.bf16.msra.mxu1 %v4023_v21  ;;  %v4072_v20 = vld [vmem:[#allocation11 + $0x1a8] ss:$16 sps:$4 sm:$0xff]   ;;  %v4077_v21 = vld [vmem:[#allocation11 + $0x1c4] ss:$16 sps:$4 sm:$0xff]  }
 0x3e4   : > { %2543 = vmatprep.subr.bf16.mxu0 %v4028_v22  ;;  %2584 = vmatprep.subr.bf16.mxu1 %v4031_v23  ;;  %v4080_v22 = vld [vmem:[#allocation11 + $0x1cc] ss:$16 sps:$4 sm:$0xff]   ;;  %v4075_v23 = vld [vmem:[#allocation11 + $0x1c0] ss:$16 sps:$4 sm:$0xff]   ;;  %v4078_v24 = vld [vmem:[#allocation11 + $0x1c8] ss:$16 sps:$4 sm:$0xff]  }
 0x3e7   : > { %2544 = vmatpush1.bf16.msra.mxu0 %v4026_v25  ;;  %2585 = vmatpush1.bf16.msra.mxu1 %v4029_v26  ;;  %v4083_v25 = vld [vmem:[#allocation11 + $0x1e4] ss:$16 sps:$4 sm:$0xff]   ;;  %v4086_v26 = vld [vmem:[#allocation11 + $0x1ec] ss:$16 sps:$4 sm:$0xff]  }
 0x3e8   : > { %2545 = vmatprep.subr.bf16.mxu0 %v4034_v46  ;;  %2586 = vmatprep.subr.bf16.mxu1 %v4037_v27  ;;  %v4081_v46 = vld [vmem:[#allocation11 + $0x1e0] ss:$16 sps:$4 sm:$0xff]   ;;  %v4084_v27 = vld [vmem:[#allocation11 + $0x1e8] ss:$16 sps:$4 sm:$0xff]  }
 0x3ea   : > { %v4898_v33 = vld [vmem:[#allocation3] sm:$0xff] }
 0x3eb   : > { %2546 = vmatpush1.bf16.msra.mxu0 %v4032_v28  ;;  %2587 = vmatpush1.bf16.msra.mxu1 %v4035_v29  ;;  %v3411_v37 = vcombine.high %v4898_v33, %v4898_v33  ;;  %v3410_v28 = vcombine.low %v4898_v33, %v4898_v33 }
 0x3ec   : > { %2547 = vmatprep.subr.bf16.mxu0 %v4040_v30  ;;  %2588 = vmatprep.subr.bf16.mxu1 %v4044_v31 }
 0x3ed   : > { %2563 = vmatprep.mubr.bf16.mxu0 %v3411_v37  ;;  %2604 = vmatprep.mubr.bf16.mxu1 %v3411_v37 }
 0x3ef   : > { %2548 = vmatpush1.bf16.msra.mxu0 %v4038_v35  ;;  %2589 = vmatpush1.bf16.msra.mxu1 %v4042_v41 }
 0x3f0   : > { %2549 = vmatprep.subr.bf16.mxu0 %v4047_v43  ;;  %2590 = vmatprep.subr.bf16.mxu1 %v4050_v50 }
 0x3f3   : > { %2550 = vmatpush1.bf16.msra.mxu0 %v4045_v51  ;;  %2591 = vmatpush1.bf16.msra.mxu1 %v4048_v52 }
 0x3f4   : > { %2551 = vmatprep.subr.bf16.mxu0 %v4053_v58  ;;  %2592 = vmatprep.subr.bf16.mxu1 %v4056_v60 }
 0x3f7   : > { %2552 = vmatpush1.bf16.msra.mxu0 %v4051_v61  ;;  %2593 = vmatpush1.bf16.msra.mxu1 %v4054_v3 }
 0x3f8   : > { %2553 = vmatprep.subr.bf16.mxu0 %v4059_v4  ;;  %2594 = vmatprep.subr.bf16.mxu1 %v4062_v7 }
 0x3fb   : > { %2554 = vmatpush1.bf16.msra.mxu0 %v4057_v8  ;;  %2595 = vmatpush1.bf16.msra.mxu1 %v4060_v9 }
 0x3fc   : > { %2555 = vmatprep.subr.bf16.mxu0 %v4065_v36  ;;  %2596 = vmatprep.subr.bf16.mxu1 %v4068_v12  ;;  %v2117_v12 = vld [vmem:[#allocation4 + $0x8] sm:$0xff] }
 0x3ff   : > { %2556 = vmatpush1.bf16.msra.mxu0 %v4063_v13  ;;  %2597 = vmatpush1.bf16.msra.mxu1 %v4066_v14 }
 0x400   : > { %2557 = vmatprep.subr.bf16.mxu0 %v4071_v15  ;;  %2598 = vmatprep.subr.bf16.mxu1 %v4074_v17 }
 0x403   : > { %2558 = vmatpush1.bf16.msra.mxu0 %v4069_v18  ;;  %2599 = vmatpush1.bf16.msra.mxu1 %v4072_v20 }
 0x404   : > { %2559 = vmatprep.subr.bf16.mxu0 %v4077_v21  ;;  %2600 = vmatprep.subr.bf16.mxu1 %v4080_v22 }
 0x407   : > { %2560 = vmatpush1.bf16.msra.mxu0 %v4075_v23  ;;  %2601 = vmatpush1.bf16.msra.mxu1 %v4078_v24 }
 0x408   : > { %2561 = vmatprep.subr.bf16.mxu0 %v4083_v25  ;;  %2602 = vmatprep.subr.bf16.mxu1 %v4086_v26 }
 0x40b   : > { %2562 = vmatpush1.bf16.msra.mxu0 %v4081_v46  ;;  %2603 = vmatpush1.bf16.msra.mxu1 %v4084_v27 }
 0x40c   :  { %3569 = vmatprep.subr.bf16.mxu1 (%p1005_p4), %v4452_v45 }
 0x40e   : > { %2564 = vmatmul.mubr.bf16.vlgmr.msra.gmra.mrb[12].mxu0 %v3410_v28  ;;  %2605 = vmatmul.mubr.bf16.vlgmr.msra.gmra.mrb[12].mxu1 %v3410_v28 }
 0x40f   :  { %3570 = vmatpush3.bf16.msra.mxu1 (%p1005_p4), %v4148_v1  ;;  %3585 = vmatprep.mubr.msk.bf16.mxu1 (%p1005_p4), %vm4454_vm0, %v4452_v45  ;;  %v3502_v1 = vld [vmem:[#allocation19] ss:$0 sm:$0xff] (%p1005_p4) }
 0x410   :  { %3571 = vmatprep.subr.bf16.mxu1 (%p1005_p4), %v4452_v45 }
 0x413   :  { %3572 = vmatpush3.bf16.msra.mxu1 (%p1005_p4), %v4149_v5 }
 0x414   :  { %3573 = vmatprep.subr.bf16.mxu1 (%p1005_p4), %v4452_v45 }
 0x4a1   : > { %v2069_v29 = vpop.f32.mrb[8].mxu0  ;;  %v2110_v30 = vpop.f32.mrb[8].mxu1 }
 0x4a2   : > { %v2070_v31 = vadd.f32 %v2069_v29, %v4834_v53  ;;  %v2071_v35 = vpop.f32.mrb[9].mxu0  ;;  %v2112_v37 = vpop.f32.mrb[9].mxu1  ;;  %v2111_v61 = vadd.f32 %v2110_v30, %v4841_v62  ;;  %v4150_v53 = vld [vmem:[%s5046_s16 + $0x10] sm:$0xff] (%p1005_p4)   ;;  %v4147_v62 = vld [vmem:[%s5043_s13 + $0x38] sm:$0xff] (%p1005_p4)  }
 0x4a3   : > { %v2072_v41 = vadd.f32 %v2071_v35, %v4837_v54  ;;  %v2073_v43 = vpop.f32.mrb[10].mxu0  ;;  %v2114_v50 = vpop.f32.mrb[10].mxu1  ;;  %v2113_v33 = vadd.f32 %v2112_v37, %v4846_v16  ;;  %v4146_v54 = vld [vmem:[%s5043_s13 + $0x78] sm:$0xff] (%p1005_p4)   ;;  %3574 = vmatpush3.bf16.msra.mxu1 (%p1005_p4), %v4150_v53 }
 0x4a4   : > { %v2118_v51 = vmul.f32 0.5, %v2070_v31  ;;  %v2074_v52 = vpop.f32.mrb[11].mxu0  ;;  %v2115_v58 = vpop.f32.mrb[11].mxu1  ;;  %v4151_v16 = vld [vmem:[%s5046_s16 + $0x18] sm:$0xff] (%p1005_p4)   ;;  %3575 = vmatprep.subr.bf16.mxu1 (%p1005_p4), %v4452_v45 }
 0x4a5   : > { %v2122_v60 = vmul.f32 0.5, %v2072_v41  ;;  %v2127_v3 = vmul.f32 0.5, %v2113_v33 }
 0x4a6   : > { %4108 = vtanh.f32 %v2118_v51 }
 0x4a7   : > { %4110 = vtanh.f32 %v2122_v60  ;;  %3576 = vmatpush3.bf16.msra.mxu1 (%p1005_p4), %v4151_v16  ;;  %v3511_v16 = vld [vmem:[#allocation22] ss:$0 sm:$0xff] (%p1005_p4) }
 0x4a8   : > { %4112 = vtanh.f32 %v2111_v61  ;;  %3577 = vmatprep.subr.bf16.mxu1 (%p1005_p4), %v4452_v45 }
 0x4a9   : > { %4114 = vtanh.f32 %v2127_v3 }
 0x4b0   : > { %v4109_v4 = vpop.eup %4108 }
 0x4b1   : > { %v4111_v7 = vpop.eup %4110  ;;  %v2120_v8 = vmul.f32 0.5, %v4109_v4 }
 0x4b2   : > { %v2124_v9 = vmul.f32 0.5, %v4111_v7  ;;  %v4113_v13 = vpop.eup %4112  ;;  %v2613_v7 = vld [vmem:[#allocation5 + $0x8] sm:$0xff] }
 0x4b3   : > { %v2121_v36 = vadd.f32 0.5, %v2120_v8  ;;  %v4115_v20 = vpop.eup %4114 }
 0x4b4   : > { %v2125_v14 = vadd.f32 0.5, %v2124_v9  ;;  %v2129_v21 = vmul.f32 0.5, %v4115_v20 }
 0x4b5   : > { %v2132_v15 = vmul.f32 %v4113_v13, %v2121_v36 }
 0x4b6   : > { %v2131_v17 = vmul.f32 %v2125_v14, %v2117_v12  ;;  %v2130_v22 = vadd.f32 0.5, %v2129_v21 }
 0x4b8   : > { %v2133_v18 = vadd.f32 %v2132_v15, %v2131_v17 }
 0x4ba   : > { %4116 = vtanh.f32 %v2133_v18  ;;  %2138 = vst [vmem:[#allocation4 + $0x8] sm:$0xff] %v2133_v18 }
 0x4c4   : > { %v4117_v23 = vpop.eup %4116 }
 0x4c5   : > { %v2135_v24 = vmul.f32 %v4117_v23, %v2130_v22  ;;  %v4132_v22 = vld [vmem:[%s5043_s13 + $0x40] sm:$0xff] (%p1005_p4)  }
 0x4c6   :  { %v4133_v23 = vld [vmem:[%s5043_s13] sm:$0xff] (%p1005_p4)   ;;  %3520 = vmatprep.subr.bf16.mxu0 (%p1005_p4), %v4132_v22  ;;  %v4167_v22 = vld [vmem:[#allocation20 + $0x18] sm:$0xff] (%p1005_p4)  }
 0x4c7   : > { %v2136_v25 = vpack.c.bf16 %v2135_v24, %v2135_v24  ;;  %v4134_v24 = vld [vmem:[%s5043_s13 + $0x48] sm:$0xff] (%p1005_p4)   ;;  %3521 = vmatpush3.bf16.msra.mxu0 (%p1005_p4), %v4133_v23  ;;  %v4168_v23 = vld [vmem:[#allocation20 + $0x20] sm:$0xff] (%p1005_p4)  }
 0x4c8   :  { %3522 = vmatprep.subr.bf16.mxu0 (%p1005_p4), %v4134_v24  ;;  %v4169_v24 = vld [vmem:[#allocation20 + $0x28] sm:$0xff] (%p1005_p4)  }
 0x4c9   : > { %2137 = vst [vmem:[#allocation2 + $0x4] sm:$0xf] %v2136_v25  ;;  %v4451_v25 = vmov (%p1005_p4), 2  }
 0x4ca   :  { %4130 = vset.pattern.permute.xlu1 (%p1005_p4), %v4451_v25  ;;  %4131 = vset.pattern.permute.xlu0 (%p1005_p4), %v4451_v25  ;;  %v3493_v25 = vld [vmem:[#allocation16] ss:$0 sm:$0xff] (%p1005_p4) }
 0x4cb   :  { %3523 = vmatpush3.bf16.msra.mxu0 (%p1005_p4), %v4135_v44  ;;  %2836 = vperm.xlu1 (%p1005_p4), %4130, %v2812_v63   ;;  %v4171_v63 = vld [vmem:[#allocation20 + $0x38] sm:$0xff] (%p1005_p4)  }
 0x4cc   :  { %3524 = vmatprep.subr.bf16.mxu0 (%p1005_p4), %v4136_v0 }
 0x4cf   :  { %3525 = vmatpush3.bf16.msra.mxu0 (%p1005_p4), %v4137_v47 }
 0x4d0   :  { %3526 = vmatprep.subr.bf16.mxu0 (%p1005_p4), %v4138_v48 }
 0x4d3   :  { %3527 = vmatpush3.bf16.msra.mxu0 (%p1005_p4), %v4139_v49 }
 0x4d4   :  { %3528 = vmatprep.subr.bf16.mxu0 (%p1005_p4), %v4140_v55 }
 0x4d7   :  { %3529 = vmatpush3.bf16.msra.mxu0 (%p1005_p4), %v4141_v56 }
 0x4d8   :  { %3530 = vmatprep.subr.bf16.mxu0 (%p1005_p4), %v4142_v57 }
 0x4db   :  { %3531 = vmatpush3.bf16.msra.mxu0 (%p1005_p4), %v4143_v2 }
 0x4dc   :  { %3532 = vmatprep.subr.bf16.mxu0 (%p1005_p4), %v4144_v6 }
 0x4df   :  { %3533 = vmatpush3.bf16.msra.mxu0 (%p1005_p4), %v4145_v11 }
 0x4e0   :  { %3534 = vmatprep.subr.bf16.mxu0 (%p1005_p4), %v4146_v54 }
 0x4e1   : > { %v2565_v26 = vpop.f32.mrb[12].mxu0  ;;  %v2606_v46 = vpop.f32.mrb[12].mxu1 }
 0x4e2   : > { %v2566_v27 = vadd.f32 %v2565_v26, %v4850_v32  ;;  %v2567_v28 = vpop.f32.mrb[13].mxu0  ;;  %v2608_v29 = vpop.f32.mrb[13].mxu1  ;;  %v2607_v51 = vadd.f32 %v2606_v46, %v4857_v38  ;;  %v2635_v32 = vld [vmem:[#allocation2 + $0x4] sm:$0xf] (%p1005_p4)  ;;  %v4153_v38 = vld [vmem:[%s5046_s16 + $0x28] sm:$0xff] (%p1005_p4)   ;;  %v4155_v26 = vld [vmem:[%s5046_s16 + $0x38] sm:$0xff] (%p1005_p4)  }
 0x4e3   : > { %v2568_v30 = vadd.f32 %v2567_v28, %v4853_v34  ;;  %v2569_v31 = vpop.f32.mrb[14].mxu0  ;;  %v2610_v35 = vpop.f32.mrb[14].mxu1  ;;  %v2609_v52 = vadd.f32 %v2608_v29, %v4862_v10  ;;  %3535 = vmatpush3.bf16.msra.mxu0 (%p1005_p4), %v4147_v62  ;;  %v4152_v34 = vld [vmem:[%s5046_s16 + $0x20] sm:$0xff] (%p1005_p4)   ;;  %v4154_v10 = vld [vmem:[%s5046_s16 + $0x30] sm:$0xff] (%p1005_p4)  }
 0x4e4   : > { %v2614_v37 = vmul.f32 0.5, %v2566_v27  ;;  %v2570_v41 = vpop.f32.mrb[15].mxu0  ;;  %v2611_v43 = vpop.f32.mrb[15].mxu1  ;;  %3589 = vmatprep.subr.bf16.mxu0 (%p1005_p4), %v4452_v45  ;;  %3578 = vmatpush3.bf16.msra.mxu1 (%p1005_p4), %v4152_v34  ;;  %v4156_v46 = vld [vmem:[#allocation17] sm:$0xff] (%p1005_p4)   ;;  %v4157_v27 = vld [vmem:[#allocation17 + $0x8] sm:$0xff] (%p1005_p4)   ;;  %v4158_v28 = vld [vmem:[#allocation17 + $0x10] sm:$0xff] (%p1005_p4)  }
 0x4e5   : > { %v2618_v50 = vmul.f32 0.5, %v2568_v30  ;;  %v2623_v58 = vmul.f32 0.5, %v2609_v52  ;;  %3579 = vmatprep.subr.bf16.mxu1 (%p1005_p4), %v4452_v45  ;;  %v4159_v29 = vld [vmem:[#allocation17 + $0x18] sm:$0xff] (%p1005_p4)   ;;  %v4160_v30 = vld [vmem:[#allocation17 + $0x20] sm:$0xff] (%p1005_p4)   ;;  %v4161_v31 = vld [vmem:[#allocation17 + $0x28] sm:$0xff] (%p1005_p4)   ;;  %v2817_v35 = vpop.permute.xlu0 (%p1005_p4), %2816 }
 0x4e6   : > { %4118 = vtanh.f32 %v2614_v37  ;;  %v2813_v37 = vld [vmem:[#allocation14] sm:$0x7] (%p1005_p4) }
 0x4e7   : > { %4120 = vtanh.f32 %v2618_v50  ;;  %v2822_v41 = vrot.slane (%p1005_p4), %v2813_v37, %v4744_v39  ;;  %v2832_v50 = vrot.slane (%p1005_p4), %v2813_v37, %v4746_v40 }
 0x4e8   : > { %4122 = vtanh.f32 %v2607_v51  ;;  %3580 = vmatpush3.bf16.msra.mxu1 (%p1005_p4), %v4153_v38  ;;  %v3476_v51 = vld [vmem:[%s5045_s15] ss:$0 sm:$0xff] (%p1005_p4) }
 0x4e9   : > { %4124 = vtanh.f32 %v2623_v58  ;;  %3581 = vmatprep.subr.bf16.mxu1 (%p1005_p4), %v4452_v45  ;;  %v2827_v58 = vpop.permute.xlu0 (%p1005_p4), %2826 }
 0x4ec   :  { %3582 = vmatpush3.bf16.msra.mxu1 (%p1005_p4), %v4154_v10 }
 0x4ed   :  { %3583 = vmatprep.subr.bf16.mxu1 (%p1005_p4), %v4452_v45 }
 0x4f0   : > { %v4119_v60 = vpop.eup %4118  ;;  %3584 = vmatpush3.bf16.msra.mxu1 (%p1005_p4), %v4155_v26 }
 0x4f1   : > { %v4121_v61 = vpop.eup %4120  ;;  %v2616_v33 = vmul.f32 0.5, %v4119_v60  ;;  %3609 = vmatprep.subr.bf16.mxu1 (%p1005_p4), %v4452_v45 }
 0x4f2   : > { %v2620_v3 = vmul.f32 0.5, %v4121_v61  ;;  %v4123_v8 = vpop.eup %4122 }
 0x4f3   : > { %v2617_v4 = vadd.f32 0.5, %v2616_v33  ;;  %v4125_v14 = vpop.eup %4124  ;;  %v2842_v33 = vrot.slane (%p1005_p4), %v2813_v37, %v4751_v42  ;;  %v4163_v42 = vld [vmem:[#allocation17 + $0x38] sm:$0xff] (%p1005_p4)  }
 0x4f4   : > { %v2621_v9 = vadd.f32 0.5, %v2620_v3  ;;  %v2625_v15 = vmul.f32 0.5, %v4125_v14 }
 0x4f5   : > { %v2628_v36 = vmul.f32 %v4123_v8, %v2617_v4 }
 0x4f6   : > { %v2627_v12 = vmul.f32 %v2621_v9, %v2613_v7  ;;  %v2626_v17 = vadd.f32 0.5, %v2625_v15  ;;  %v2823_v7 = vmul.f32 (%p1005_p4), %v2822_v41, %v2817_v35  ;;  %v2833_v9 = vmul.f32 (%p1005_p4), %v2832_v50, %v2827_v58 }
 0x4f8   : > { %v2629_v13 = vadd.f32 %v2628_v36, %v2627_v12 }
 0x4fa   : > { %4126 = vtanh.f32 %v2629_v13  ;;  %2634 = vst [vmem:[#allocation5 + $0x8] sm:$0xff] %v2629_v13 }
 0x503   :  { %1007 = sbr.rel (!%p1005_p4) target bundleno = 678 (0x2a6), region = 161 }
 0x504   : > { %v4127_v18 = vpop.eup %4126 }
 0x505   : > { %v2631_v20 = vmul.f32 %v4127_v18, %v2626_v17  ;;  %v4162_v17 = vld [vmem:[#allocation17 + $0x30] sm:$0xff] (%p1005_p4)   ;;  %v4164_v18 = vld [vmem:[#allocation20] sm:$0xff] (%p1005_p4)  }
 0x507   : > { %v2632_v21 = vpack.c.bf16 %v2631_v20, %v2631_v20  ;;  %v4165_v20 = vld [vmem:[#allocation20 + $0x8] sm:$0xff] (%p1005_p4)  }
 0x509   : > { %2633 = vst [vmem:[#allocation3 + $0x4] sm:$0xf] %v2632_v21  ;;  %v4166_v21 = vld [vmem:[#allocation20 + $0x10] sm:$0xff] (%p1005_p4)  }
 0x510   :  { %v2636_v59 = vld [vmem:[#allocation3 + $0x4] sm:$0xf] }
 0x511   :  { %2804 = vmatprep.mubr.bf16.mxu0 %v2636_v59  ;;  %v4170_v59 = vld [vmem:[#allocation20 + $0x30] sm:$0xff]  }
 0x512   :  { %2805 = vmatmul.mubr.bf16.vlgmr.msra.gmra.mrb[0].mxu0 %v2635_v32 }
 0x513   :  { %3605 = vmatprep.mubr.msk.bf16.mxu0 %vm4454_vm0, %v4452_v45  ;;  %3590 = vmatpush3.bf16.msra.mxu0 %v4156_v46 }
 0x514   :  { %3591 = vmatprep.subr.bf16.mxu0 %v4452_v45 }
 0x517   :  { %3592 = vmatpush3.bf16.msra.mxu0 %v4157_v27 }
 0x518   :  { %3593 = vmatprep.subr.bf16.mxu0 %v4452_v45 }
 0x51b   :  { %3594 = vmatpush3.bf16.msra.mxu0 %v4158_v28 }
 0x51c   :  { %3595 = vmatprep.subr.bf16.mxu0 %v4452_v45 }
 0x51f   :  { %3596 = vmatpush3.bf16.msra.mxu0 %v4159_v29 }
 0x520   :  { %3597 = vmatprep.subr.bf16.mxu0 %v4452_v45 }
 0x523   :  { %3598 = vmatpush3.bf16.msra.mxu0 %v4160_v30 }
 0x524   :  { %3599 = vmatprep.subr.bf16.mxu0 %v4452_v45 }
 0x527   :  { %3600 = vmatpush3.bf16.msra.mxu0 %v4161_v31 }
 0x528   :  { %3601 = vmatprep.subr.bf16.mxu0 %v4452_v45 }
 0x52b   :  { %3602 = vmatpush3.bf16.msra.mxu0 %v4162_v17 }
 0x52c   :  { %3603 = vmatprep.subr.bf16.mxu0 %v4452_v45 }
 0x52f   :  { %3604 = vmatpush3.bf16.msra.mxu0 %v4163_v42 }
 0x54a   :  { %v2837_v4 = vpop.permute.xlu1 %2836 }
 0x54b   :  { %v2843_v39 = vmul.f32 %v2842_v33, %v2837_v4 }
 0x5e5   :  { %v3536_v43 = vpop.f32.mrb[0].mxu0 }
 0x5e6   :  { %v3537_v52 = vpop.f32.mrb[1].mxu0 }
 0x5e7   :  { %v3538_v60 = vadd.f32 %v3537_v52, %v3536_v43  ;;  %v3539_v61 = vpop.f32.mrb[2].mxu0 }
 0x5e8   :  { %v3540_v3 = vpop.f32.mrb[3].mxu0 }
 0x5e9   :  { %v2807_v8 = vadd.f32 %v3538_v60, %v3476_v51 }
 0x5eb   :  { %v2824_v36 = vadd.f32 %v2823_v7, %v2807_v8 }
 0x5ed   :  { %v2834_v12 = vadd.f32 %v2833_v9, %v2824_v36 }
 0x5ef   :  { %v2844_v13 = vadd.f32 %v2843_v39, %v2834_v12 }
 0x5f1   :  { %v2846_v40 = vmul.f32 0.01, %v2844_v13  ;;  %vm2845_vm1 = vcmp.gt.f32.partialorder %v2844_v13, 0.0 }
 0x5f3   :  { %v2847_v14 = vsel %vm2845_vm1, %v2844_v13, %v2846_v40 }
 0x5f4   :  { %v2848_v15 = vpack.c.bf16 %v2847_v14, %v2847_v14 }
 0x5f6   :  { %3586 = vmatmul.mubr.bf16.vlgmr.msra.gmra.mrb[0].mxu1 %v2848_v15 }
 0x5f7   :  { %3625 = vmatprep.mubr.msk.bf16.mxu1 %vm4454_vm0, %v4452_v45  ;;  %3610 = vmatpush3.bf16.msra.mxu1 %v4164_v18 }
 0x5f8   :  { %3611 = vmatprep.subr.bf16.mxu1 %v4452_v45 }
 0x5fb   :  { %3612 = vmatpush3.bf16.msra.mxu1 %v4165_v20 }
 0x5fc   :  { %3613 = vmatprep.subr.bf16.mxu1 %v4452_v45 }
 0x5ff   :  { %3614 = vmatpush3.bf16.msra.mxu1 %v4166_v21 }
 0x600   :  { %3615 = vmatprep.subr.bf16.mxu1 %v4452_v45 }
 0x603   :  { %3616 = vmatpush3.bf16.msra.mxu1 %v4167_v22 }
 0x604   :  { %3617 = vmatprep.subr.bf16.mxu1 %v4452_v45 }
 0x607   :  { %3618 = vmatpush3.bf16.msra.mxu1 %v4168_v23 }
 0x608   :  { %3619 = vmatprep.subr.bf16.mxu1 %v4452_v45 }
 0x60b   :  { %3620 = vmatpush3.bf16.msra.mxu1 %v4169_v24 }
 0x60c   :  { %3621 = vmatprep.subr.bf16.mxu1 %v4452_v45 }
 0x60f   :  { %3622 = vmatpush3.bf16.msra.mxu1 %v4170_v59 }
 0x610   :  { %3623 = vmatprep.subr.bf16.mxu1 %v4452_v45 }
 0x613   :  { %3624 = vmatpush3.bf16.msra.mxu1 %v4171_v63 }
 0x6c9   :  { %v2954_v44 = vpop.f32.mrb[0].mxu1 }
 0x6ca   :  { %v2955_v0 = vadd.f32 %v3493_v25, %v2954_v44  ;;  %v3587_v47 = vpop.f32.mrb[1].mxu1 }
 0x6cb   :  { %v2957_v48 = vpop.f32.mrb[2].mxu1 }
 0x6cc   :  { %vm2960_vm2 = vcmp.gt.f32.partialorder %v2955_v0, 0.0  ;;  %v2961_v49 = vmul.f32 0.01, %v2955_v0  ;;  %v3588_v55 = vpop.f32.mrb[3].mxu1 }
 0x6ce   :  { %v2962_v56 = vsel %vm2960_vm2, %v2955_v0, %v2961_v49 }
 0x6cf   :  { %v2963_v57 = vpack.c.bf16 %v2962_v56, %v2962_v56 }
 0x6d1   :  { %3606 = vmatmul.mubr.bf16.vlgmr.msra.gmra.mrb[4].mxu0 %v2963_v57 }
 0x7a4   :  { %v3069_v2 = vpop.f32.mrb[4].mxu0 }
 0x7a5   :  { %v3070_v5 = vadd.f32 %v3502_v1, %v3069_v2  ;;  %v3607_v6 = vpop.f32.mrb[5].mxu0 }
 0x7a6   :  { %v3072_v11 = vpop.f32.mrb[6].mxu0 }
 0x7a7   :  { %vm3075_vm3 = vcmp.gt.f32.partialorder %v3070_v5, 0.0  ;;  %v3076_v19 = vmul.f32 0.01, %v3070_v5  ;;  %v3608_v53 = vpop.f32.mrb[7].mxu0 }
 0x7a9   :  { %v3077_v54 = vsel %vm3075_vm3, %v3070_v5, %v3076_v19 }
 0x7aa   :  { %v3078_v62 = vpack.c.bf16 %v3077_v54, %v3077_v54 }
 0x7ac   :  { %3626 = vmatmul.mubr.bf16.vlgmr.msra.gmra.mrb[4].mxu1 %v3078_v62 }
 0x87f   :  { %v3184_v32 = vpop.f32.mrb[4].mxu1 }
 0x880   :  { %v3185_v34 = vadd.f32 %v3511_v16, %v3184_v32  ;;  %v3627_v38 = vpop.f32.mrb[5].mxu1 }
 0x881   :  { %v3187_v10 = vpop.f32.mrb[6].mxu1 }
 0x882   :  { %3190 = vst [vmem:[%s5072_s24] sm:$0xff] %v3185_v34  ;;  %v3628_v45 = vpop.f32.mrb[7].mxu1 }
 0x883   :  { %3195 = vsyncpa [#allocation7], 1 }
 0x884   :  { %3196 = vsyncpa [#allocation9], 1 }
 0x885   :  { %3197 = vsyncpa [#allocation12], 1 }
 0x886   :  { %3198 = vsyncpa [#allocation15], 1 }
 0x887   :  { %3199 = vsyncpa [#allocation18], 1 }
 0x888   :  { %3200 = vsyncpa [#allocation21], 1 }

</bundles_post_ra>
